<compile_context>
chip_gen: v7x
topology: tpu7x:2x2x1
jax: 0.10.0
libtpu: 0.0.40
codegen_flags: <defaults>
</compile_context>

<pallas_src>
import jax
import jax.numpy as jnp
import numpy as np
from jax.experimental import pallas as pl
from jax.experimental.pallas import tpu as pltpu


def _round_up(x, m):
    return ((x + m - 1) // m) * m


# ---------------------------------------------------------------------------
# Fused kernel: conv3x3 -> conv1x1 -> conv3x3 -> conv1x1 -> InstanceNorm
# ---------------------------------------------------------------------------
def _make_scm_kernel(W, HW, LPAD):
    """Builds the fused SCM kernel for a fixed (H, W) image size."""

    def kernel(xpad_ref, mask_l_ref, mask_r_ref,
               w1_ref, b1_ref, w2_ref, b2_ref, w3_ref, b3_ref,
               w4_ref, gamma_ref, beta_ref,
               out_ref, y2pad_ref):
        # xpad_ref : (1, HW + 2*LPAD, 3) f32   flat rows, zero halo rows
        # mask_*   : (HW, 1)            f32   0/1 validity of the w-/+1 taps
        # w1_ref   : (9, 3,  C/4)       f32   per-tap 3x3 weights (t = dh*3+dw)
        # w2_ref   : (C/4, C/2)         f32
        # w3_ref   : (9, C/2, C/2)      f32
        # w4_ref   : (C/2, C)           f32
        # b*/gamma/beta : (1, ch)       f32
        # out_ref  : (1, HW, C)         f32
        # y2pad_ref: (HW + 2*LPAD, C/2) f32   VMEM staging for conv3 taps
        c2 = w2_ref.shape[1]

        mask_l = mask_l_ref[...]          # 0 where w == 0   (dw = -1 invalid)
        mask_r = mask_r_ref[...]          # 0 where w == W-1 (dw = +1 invalid)

        def conv3x3(src, w_ref):
            # src: (HW + 2*LPAD, c_in) flat, zero rows outside the image.
            # 9 accumulating matmuls over shifted row windows.  The w-edge
            # mask is applied once per dw-group AFTER the matmul (row scaling
            # commutes with the row-wise matmul), the h-edge is free (zero
            # halo rows).
            groups = []
            for dw in range(3):
                g = None
                for dh in range(3):
                    s = LPAD + (dh - 1) * W + (dw - 1)          # static offset
                    d = jnp.dot(src[s:s + HW, :], w_ref[dh * 3 + dw],
                                preferred_element_type=jnp.float32)
                    g = d if g is None else g + d
                groups.append(g)
            return groups[0] * mask_l + groups[1] + groups[2] * mask_r

        # ---- conv1 (3x3, 3 -> C/4) + ReLU ---------------------------------
        xp = xpad_ref[0]                                  # (HW+2*LPAD, 3) f32
        y1 = jnp.maximum(conv3x3(xp, w1_ref) + b1_ref[...], 0.0)

        # ---- conv2 (1x1, C/4 -> C/2) + ReLU -------------------------------
        y2 = jnp.dot(y1, w2_ref[...], preferred_element_type=jnp.float32)
        y2 = jnp.maximum(y2 + b2_ref[...], 0.0)

        # ---- stage y2 on-chip (flat rows, zero halo) -----------------------
        # Only the halo rows are zeroed (every step -> also correct when the
        # batch axis is sharded across TensorCores); interior store is
        # sublane-tile aligned (LPAD multiple of 16, HW multiple of 8).
        zb = jnp.zeros((LPAD, c2), y2pad_ref.dtype)
        y2pad_ref[0:LPAD, :] = zb
        y2pad_ref[LPAD + HW:2 * LPAD + HW, :] = zb
        y2pad_ref[LPAD:LPAD + HW, :] = y2

        # ---- conv3 (3x3, C/2 -> C/2) + ReLU --------------------------------
        yp = y2pad_ref[...]
        y3 = jnp.maximum(conv3x3(yp, w3_ref) + b3_ref[...], 0.0)

        # ---- conv4 (1x1, C/2 -> C), no ReLU.  b4 omitted: a per-channel ----
        # bias right before per-channel InstanceNorm is cancelled exactly by
        # the mean subtraction and does not change the variance.
        y4 = jnp.dot(y3, w4_ref[...], preferred_element_type=jnp.float32)

        # ---- InstanceNorm2d(affine), centered variance ---------------------
        inv_hw = 1.0 / HW
        mean = jnp.sum(y4, axis=0, keepdims=True) * inv_hw          # (1, C)
        yc = y4 - mean
        var = jnp.sum(yc * yc, axis=0, keepdims=True) * inv_hw      # (1, C)
        scale = gamma_ref[...] * jax.lax.rsqrt(var + 1e-5)
        out_ref[0] = (yc * scale + beta_ref[...]).astype(out_ref.dtype)

    return kernel


# ---------------------------------------------------------------------------
# One-time parameter repacking (hoisted out of the forward path)
# ---------------------------------------------------------------------------
def scm_prepare_params(params):
    (w1, b1, w2, b2, w3, b3, w4, b4, gamma, beta) = params
    del b4    # exactly cancelled by the InstanceNorm mean subtraction
    cin, c4 = w1.shape[2], w1.shape[3]
    c2 = w3.shape[3]
    f32 = lambda a: jnp.asarray(a, jnp.float32)
    w1p = f32(w1).reshape(9, cin, c4)          # tap index t = dh*3 + dw
    w3p = f32(w3).reshape(9, w3.shape[2], c2)
    return (w1p, f32(b1), f32(w2), f32(b2), w3p, f32(b3), f32(w4),
            f32(gamma), f32(beta))


# ---------------------------------------------------------------------------
# Wrapper: layout plumbing + pallas_call
# ---------------------------------------------------------------------------
def scm_forward(x_nhwc, prepped):
    (w1p, b1, w2p, b2, w3p, b3, w4p, gamma, beta) = prepped
    N, H, W, cin = x_nhwc.shape
    c2, C = w2p.shape[1], w4p.shape[1]
    HW = H * W
    # Flat-row halo: the furthest 3x3 tap is +/-(W+1) rows; round the pad up
    # to a 16-row sublane tile so the interior store / tap bases are aligned.
    LPAD = _round_up(W + 1, 16)
    R = HW + 2 * LPAD

    # Raw NHWC input flattened to rows and zero-padded with LPAD halo rows
    # (no im2col: ~4.5x less input HBM traffic than a (HW, 27) operand).
    xflat = jnp.asarray(x_nhwc, jnp.float32).reshape(N, HW, cin)
    xpad = jnp.pad(xflat, ((0, 0), (LPAD, LPAD), (0, 0)))

    # Per-output-pixel validity of the w-1 / w+1 taps (applied post-matmul).
    col = np.arange(HW, dtype=np.int32) % W
    mask_l = jnp.asarray(col >= 1, jnp.float32).reshape(HW, 1)
    mask_r = jnp.asarray(col <= W - 2, jnp.float32).reshape(HW, 1)

    kernel = _make_scm_kernel(W, HW, LPAD)

    # VMEM budget from the actual (lane/sublane padded) block sizes, double
    # buffered, plus headroom; capped so the request is v7x-safe.
    def _pad_bytes(shape, dtype):
        it = jnp.dtype(dtype).itemsize
        sub = 8 * max(1, 4 // it)
        lead = int(np.prod(shape[:-2])) if len(shape) > 2 else 1
        return lead * _round_up(shape[-2], sub) * _round_up(shape[-1], 128) * it

    blocks = [((1, R, cin), jnp.float32), ((HW, 1), jnp.float32),
              ((HW, 1), jnp.float32), (w1p.shape, jnp.float32),
              (b1.shape, jnp.float32), (w2p.shape, jnp.float32),
              (b2.shape, jnp.float32), (w3p.shape, jnp.float32),
              (b3.shape, jnp.float32), (w4p.shape, jnp.float32),
              (gamma.shape, jnp.float32), (beta.shape, jnp.float32),
              ((1, HW, C), jnp.float32)]
    est = 2 * sum(_pad_bytes(s, d) for s, d in blocks) \
        + _pad_bytes((R, c2), jnp.float32)
    vmem_limit = int(min(max(est + 8 * 2**20, 16 * 2**20), 48 * 2**20))

    out = pl.pallas_call(
        kernel,
        out_shape=jax.ShapeDtypeStruct((N, HW, C), jnp.float32),
        grid=(N,),
        in_specs=[
            pl.BlockSpec((1, R, cin), lambda n: (n, 0, 0)),
            pl.BlockSpec((HW, 1), lambda n: (0, 0)),
            pl.BlockSpec((HW, 1), lambda n: (0, 0)),
            pl.BlockSpec(w1p.shape, lambda n: (0, 0, 0)),
            pl.BlockSpec(b1.shape, lambda n: (0, 0)),
            pl.BlockSpec(w2p.shape, lambda n: (0, 0)),
            pl.BlockSpec(b2.shape, lambda n: (0, 0)),
            pl.BlockSpec(w3p.shape, lambda n: (0, 0, 0)),
            pl.BlockSpec(b3.shape, lambda n: (0, 0)),
            pl.BlockSpec(w4p.shape, lambda n: (0, 0)),
            pl.BlockSpec(gamma.shape, lambda n: (0, 0)),
            pl.BlockSpec(beta.shape, lambda n: (0, 0)),
        ],
        out_specs=pl.BlockSpec((1, HW, C), lambda n: (n, 0, 0)),
        scratch_shapes=[pltpu.VMEM((R, c2), jnp.float32)],
        compiler_params=pltpu.CompilerParams(
            dimension_semantics=("parallel",),   # feeds both v7x TensorCores
            vmem_limit_bytes=vmem_limit),
    )(xpad, mask_l, mask_r, w1p, b1, w2p, b2, w3p, b3, w4p, gamma, beta)

    return out.reshape(N, H, W, C)   # NHWC


# ---------------------------------------------------------------------------
# Pure-JAX f32 reference (module semantics, for correctness check)
# ---------------------------------------------------------------------------
def scm_reference(x_nhwc, params):
    (w1, b1, w2, b2, w3, b3, w4, b4, gamma, beta) = params

    def conv(x, w_hwio, b, pad):
        y = jax.lax.conv_general_dilated(
            x, w_hwio, window_strides=(1, 1),
            padding=[(pad, pad), (pad, pad)],
            dimension_numbers=("NHWC", "HWIO", "NHWC"))
        return y + b.reshape(1, 1, 1, -1)

    y = jax.nn.relu(conv(x_nhwc, w1, b1, 1))
    y = jax.nn.relu(conv(y, w2.reshape(1, 1, *w2.shape), b2, 0))
    y = jax.nn.relu(conv(y, w3, b3, 1))
    y = conv(y, w4.reshape(1, 1, *w4.shape), b4, 0)
    mean = y.mean(axis=(1, 2), keepdims=True)
    var = ((y - mean) ** 2).mean(axis=(1, 2), keepdims=True)
    yhat = (y - mean) / jnp.sqrt(var + 1e-5)
    return yhat * gamma.reshape(1, 1, 1, -1) + beta.reshape(1, 1, 1, -1)


# ---------------------------------------------------------------------------
if __name__ == "__main__":
    N, H, W = 2, 16, 16
    out_plane = 32
    c4, c2, C = out_plane // 4, out_plane // 2, out_plane

    key = jax.random.PRNGKey(0)
    ks = jax.random.split(key, 12)

    # Deterministic synthetic parameters (HWIO conv weights, (1,C) biases).
    w1 = 0.1 * jax.random.normal(ks[0], (3, 3, 3, c4), jnp.float32)
    b1 = 0.1 * jax.random.normal(ks[1], (1, c4), jnp.float32)
    w2 = 0.1 * jax.random.normal(ks[2], (c4, c2), jnp.float32)
    b2 = 0.1 * jax.random.normal(ks[3], (1, c2), jnp.float32)
    w3 = 0.1 * jax.random.normal(ks[4], (3, 3, c2, c2), jnp.float32)
    b3 = 0.1 * jax.random.normal(ks[5], (1, c2), jnp.float32)
    w4 = 0.1 * jax.random.normal(ks[6], (c2, C), jnp.float32)
    b4 = 0.1 * jax.random.normal(ks[7], (1, C), jnp.float32)
    gamma = 1.0 + 0.1 * jax.random.normal(ks[8], (1, C), jnp.float32)
    beta = 0.1 * jax.random.normal(ks[9], (1, C), jnp.float32)
    params = (w1, b1, w2, b2, w3, b3, w4, b4, gamma, beta)

    # Input (PyTorch would be NCHW [N,3,H,W]; kernels use NHWC).
    x_nchw = jax.random.normal(ks[10], (N, 3, H, W), jnp.float32)
    x_nhwc = jnp.transpose(x_nchw, (0, 2, 3, 1))

    prepped = scm_prepare_params(params)       # one-time weight repacking
    out = jax.block_until_ready(scm_forward(x_nhwc, prepped))
    ref = jax.block_until_ready(scm_reference(x_nhwc, params))

    # All-f32 operands -> tight tolerance (InstanceNorm divides by the small
    # per-channel std, but f32 accumulation-order differences stay << 1e-3).
    np.testing.assert_allclose(np.asarray(out), np.asarray(ref),
                               rtol=1e-3, atol=1e-3)
    print("KERNEL_OK")
</pallas_src>

<mosaic_0001>
module attributes {stable_mosaic.version = 11 : i64} {
  func.func @kernel(%arg0: i32, %arg1: memref<1x320x3xf32, #tpu.memory_space<vmem>>, %arg2: memref<256x1xf32, #tpu.memory_space<vmem>>, %arg3: memref<256x1xf32, #tpu.memory_space<vmem>>, %arg4: memref<9x3x8xf32, #tpu.memory_space<vmem>>, %arg5: memref<1x8xf32, #tpu.memory_space<vmem>>, %arg6: memref<8x16xf32, #tpu.memory_space<vmem>>, %arg7: memref<1x16xf32, #tpu.memory_space<vmem>>, %arg8: memref<9x16x16xf32, #tpu.memory_space<vmem>>, %arg9: memref<1x16xf32, #tpu.memory_space<vmem>>, %arg10: memref<16x32xf32, #tpu.memory_space<vmem>>, %arg11: memref<1x32xf32, #tpu.memory_space<vmem>>, %arg12: memref<1x32xf32, #tpu.memory_space<vmem>>, %arg13: memref<1x256x32xf32, #tpu.memory_space<vmem>>, %arg14: memref<320x16xf32, #tpu.memory_space<vmem>>) attributes {dimension_semantics = [#tpu.dimension_semantics<parallel>], iteration_bounds = array<i64: 2>, scalar_prefetch = 0 : i64, scratch_operands = 1 : i64, tpu.core_type = #tpu.core_type<tc>, window_params = [{transform_indices = @transform_0, window_bounds = array<i64: 1, 320, 3>}, {pipeline_mode = #tpu.pipeline_mode<synchronous>, transform_indices = @transform_1, window_bounds = array<i64: 256, 1>}, {pipeline_mode = #tpu.pipeline_mode<synchronous>, transform_indices = @transform_2, window_bounds = array<i64: 256, 1>}, {pipeline_mode = #tpu.pipeline_mode<synchronous>, transform_indices = @transform_3, window_bounds = array<i64: 9, 3, 8>}, {pipeline_mode = #tpu.pipeline_mode<synchronous>, transform_indices = @transform_4, window_bounds = array<i64: 1, 8>}, {pipeline_mode = #tpu.pipeline_mode<synchronous>, transform_indices = @transform_5, window_bounds = array<i64: 8, 16>}, {pipeline_mode = #tpu.pipeline_mode<synchronous>, transform_indices = @transform_6, window_bounds = array<i64: 1, 16>}, {pipeline_mode = #tpu.pipeline_mode<synchronous>, transform_indices = @transform_7, window_bounds = array<i64: 9, 16, 16>}, {pipeline_mode = #tpu.pipeline_mode<synchronous>, transform_indices = @transform_8, window_bounds = array<i64: 1, 16>}, {pipeline_mode = #tpu.pipeline_mode<synchronous>, transform_indices = @transform_9, window_bounds = array<i64: 16, 32>}, {pipeline_mode = #tpu.pipeline_mode<synchronous>, transform_indices = @transform_10, window_bounds = array<i64: 1, 32>}, {pipeline_mode = #tpu.pipeline_mode<synchronous>, transform_indices = @transform_11, window_bounds = array<i64: 1, 32>}, {transform_indices = @transform_12, window_bounds = array<i64: 1, 256, 32>}]} {
    %c0 = arith.constant 0 : index
    %c0_0 = arith.constant 0 : index
    %0 = vector.load %arg2[%c0, %c0_0] : memref<256x1xf32, #tpu.memory_space<vmem>>, vector<256x1xf32>
    %c0_1 = arith.constant 0 : index
    %c0_2 = arith.constant 0 : index
    %1 = vector.load %arg3[%c0_1, %c0_2] : memref<256x1xf32, #tpu.memory_space<vmem>>, vector<256x1xf32>
    %c0_3 = arith.constant 0 : index
    %c0_4 = arith.constant 0 : index
    %c0_5 = arith.constant 0 : index
    %2 = vector.load %arg1[%c0_3, %c0_4, %c0_5] : memref<1x320x3xf32, #tpu.memory_space<vmem>>, vector<1x320x3xf32>
    %3 = vector.shape_cast %2 : vector<1x320x3xf32> to vector<320x3xf32>
    %4 = vector.extract_strided_slice %3 {offsets = [15, 0], sizes = [256, 3], strides = [1, 1]} : vector<320x3xf32> to vector<256x3xf32>
    %c0_6 = arith.constant 0 : index
    %c0_7 = arith.constant 0 : index
    %c0_8 = arith.constant 0 : index
    %5 = vector.load %arg4[%c0_6, %c0_7, %c0_8] : memref<9x3x8xf32, #tpu.memory_space<vmem>>, vector<1x3x8xf32>
    %6 = vector.shape_cast %5 : vector<1x3x8xf32> to vector<3x8xf32>
    %cst = arith.constant dense<0.000000e+00> : vector<256x8xf32>
    %7 = tpu.matmul %4, %6, %cst {dimension_numbers = #tpu.dot_dimension_numbers<[1], [0], [0], [1], [0, 0, 1, 1], [], []>} : vector<256x3xf32>, vector<3x8xf32>, vector<256x8xf32> -> vector<256x8xf32>
    %8 = vector.extract_strided_slice %3 {offsets = [31, 0], sizes = [256, 3], strides = [1, 1]} : vector<320x3xf32> to vector<256x3xf32>
    %c3 = arith.constant 3 : index
    %c0_9 = arith.constant 0 : index
    %c0_10 = arith.constant 0 : index
    %9 = vector.load %arg4[%c3, %c0_9, %c0_10] : memref<9x3x8xf32, #tpu.memory_space<vmem>>, vector<1x3x8xf32>
    %10 = vector.shape_cast %9 : vector<1x3x8xf32> to vector<3x8xf32>
    %cst_11 = arith.constant dense<0.000000e+00> : vector<256x8xf32>
    %11 = tpu.matmul %8, %10, %cst_11 {dimension_numbers = #tpu.dot_dimension_numbers<[1], [0], [0], [1], [0, 0, 1, 1], [], []>} : vector<256x3xf32>, vector<3x8xf32>, vector<256x8xf32> -> vector<256x8xf32>
    %12 = arith.addf %7, %11 : vector<256x8xf32>
    %13 = vector.extract_strided_slice %3 {offsets = [47, 0], sizes = [256, 3], strides = [1, 1]} : vector<320x3xf32> to vector<256x3xf32>
    %c6 = arith.constant 6 : index
    %c0_12 = arith.constant 0 : index
    %c0_13 = arith.constant 0 : index
    %14 = vector.load %arg4[%c6, %c0_12, %c0_13] : memref<9x3x8xf32, #tpu.memory_space<vmem>>, vector<1x3x8xf32>
    %15 = vector.shape_cast %14 : vector<1x3x8xf32> to vector<3x8xf32>
    %cst_14 = arith.constant dense<0.000000e+00> : vector<256x8xf32>
    %16 = tpu.matmul %13, %15, %cst_14 {dimension_numbers = #tpu.dot_dimension_numbers<[1], [0], [0], [1], [0, 0, 1, 1], [], []>} : vector<256x3xf32>, vector<3x8xf32>, vector<256x8xf32> -> vector<256x8xf32>
    %17 = arith.addf %12, %16 : vector<256x8xf32>
    %18 = vector.extract_strided_slice %3 {offsets = [16, 0], sizes = [256, 3], strides = [1, 1]} : vector<320x3xf32> to vector<256x3xf32>
    %c1 = arith.constant 1 : index
    %c0_15 = arith.constant 0 : index
    %c0_16 = arith.constant 0 : index
    %19 = vector.load %arg4[%c1, %c0_15, %c0_16] : memref<9x3x8xf32, #tpu.memory_space<vmem>>, vector<1x3x8xf32>
    %20 = vector.shape_cast %19 : vector<1x3x8xf32> to vector<3x8xf32>
    %cst_17 = arith.constant dense<0.000000e+00> : vector<256x8xf32>
    %21 = tpu.matmul %18, %20, %cst_17 {dimension_numbers = #tpu.dot_dimension_numbers<[1], [0], [0], [1], [0, 0, 1, 1], [], []>} : vector<256x3xf32>, vector<3x8xf32>, vector<256x8xf32> -> vector<256x8xf32>
    %22 = vector.extract_strided_slice %3 {offsets = [32, 0], sizes = [256, 3], strides = [1, 1]} : vector<320x3xf32> to vector<256x3xf32>
    %c4 = arith.constant 4 : index
    %c0_18 = arith.constant 0 : index
    %c0_19 = arith.constant 0 : index
    %23 = vector.load %arg4[%c4, %c0_18, %c0_19] : memref<9x3x8xf32, #tpu.memory_space<vmem>>, vector<1x3x8xf32>
    %24 = vector.shape_cast %23 : vector<1x3x8xf32> to vector<3x8xf32>
    %cst_20 = arith.constant dense<0.000000e+00> : vector<256x8xf32>
    %25 = tpu.matmul %22, %24, %cst_20 {dimension_numbers = #tpu.dot_dimension_numbers<[1], [0], [0], [1], [0, 0, 1, 1], [], []>} : vector<256x3xf32>, vector<3x8xf32>, vector<256x8xf32> -> vector<256x8xf32>
    %26 = arith.addf %21, %25 : vector<256x8xf32>
    %27 = vector.extract_strided_slice %3 {offsets = [48, 0], sizes = [256, 3], strides = [1, 1]} : vector<320x3xf32> to vector<256x3xf32>
    %c7 = arith.constant 7 : index
    %c0_21 = arith.constant 0 : index
    %c0_22 = arith.constant 0 : index
    %28 = vector.load %arg4[%c7, %c0_21, %c0_22] : memref<9x3x8xf32, #tpu.memory_space<vmem>>, vector<1x3x8xf32>
    %29 = vector.shape_cast %28 : vector<1x3x8xf32> to vector<3x8xf32>
    %cst_23 = arith.constant dense<0.000000e+00> : vector<256x8xf32>
    %30 = tpu.matmul %27, %29, %cst_23 {dimension_numbers = #tpu.dot_dimension_numbers<[1], [0], [0], [1], [0, 0, 1, 1], [], []>} : vector<256x3xf32>, vector<3x8xf32>, vector<256x8xf32> -> vector<256x8xf32>
    %31 = arith.addf %26, %30 : vector<256x8xf32>
    %32 = vector.extract_strided_slice %3 {offsets = [17, 0], sizes = [256, 3], strides = [1, 1]} : vector<320x3xf32> to vector<256x3xf32>
    %c2 = arith.constant 2 : index
    %c0_24 = arith.constant 0 : index
    %c0_25 = arith.constant 0 : index
    %33 = vector.load %arg4[%c2, %c0_24, %c0_25] : memref<9x3x8xf32, #tpu.memory_space<vmem>>, vector<1x3x8xf32>
    %34 = vector.shape_cast %33 : vector<1x3x8xf32> to vector<3x8xf32>
    %cst_26 = arith.constant dense<0.000000e+00> : vector<256x8xf32>
    %35 = tpu.matmul %32, %34, %cst_26 {dimension_numbers = #tpu.dot_dimension_numbers<[1], [0], [0], [1], [0, 0, 1, 1], [], []>} : vector<256x3xf32>, vector<3x8xf32>, vector<256x8xf32> -> vector<256x8xf32>
    %36 = vector.extract_strided_slice %3 {offsets = [33, 0], sizes = [256, 3], strides = [1, 1]} : vector<320x3xf32> to vector<256x3xf32>
    %c5 = arith.constant 5 : index
    %c0_27 = arith.constant 0 : index
    %c0_28 = arith.constant 0 : index
    %37 = vector.load %arg4[%c5, %c0_27, %c0_28] : memref<9x3x8xf32, #tpu.memory_space<vmem>>, vector<1x3x8xf32>
    %38 = vector.shape_cast %37 : vector<1x3x8xf32> to vector<3x8xf32>
    %cst_29 = arith.constant dense<0.000000e+00> : vector<256x8xf32>
    %39 = tpu.matmul %36, %38, %cst_29 {dimension_numbers = #tpu.dot_dimension_numbers<[1], [0], [0], [1], [0, 0, 1, 1], [], []>} : vector<256x3xf32>, vector<3x8xf32>, vector<256x8xf32> -> vector<256x8xf32>
    %40 = arith.addf %35, %39 : vector<256x8xf32>
    %41 = vector.extract_strided_slice %3 {offsets = [49, 0], sizes = [256, 3], strides = [1, 1]} : vector<320x3xf32> to vector<256x3xf32>
    %c8 = arith.constant 8 : index
    %c0_30 = arith.constant 0 : index
    %c0_31 = arith.constant 0 : index
    %42 = vector.load %arg4[%c8, %c0_30, %c0_31] : memref<9x3x8xf32, #tpu.memory_space<vmem>>, vector<1x3x8xf32>
    %43 = vector.shape_cast %42 : vector<1x3x8xf32> to vector<3x8xf32>
    %cst_32 = arith.constant dense<0.000000e+00> : vector<256x8xf32>
    %44 = tpu.matmul %41, %43, %cst_32 {dimension_numbers = #tpu.dot_dimension_numbers<[1], [0], [0], [1], [0, 0, 1, 1], [], []>} : vector<256x3xf32>, vector<3x8xf32>, vector<256x8xf32> -> vector<256x8xf32>
    %45 = arith.addf %40, %44 : vector<256x8xf32>
    %46 = vector.broadcast %0 : vector<256x1xf32> to vector<256x8xf32>
    %47 = arith.mulf %17, %46 : vector<256x8xf32>
    %48 = arith.addf %47, %31 : vector<256x8xf32>
    %49 = vector.broadcast %1 : vector<256x1xf32> to vector<256x8xf32>
    %50 = arith.mulf %45, %49 : vector<256x8xf32>
    %51 = arith.addf %48, %50 : vector<256x8xf32>
    %c0_33 = arith.constant 0 : index
    %c0_34 = arith.constant 0 : index
    %52 = vector.load %arg5[%c0_33, %c0_34] : memref<1x8xf32, #tpu.memory_space<vmem>>, vector<1x8xf32>
    %53 = vector.broadcast %52 : vector<1x8xf32> to vector<256x8xf32>
    %54 = arith.addf %51, %53 : vector<256x8xf32>
    %cst_35 = arith.constant 0.000000e+00 : f32
    %55 = vector.broadcast %cst_35 : f32 to vector<256x8xf32>
    %56 = arith.maximumf %54, %55 : vector<256x8xf32>
    %c0_36 = arith.constant 0 : index
    %c0_37 = arith.constant 0 : index
    %57 = vector.load %arg6[%c0_36, %c0_37] : memref<8x16xf32, #tpu.memory_space<vmem>>, vector<8x16xf32>
    %cst_38 = arith.constant dense<0.000000e+00> : vector<256x16xf32>
    %58 = tpu.matmul %56, %57, %cst_38 {dimension_numbers = #tpu.dot_dimension_numbers<[1], [0], [0], [1], [0, 0, 1, 1], [], []>} : vector<256x8xf32>, vector<8x16xf32>, vector<256x16xf32> -> vector<256x16xf32>
    %c0_39 = arith.constant 0 : index
    %c0_40 = arith.constant 0 : index
    %59 = vector.load %arg7[%c0_39, %c0_40] : memref<1x16xf32, #tpu.memory_space<vmem>>, vector<1x16xf32>
    %60 = vector.broadcast %59 : vector<1x16xf32> to vector<256x16xf32>
    %61 = arith.addf %58, %60 : vector<256x16xf32>
    %cst_41 = arith.constant 0.000000e+00 : f32
    %62 = vector.broadcast %cst_41 : f32 to vector<256x16xf32>
    %63 = arith.maximumf %61, %62 : vector<256x16xf32>
    %cst_42 = arith.constant 0.000000e+00 : f32
    %64 = vector.broadcast %cst_42 : f32 to vector<32x16xf32>
    %c0_43 = arith.constant 0 : index
    %c0_44 = arith.constant 0 : index
    %65 = vector.load %arg14[%c0_43, %c0_44] : memref<320x16xf32, #tpu.memory_space<vmem>>, vector<32x16xf32>
    tpu.vector_store %arg14[%c0_43, %c0_44], %64 {strides = array<i32>} : memref<320x16xf32, #tpu.memory_space<vmem>>, vector<32x16xf32>,
    %c288 = arith.constant 288 : index
    %c0_45 = arith.constant 0 : index
    %66 = vector.load %arg14[%c288, %c0_45] : memref<320x16xf32, #tpu.memory_space<vmem>>, vector<32x16xf32>
    tpu.vector_store %arg14[%c288, %c0_45], %64 {strides = array<i32>} : memref<320x16xf32, #tpu.memory_space<vmem>>, vector<32x16xf32>,
    %c32 = arith.constant 32 : index
    %c0_46 = arith.constant 0 : index
    %67 = vector.load %arg14[%c32, %c0_46] : memref<320x16xf32, #tpu.memory_space<vmem>>, vector<256x16xf32>
    tpu.vector_store %arg14[%c32, %c0_46], %63 {strides = array<i32>} : memref<320x16xf32, #tpu.memory_space<vmem>>, vector<256x16xf32>,
    %c0_47 = arith.constant 0 : index
    %c0_48 = arith.constant 0 : index
    %68 = vector.load %arg14[%c0_47, %c0_48] : memref<320x16xf32, #tpu.memory_space<vmem>>, vector<320x16xf32>
    %69 = vector.extract_strided_slice %68 {offsets = [15, 0], sizes = [256, 16], strides = [1, 1]} : vector<320x16xf32> to vector<256x16xf32>
    %c0_49 = arith.constant 0 : index
    %c0_50 = arith.constant 0 : index
    %c0_51 = arith.constant 0 : index
    %70 = vector.load %arg8[%c0_49, %c0_50, %c0_51] : memref<9x16x16xf32, #tpu.memory_space<vmem>>, vector<1x16x16xf32>
    %71 = vector.shape_cast %70 : vector<1x16x16xf32> to vector<16x16xf32>
    %cst_52 = arith.constant dense<0.000000e+00> : vector<256x16xf32>
    %72 = tpu.matmul %69, %71, %cst_52 {dimension_numbers = #tpu.dot_dimension_numbers<[1], [0], [0], [1], [0, 0, 1, 1], [], []>} : vector<256x16xf32>, vector<16x16xf32>, vector<256x16xf32> -> vector<256x16xf32>
    %73 = vector.extract_strided_slice %68 {offsets = [31, 0], sizes = [256, 16], strides = [1, 1]} : vector<320x16xf32> to vector<256x16xf32>
    %c3_53 = arith.constant 3 : index
    %c0_54 = arith.constant 0 : index
    %c0_55 = arith.constant 0 : index
    %74 = vector.load %arg8[%c3_53, %c0_54, %c0_55] : memref<9x16x16xf32, #tpu.memory_space<vmem>>, vector<1x16x16xf32>
    %75 = vector.shape_cast %74 : vector<1x16x16xf32> to vector<16x16xf32>
    %cst_56 = arith.constant dense<0.000000e+00> : vector<256x16xf32>
    %76 = tpu.matmul %73, %75, %cst_56 {dimension_numbers = #tpu.dot_dimension_numbers<[1], [0], [0], [1], [0, 0, 1, 1], [], []>} : vector<256x16xf32>, vector<16x16xf32>, vector<256x16xf32> -> vector<256x16xf32>
    %77 = arith.addf %72, %76 : vector<256x16xf32>
    %78 = vector.extract_strided_slice %68 {offsets = [47, 0], sizes = [256, 16], strides = [1, 1]} : vector<320x16xf32> to vector<256x16xf32>
    %c6_57 = arith.constant 6 : index
    %c0_58 = arith.constant 0 : index
    %c0_59 = arith.constant 0 : index
    %79 = vector.load %arg8[%c6_57, %c0_58, %c0_59] : memref<9x16x16xf32, #tpu.memory_space<vmem>>, vector<1x16x16xf32>
    %80 = vector.shape_cast %79 : vector<1x16x16xf32> to vector<16x16xf32>
    %cst_60 = arith.constant dense<0.000000e+00> : vector<256x16xf32>
    %81 = tpu.matmul %78, %80, %cst_60 {dimension_numbers = #tpu.dot_dimension_numbers<[1], [0], [0], [1], [0, 0, 1, 1], [], []>} : vector<256x16xf32>, vector<16x16xf32>, vector<256x16xf32> -> vector<256x16xf32>
    %82 = arith.addf %77, %81 : vector<256x16xf32>
    %83 = vector.extract_strided_slice %68 {offsets = [16, 0], sizes = [256, 16], strides = [1, 1]} : vector<320x16xf32> to vector<256x16xf32>
    %c1_61 = arith.constant 1 : index
    %c0_62 = arith.constant 0 : index
    %c0_63 = arith.constant 0 : index
    %84 = vector.load %arg8[%c1_61, %c0_62, %c0_63] : memref<9x16x16xf32, #tpu.memory_space<vmem>>, vector<1x16x16xf32>
    %85 = vector.shape_cast %84 : vector<1x16x16xf32> to vector<16x16xf32>
    %cst_64 = arith.constant dense<0.000000e+00> : vector<256x16xf32>
    %86 = tpu.matmul %83, %85, %cst_64 {dimension_numbers = #tpu.dot_dimension_numbers<[1], [0], [0], [1], [0, 0, 1, 1], [], []>} : vector<256x16xf32>, vector<16x16xf32>, vector<256x16xf32> -> vector<256x16xf32>
    %87 = vector.extract_strided_slice %68 {offsets = [32, 0], sizes = [256, 16], strides = [1, 1]} : vector<320x16xf32> to vector<256x16xf32>
    %c4_65 = arith.constant 4 : index
    %c0_66 = arith.constant 0 : index
    %c0_67 = arith.constant 0 : index
    %88 = vector.load %arg8[%c4_65, %c0_66, %c0_67] : memref<9x16x16xf32, #tpu.memory_space<vmem>>, vector<1x16x16xf32>
    %89 = vector.shape_cast %88 : vector<1x16x16xf32> to vector<16x16xf32>
    %cst_68 = arith.constant dense<0.000000e+00> : vector<256x16xf32>
    %90 = tpu.matmul %87, %89, %cst_68 {dimension_numbers = #tpu.dot_dimension_numbers<[1], [0], [0], [1], [0, 0, 1, 1], [], []>} : vector<256x16xf32>, vector<16x16xf32>, vector<256x16xf32> -> vector<256x16xf32>
    %91 = arith.addf %86, %90 : vector<256x16xf32>
    %92 = vector.extract_strided_slice %68 {offsets = [48, 0], sizes = [256, 16], strides = [1, 1]} : vector<320x16xf32> to vector<256x16xf32>
    %c7_69 = arith.constant 7 : index
    %c0_70 = arith.constant 0 : index
    %c0_71 = arith.constant 0 : index
    %93 = vector.load %arg8[%c7_69, %c0_70, %c0_71] : memref<9x16x16xf32, #tpu.memory_space<vmem>>, vector<1x16x16xf32>
    %94 = vector.shape_cast %93 : vector<1x16x16xf32> to vector<16x16xf32>
    %cst_72 = arith.constant dense<0.000000e+00> : vector<256x16xf32>
    %95 = tpu.matmul %92, %94, %cst_72 {dimension_numbers = #tpu.dot_dimension_numbers<[1], [0], [0], [1], [0, 0, 1, 1], [], []>} : vector<256x16xf32>, vector<16x16xf32>, vector<256x16xf32> -> vector<256x16xf32>
    %96 = arith.addf %91, %95 : vector<256x16xf32>
    %97 = vector.extract_strided_slice %68 {offsets = [17, 0], sizes = [256, 16], strides = [1, 1]} : vector<320x16xf32> to vector<256x16xf32>
    %c2_73 = arith.constant 2 : index
    %c0_74 = arith.constant 0 : index
    %c0_75 = arith.constant 0 : index
    %98 = vector.load %arg8[%c2_73, %c0_74, %c0_75] : memref<9x16x16xf32, #tpu.memory_space<vmem>>, vector<1x16x16xf32>
    %99 = vector.shape_cast %98 : vector<1x16x16xf32> to vector<16x16xf32>
    %cst_76 = arith.constant dense<0.000000e+00> : vector<256x16xf32>
    %100 = tpu.matmul %97, %99, %cst_76 {dimension_numbers = #tpu.dot_dimension_numbers<[1], [0], [0], [1], [0, 0, 1, 1], [], []>} : vector<256x16xf32>, vector<16x16xf32>, vector<256x16xf32> -> vector<256x16xf32>
    %101 = vector.extract_strided_slice %68 {offsets = [33, 0], sizes = [256, 16], strides = [1, 1]} : vector<320x16xf32> to vector<256x16xf32>
    %c5_77 = arith.constant 5 : index
    %c0_78 = arith.constant 0 : index
    %c0_79 = arith.constant 0 : index
    %102 = vector.load %arg8[%c5_77, %c0_78, %c0_79] : memref<9x16x16xf32, #tpu.memory_space<vmem>>, vector<1x16x16xf32>
    %103 = vector.shape_cast %102 : vector<1x16x16xf32> to vector<16x16xf32>
    %cst_80 = arith.constant dense<0.000000e+00> : vector<256x16xf32>
    %104 = tpu.matmul %101, %103, %cst_80 {dimension_numbers = #tpu.dot_dimension_numbers<[1], [0], [0], [1], [0, 0, 1, 1], [], []>} : vector<256x16xf32>, vector<16x16xf32>, vector<256x16xf32> -> vector<256x16xf32>
    %105 = arith.addf %100, %104 : vector<256x16xf32>
    %106 = vector.extract_strided_slice %68 {offsets = [49, 0], sizes = [256, 16], strides = [1, 1]} : vector<320x16xf32> to vector<256x16xf32>
    %c8_81 = arith.constant 8 : index
    %c0_82 = arith.constant 0 : index
    %c0_83 = arith.constant 0 : index
    %107 = vector.load %arg8[%c8_81, %c0_82, %c0_83] : memref<9x16x16xf32, #tpu.memory_space<vmem>>, vector<1x16x16xf32>
    %108 = vector.shape_cast %107 : vector<1x16x16xf32> to vector<16x16xf32>
    %cst_84 = arith.constant dense<0.000000e+00> : vector<256x16xf32>
    %109 = tpu.matmul %106, %108, %cst_84 {dimension_numbers = #tpu.dot_dimension_numbers<[1], [0], [0], [1], [0, 0, 1, 1], [], []>} : vector<256x16xf32>, vector<16x16xf32>, vector<256x16xf32> -> vector<256x16xf32>
    %110 = arith.addf %105, %109 : vector<256x16xf32>
    %111 = vector.broadcast %0 : vector<256x1xf32> to vector<256x16xf32>
    %112 = arith.mulf %82, %111 : vector<256x16xf32>
    %113 = arith.addf %112, %96 : vector<256x16xf32>
    %114 = vector.broadcast %1 : vector<256x1xf32> to vector<256x16xf32>
    %115 = arith.mulf %110, %114 : vector<256x16xf32>
    %116 = arith.addf %113, %115 : vector<256x16xf32>
    %c0_85 = arith.constant 0 : index
    %c0_86 = arith.constant 0 : index
    %117 = vector.load %arg9[%c0_85, %c0_86] : memref<1x16xf32, #tpu.memory_space<vmem>>, vector<1x16xf32>
    %118 = vector.broadcast %117 : vector<1x16xf32> to vector<256x16xf32>
    %119 = arith.addf %116, %118 : vector<256x16xf32>
    %cst_87 = arith.constant 0.000000e+00 : f32
    %120 = vector.broadcast %cst_87 : f32 to vector<256x16xf32>
    %121 = arith.maximumf %119, %120 : vector<256x16xf32>
    %c0_88 = arith.constant 0 : index
    %c0_89 = arith.constant 0 : index
    %122 = vector.load %arg10[%c0_88, %c0_89] : memref<16x32xf32, #tpu.memory_space<vmem>>, vector<16x32xf32>
    %cst_90 = arith.constant dense<0.000000e+00> : vector<256x32xf32>
    %123 = tpu.matmul %121, %122, %cst_90 {dimension_numbers = #tpu.dot_dimension_numbers<[1], [0], [0], [1], [0, 0, 1, 1], [], []>} : vector<256x16xf32>, vector<16x32xf32>, vector<256x32xf32> -> vector<256x32xf32>
    %cst_91 = arith.constant dense<0.000000e+00> : vector<32xf32>
    %124 = vector.multi_reduction <add>, %123, %cst_91 [0] : vector<256x32xf32> to vector<32xf32>
    %125 = vector.shape_cast %124 : vector<32xf32> to vector<1x32xf32>
    %cst_92 = arith.constant 3.906250e-03 : f32
    %126 = vector.broadcast %cst_92 : f32 to vector<1x32xf32>
    %127 = arith.mulf %125, %126 : vector<1x32xf32>
    %128 = vector.broadcast %127 : vector<1x32xf32> to vector<256x32xf32>
    %129 = arith.subf %123, %128 : vector<256x32xf32>
    %130 = arith.mulf %129, %129 : vector<256x32xf32>
    %cst_93 = arith.constant dense<0.000000e+00> : vector<32xf32>
    %131 = vector.multi_reduction <add>, %130, %cst_93 [0] : vector<256x32xf32> to vector<32xf32>
    %132 = vector.shape_cast %131 : vector<32xf32> to vector<1x32xf32>
    %cst_94 = arith.constant 3.906250e-03 : f32
    %133 = vector.broadcast %cst_94 : f32 to vector<1x32xf32>
    %134 = arith.mulf %132, %133 : vector<1x32xf32>
    %c0_95 = arith.constant 0 : index
    %c0_96 = arith.constant 0 : index
    %135 = vector.load %arg11[%c0_95, %c0_96] : memref<1x32xf32, #tpu.memory_space<vmem>>, vector<1x32xf32>
    %cst_97 = arith.constant 9.99999974E-6 : f32
    %136 = vector.broadcast %cst_97 : f32 to vector<1x32xf32>
    %137 = arith.addf %134, %136 : vector<1x32xf32>
    %138 = math.rsqrt %137 : vector<1x32xf32>
    %139 = arith.mulf %135, %138 : vector<1x32xf32>
    %140 = vector.broadcast %139 : vector<1x32xf32> to vector<256x32xf32>
    %141 = arith.mulf %129, %140 : vector<256x32xf32>
    %c0_98 = arith.constant 0 : index
    %c0_99 = arith.constant 0 : index
    %142 = vector.load %arg12[%c0_98, %c0_99] : memref<1x32xf32, #tpu.memory_space<vmem>>, vector<1x32xf32>
    %143 = vector.broadcast %142 : vector<1x32xf32> to vector<256x32xf32>
    %144 = arith.addf %141, %143 : vector<256x32xf32>
    %c0_100 = arith.constant 0 : index
    %c0_101 = arith.constant 0 : index
    %c0_102 = arith.constant 0 : index
    %145 = vector.load %arg13[%c0_100, %c0_101, %c0_102] : memref<1x256x32xf32, #tpu.memory_space<vmem>>, vector<1x256x32xf32>
    %146 = vector.shape_cast %145 : vector<1x256x32xf32> to vector<256x32xf32>
    %147 = vector.shape_cast %144 : vector<256x32xf32> to vector<1x256x32xf32>
    tpu.vector_store %arg13[%c0_100, %c0_101, %c0_102], %147 {strides = array<i32>} : memref<1x256x32xf32, #tpu.memory_space<vmem>>, vector<1x256x32xf32>,
    return
  }
  func.func @transform_0(%arg0: i32) -> (i32, i32, i32) {
    %c0_i32 = arith.constant 0 : i32
    %c0_i32_0 = arith.constant 0 : i32
    %c0_i32_1 = arith.constant 0 : i32
    return %arg0, %c0_i32, %c0_i32_0 : i32, i32, i32
  }
  func.func @transform_1(%arg0: i32) -> (i32, i32) {
    %c0_i32 = arith.constant 0 : i32
    %c0_i32_0 = arith.constant 0 : i32
    %c0_i32_1 = arith.constant 0 : i32
    return %c0_i32, %c0_i32_0 : i32, i32
  }
  func.func @transform_2(%arg0: i32) -> (i32, i32) {
    %c0_i32 = arith.constant 0 : i32
    %c0_i32_0 = arith.constant 0 : i32
    %c0_i32_1 = arith.constant 0 : i32
    return %c0_i32, %c0_i32_0 : i32, i32
  }
  func.func @transform_3(%arg0: i32) -> (i32, i32, i32) {
    %c0_i32 = arith.constant 0 : i32
    %c0_i32_0 = arith.constant 0 : i32
    %c0_i32_1 = arith.constant 0 : i32
    %c0_i32_2 = arith.constant 0 : i32
    return %c0_i32, %c0_i32_0, %c0_i32_1 : i32, i32, i32
  }
  func.func @transform_4(%arg0: i32) -> (i32, i32) {
    %c0_i32 = arith.constant 0 : i32
    %c0_i32_0 = arith.constant 0 : i32
    %c0_i32_1 = arith.constant 0 : i32
    return %c0_i32, %c0_i32_0 : i32, i32
  }
  func.func @transform_5(%arg0: i32) -> (i32, i32) {
    %c0_i32 = arith.constant 0 : i32
    %c0_i32_0 = arith.constant 0 : i32
    %c0_i32_1 = arith.constant 0 : i32
    return %c0_i32, %c0_i32_0 : i32, i32
  }
  func.func @transform_6(%arg0: i32) -> (i32, i32) {
    %c0_i32 = arith.constant 0 : i32
    %c0_i32_0 = arith.constant 0 : i32
    %c0_i32_1 = arith.constant 0 : i32
    return %c0_i32, %c0_i32_0 : i32, i32
  }
  func.func @transform_7(%arg0: i32) -> (i32, i32, i32) {
    %c0_i32 = arith.constant 0 : i32
    %c0_i32_0 = arith.constant 0 : i32
    %c0_i32_1 = arith.constant 0 : i32
    %c0_i32_2 = arith.constant 0 : i32
    return %c0_i32, %c0_i32_0, %c0_i32_1 : i32, i32, i32
  }
  func.func @transform_8(%arg0: i32) -> (i32, i32) {
    %c0_i32 = arith.constant 0 : i32
    %c0_i32_0 = arith.constant 0 : i32
    %c0_i32_1 = arith.constant 0 : i32
    return %c0_i32, %c0_i32_0 : i32, i32
  }
  func.func @transform_9(%arg0: i32) -> (i32, i32) {
    %c0_i32 = arith.constant 0 : i32
    %c0_i32_0 = arith.constant 0 : i32
    %c0_i32_1 = arith.constant 0 : i32
    return %c0_i32, %c0_i32_0 : i32, i32
  }
  func.func @transform_10(%arg0: i32) -> (i32, i32) {
    %c0_i32 = arith.constant 0 : i32
    %c0_i32_0 = arith.constant 0 : i32
    %c0_i32_1 = arith.constant 0 : i32
    return %c0_i32, %c0_i32_0 : i32, i32
  }
  func.func @transform_11(%arg0: i32) -> (i32, i32) {
    %c0_i32 = arith.constant 0 : i32
    %c0_i32_0 = arith.constant 0 : i32
    %c0_i32_1 = arith.constant 0 : i32
    return %c0_i32, %c0_i32_0 : i32, i32
  }
  func.func @transform_12(%arg0: i32) -> (i32, i32, i32) {
    %c0_i32 = arith.constant 0 : i32
    %c0_i32_0 = arith.constant 0 : i32
    %c0_i32_1 = arith.constant 0 : i32
    return %arg0, %c0_i32, %c0_i32_0 : i32, i32, i32
  }
}

</mosaic_0001>

<bundles_post_ra>
// kernel: tpu_custom_call.1
= control target key start
LH: loop header
LB: loop body
LE: loop exit
PB: predicated region body
PF: predicated region fallthrough
CT: control target
= control target key end

     0   :  { %s10381_s21 = smov 0   ;;  %s13686_s0 = inlined_call_operand.vmem [shape: f32[2,320,3], index: 0, kind: input, shape index: {}]   ;;  %s13687_s1 = inlined_call_operand.vmem [shape: f32[256,1], index: 1, kind: input, shape index: {}]   ;;  %s13688_s2 = inlined_call_operand.vmem [shape: f32[256,1], index: 2, kind: input, shape index: {}]   ;;  %s13689_s3 = inlined_call_operand.vmem [shape: f32[9,3,8], index: 3, kind: input, shape index: {}]   ;;  %s13690_s4 = inlined_call_operand.vmem [shape: f32[1,8], index: 4, kind: input, shape index: {}]   ;;  %s13691_s5 = inlined_call_operand.vmem [shape: f32[8,16], index: 5, kind: input, shape index: {}]   ;;  %s13692_s6 = inlined_call_operand.vmem [shape: f32[1,16], index: 6, kind: input, shape index: {}]   ;;  %s13693_s7 = inlined_call_operand.vmem [shape: f32[9,16,16], index: 7, kind: input, shape index: {}]   ;;  %s13694_s8 = inlined_call_operand.vmem [shape: f32[1,16], index: 8, kind: input, shape index: {}]   ;;  %s13695_s9 = inlined_call_operand.vmem [shape: f32[16,32], index: 9, kind: input, shape index: {}]   ;;  %s13696_s10 = inlined_call_operand.vmem [shape: f32[1,32], index: 10, kind: input, shape index: {}]   ;;  %s13697_s11 = inlined_call_operand.vmem [shape: f32[1,32], index: 11, kind: input, shape index: {}]   ;;  %s13698_s12 = inlined_call_operand.vmem [shape: f32[2,256,32], index: 12, kind: output, shape index: {}]  }
   0x1 LB: > { %s7487_s22 = sadd.s32 4294967295, %s10312_s21   ;;  %p7491_p0 = scmp.ge.s32.totalorder %s10312_s21, 1  ;;  %s10312_s21 = sphi %s10381_s21, %s22_s21  }
   0x2   : > { %p362_p1 = scmp.lt.s32.totalorder %s10312_s21, 3 }
   0x4   : > { %p363_p2 = pnand %p7491_p0, %p362_p1 }
   0x6   : > { %366 = sbr.rel (%p363_p2) target bundleno = 1761 (0x6e1), region = 68 }
   0xd   : > { %v7495_v0 = vld [vmem:[%s13689_s3 + $0xc] sm:$0x7]  ;;  %vm683_vm0 = vcmask 1042432   ;;  %p404_p3 = scmp.lt.s32.totalorder %s7487_s22, 1  ;;  %v516_v1 = vld [vmem:[%s13689_s3] sm:$0x7] }
   0xe   : > { %8845 = vmatprep.subr.msk.mxu0 %vm683_vm0, %v7495_v0  ;;  %v7597_v2 = vld [vmem:[%s13689_s3 + $0x10] sm:$0x7]  ;;  %v7596_v3 = vld [vmem:[%s13689_s3 + $0x4] sm:$0x7]  ;;  %vm552_vm1 = vcmask 1040384   ;;  %vm618_vm2 = vcmask 23552  }
   0xf   : > { %8846 = vmatpush3.msk.msra.mxu0 %vm683_vm0, %v7495_v0  ;;  %s14025_s22 = smov (!%p404_p3, %s7487_s22), 1  ;;  %8995 = vmatprep.subr.msk.mxu1 %vm683_vm0, %v7597_v2  ;;  %v10468_v21 = vld [vmem:[%s13689_s3 + $0x18] sm:$0x7]  ;;  %v10520_v34 = vld [vmem:[%s13689_s3 + $0x1c] sm:$0x7]  ;;  %v10314_v55 = vmov 0  }
  0x10   : > { %8895 = vmatprep.subr.msk.mxu0 %vm683_vm0, %v516_v1  ;;  %8996 = vmatpush3.msk.msra.mxu1 %vm683_vm0, %v7597_v2  ;;  %s10289_s13 = smul.u32 320, %s14025_s22  ;;  %v446_v56 = vld [vmem:[%s13688_s2] sm:$0xff]  ;;  %v447_v0 = vld [vmem:[%s13688_s2 + $0x8] sm:$0xff]  ;;  %vm2220_vm3 = vcmask 1046528   ;;  %vm3612_vm4 = vcmask 64512   ;;  %vm3966_vm5 = vcmask 130048  }
  0x11   : > { %9045 = vmatprep.subr.msk.mxu1 %vm683_vm0, %v7596_v3  ;;  %10301 = vset.pattern.permute.xlu1 %v10314_v55  ;;  %v414_v61 = vld [vmem:[%s13687_s1] sm:$0xff]  ;;  %vm7114_vm6 = vcmask 261120  }
  0x12   : > { %s10413_s16 = scalar_lea.vmem %s13686_s0, %s10289_s13  ;;  %10300 = vset.pattern.permute.xlu0 %v10314_v55  ;;  %3311 = vperm.xlu1 %10301, %v446_v56   ;;  %v448_v56 = vld [vmem:[%s13688_s2 + $0x10] sm:$0xff] }
  0x13   : > { %v10416_v4 = vld [vmem:[%s10413_s16 + $0x18] sm:$0xff]  ;;  %v10419_v5 = vld [vmem:[%s10413_s16 + $0x20] sm:$0xff]  ;;  %v10422_v6 = vld [vmem:[%s10413_s16 + $0x28] sm:$0xff]  ;;  %3087 = vperm.xlu0 %10300, %v414_v61  }
  0x14   : > { %13821 = vst [vmem:[#allocation3_spill] sm:$0xff] %v10419_v5  ;;  %13822 = vst [vmem:[#allocation4_spill] sm:$0xff] %v10422_v6  ;;  %v13699_v7 = vrot.slane %v10416_v4, 7  ;;  %v554_v8 = vrot.slane %v10419_v5, 7  ;;  %v556_v9 = vrot.slane %v10422_v6, 7  ;;  %8997 = vmatprep.mubr.msk.f32.mxu1 %vm618_vm2, %v10419_v5  ;;  %v10430_v10 = vld [vmem:[%s10413_s16 + $0x30] sm:$0xff] }
  0x15   : > { %v10433_v11 = vld [vmem:[%s10413_s16 + $0x38] sm:$0xff]  ;;  %v10436_v12 = vld [vmem:[%s10413_s16 + $0x40] sm:$0xff]  ;;  %8998 = vmatmul.mubr.msk.f32.vlgmr.msra.gmra.mrb[0].mxu1 %vm618_vm2, %v10422_v6  ;;  %v558_v13 = vrot.slane %v10430_v10, 7  ;;  %v10454_v18 = vld [vmem:[%s10413_s16 + $0x48] sm:$0xff] }
  0x16   : > { %v560_v14 = vrot.slane %v10433_v11, 7  ;;  %v10445_v15 = vsel %vm552_vm1, %v13699_v7, %v554_v8  ;;  %v10448_v16 = vsel %vm552_vm1, %v554_v8, %v556_v9  ;;  %9000 = vmatprep.mubr.msk.f32.mxu1 %vm618_vm2, %v10430_v10  ;;  %v562_v17 = vrot.slane %v10436_v12, 7  ;;  %9046 = vmatpush3.msk.msra.mxu1 %vm683_vm0, %v7596_v3  ;;  %v10463_v20 = vld [vmem:[%s10413_s16 + $0x50] sm:$0xff]  ;;  %v10486_v26 = vld [vmem:[%s10413_s16 + $0x58] sm:$0xff]  ;;  %v10493_v27 = vld [vmem:[%s10413_s16 + $0x60] sm:$0xff] }
  0x17   : > { %8847 = vmatprep.mubr.msk.f32.mxu0 %vm618_vm2, %v10445_v15  ;;  %v10460_v19 = vsel %vm552_vm1, %v556_v9, %v558_v13  ;;  %v564_v23 = vrot.slane %v10454_v18, 7  ;;  %v566_v25 = vrot.slane %v10463_v20, 7  ;;  %v568_v29 = vrot.slane %v10486_v26, 7  ;;  %v10510_v32 = vld [vmem:[%s10413_s16 + $0x68] sm:$0xff]  ;;  %v10515_v33 = vld [vmem:[%s10413_s16 + $0x70] sm:$0xff]  ;;  %9095 = vmatprep.subr.msk.mxu1 %vm683_vm0, %v10520_v34  ;;  %v10539_v39 = vld [vmem:[%s10413_s16 + $0x78] sm:$0xff] }
  0x18   : > { %8848 = vmatmul.mubr.msk.f32.vlgmr.msra.gmra.mrb[0].mxu0 %vm618_vm2, %v10448_v16  ;;  %v10476_v22 = vsel %vm552_vm1, %v558_v13, %v560_v14  ;;  %v10482_v24 = vsel %vm552_vm1, %v560_v14, %v562_v17  ;;  %v570_v31 = vrot.slane %v10493_v27, 7  ;;  %v572_v36 = vrot.slane %v10510_v32, 7  ;;  %v10544_v40 = vld [vmem:[%s10413_s16 + $0x80] sm:$0xff]  ;;  %v10561_v45 = vld [vmem:[%s10413_s16 + $0x88] sm:$0xff]  ;;  %v10566_v46 = vld [vmem:[%s10413_s16 + $0x90] sm:$0xff]  ;;  %3316 = vperm.xlu1 %10301, %v447_v0  }
  0x19   : > { %8896 = vmatpush3.msk.msra.mxu0 %vm683_vm0, %v516_v1  ;;  %8850 = vmatprep.mubr.msk.f32.mxu0 %vm618_vm2, %v10460_v19  ;;  %v10500_v28 = vsel %vm552_vm1, %v562_v17, %v564_v23  ;;  %v10506_v30 = vsel %vm552_vm1, %v564_v23, %v566_v25  ;;  %v10529_v35 = vsel %vm552_vm1, %v566_v25, %v568_v29  ;;  %v574_v38 = vrot.slane %v10515_v33, 7  ;;  %v10583_v51 = vld [vmem:[%s10413_s16 + $0x98] sm:$0xff]  ;;  %v10588_v52 = vld [vmem:[%s10413_s16 + $0xa0] sm:$0xff]  ;;  %v10608_v59 = vld [vmem:[%s10413_s16 + $0xa8] sm:$0xff] }
  0x1a   : > { %9001 = vmatmul.mubr.msk.f32.gmra.mrb[2].mxu1 %vm618_vm2, %v10433_v11  ;;  %8945 = vmatprep.subr.msk.mxu0 %vm683_vm0, %v10468_v21  ;;  %v10535_v37 = vsel %vm552_vm1, %v568_v29, %v570_v31  ;;  %v10551_v41 = vsel %vm552_vm1, %v570_v31, %v572_v36  ;;  %v576_v42 = vrot.slane %v10539_v39, 7  ;;  %v578_v44 = vrot.slane %v10544_v40, 7  ;;  %v10613_v60 = vld [vmem:[%s10413_s16 + $0xb0] sm:$0xff]  ;;  %v10636_v3 = vld [vmem:[%s10413_s16 + $0xb8] sm:$0xff]  ;;  %v10641_v8 = vld [vmem:[%s10413_s16 + $0xc0] sm:$0xff] }
  0x1b   : > { %9003 = vmatprep.mubr.msk.f32.mxu1 %vm618_vm2, %v10436_v12  ;;  %v10557_v43 = vsel %vm552_vm1, %v572_v36, %v574_v38  ;;  %v580_v48 = vrot.slane %v10561_v45, 7  ;;  %v582_v50 = vrot.slane %v10566_v46, 7  ;;  %v584_v54 = vrot.slane %v10583_v51, 7  ;;  %v415_v9 = vld [vmem:[%s13687_s1 + $0x8] sm:$0xff]  ;;  %v417_v17 = vld [vmem:[%s13687_s1 + $0x18] sm:$0xff]  ;;  %v10669_v31 = vld [vmem:[%s10413_s16 + $0xd0] sm:$0xff] }
  0x1c   : > { %8851 = vmatmul.mubr.msk.f32.gmra.mrb[2].mxu0 %vm618_vm2, %v10476_v22  ;;  %v10573_v47 = vsel %vm552_vm1, %v574_v38, %v576_v42  ;;  %v10579_v49 = vsel %vm552_vm1, %v576_v42, %v578_v44  ;;  %v586_v58 = vrot.slane %v10588_v52, 7  ;;  %v588_v63 = vrot.slane %v10608_v59, 7  ;;  %3092 = vperm.xlu0 %10300, %v415_v9   ;;  %v10664_v29 = vld [vmem:[%s10413_s16 + $0xc8] sm:$0xff]  ;;  %v416_v36 = vld [vmem:[%s13687_s1 + $0x10] sm:$0xff]  ;;  %v10697_v55 = vld [vmem:[%s10413_s16 + $0xe0] sm:$0xff] }
  0x1d   : > { %8853 = vmatprep.mubr.msk.f32.mxu0 %vm618_vm2, %v10482_v24  ;;  %v10595_v53 = vsel %vm552_vm1, %v578_v44, %v580_v48  ;;  %v10604_v57 = vsel %vm552_vm1, %v580_v48, %v582_v50  ;;  %v10623_v62 = vsel %vm552_vm1, %v582_v50, %v584_v54  ;;  %v590_v2 = vrot.slane %v10613_v60, 7  ;;  %3102 = vperm.xlu1 %10301, %v417_v17   ;;  %v449_v44 = vld [vmem:[%s13688_s2 + $0x18] sm:$0xff]  ;;  %v10720_v9 = vld [vmem:[%s10413_s16 + $0xe8] sm:$0xff]  ;;  %v418_v17 = vld [vmem:[%s13687_s1 + $0x20] sm:$0xff] }
  0x1e   : > { %9004 = vmatmul.mubr.msk.f32.gmra.mrb[4].mxu1 %vm618_vm2, %v10454_v18  ;;  %v10632_v1 = vsel %vm552_vm1, %v584_v54, %v586_v58  ;;  %v10651_v13 = vsel %vm552_vm1, %v586_v58, %v588_v63  ;;  %v592_v14 = vrot.slane %v10636_v3, 7  ;;  %v594_v25 = vrot.slane %v10641_v8, 7  ;;  %v10692_v54 = vld [vmem:[%s10413_s16 + $0xd8] sm:$0xff]  ;;  %13824 = vst [vmem:[#allocation6_spill] sm:$0xff] %v10697_v55  ;;  %13826 = vst [vmem:[#allocation8_spill] sm:$0xff] %v10720_v9 }
  0x1f   : > { %9006 = vmatprep.mubr.msk.f32.mxu1 %vm618_vm2, %v10463_v20  ;;  %v10660_v23 = vsel %vm552_vm1, %v588_v63, %v590_v2  ;;  %v596_v42 = vrot.slane %v10664_v29, 7  ;;  %v598_v50 = vrot.slane %v10669_v31, 7  ;;  %13823 = vst [vmem:[#allocation5_spill] sm:$0xff] %v10692_v54  ;;  %v600_v61 = vrot.slane %v10692_v54, 7  ;;  %v419_v63 = vld [vmem:[%s13687_s1 + $0x28] sm:$0xff] }
  0x20   : > { %8854 = vmatmul.mubr.msk.f32.gmra.mrb[4].mxu0 %vm618_vm2, %v10500_v28  ;;  %v10679_v38 = vsel %vm552_vm1, %v590_v2, %v592_v14  ;;  %3097 = vperm.xlu0 %10300, %v416_v36   ;;  %v10688_v48 = vsel %vm552_vm1, %v592_v14, %v594_v25  ;;  %v602_v2 = vrot.slane %v10697_v55, 7  ;;  %v10725_v14 = vld [vmem:[%s10413_s16 + $0xf0] sm:$0xff]  ;;  %v604_v36 = vrot.slane %v10720_v9, 7 }
  0x21   : > { %8856 = vmatprep.mubr.msk.f32.mxu0 %vm618_vm2, %v10506_v30  ;;  %3326 = vperm.xlu1 %10301, %v449_v44   ;;  %v10707_v58 = vsel %vm552_vm1, %v594_v25, %v596_v42  ;;  %v10716_v0 = vsel %vm552_vm1, %v596_v42, %v598_v50  ;;  %13827 = vst [vmem:[#allocation9_spill] sm:$0xff] %v10725_v14  ;;  %v451_v42 = vld [vmem:[%s13688_s2 + $0x28] sm:$0xff] }
  0x22   : > { %9007 = vmatmul.mubr.msk.f32.gmra.mrb[6].mxu1 %vm618_vm2, %v10486_v26  ;;  %13825 = vst [vmem:[#allocation7_spill] sm:$0xff] %v10716_v0  ;;  %v10735_v25 = vsel %vm552_vm1, %v598_v50, %v600_v61  ;;  %v10744_v44 = vsel %vm552_vm1, %v600_v61, %v602_v2  ;;  %v10753_v50 = vld [vmem:[%s10413_s16 + $0x100] sm:$0xff] }
  0x23   : > { %9009 = vmatprep.mubr.msk.f32.mxu1 %vm618_vm2, %v10493_v27  ;;  %13828 = vst [vmem:[#allocation10_spill] sm:$0xff] %v10735_v25  ;;  %13829 = vst [vmem:[#allocation11_spill] sm:$0xff] %v10744_v44  ;;  %v450_v61 = vld [vmem:[%s13688_s2 + $0x20] sm:$0xff] }
  0x24   : > { %8857 = vmatmul.mubr.msk.f32.gmra.mrb[6].mxu0 %vm618_vm2, %v10529_v35  ;;  %3321 = vperm.xlu0 %10300, %v448_v56   ;;  %v606_v56 = vrot.slane %v10725_v14, 7  ;;  %13831 = vst [vmem:[#allocation13_spill] sm:$0xff] %v10753_v50 }
  0x25   : > { %8859 = vmatprep.mubr.msk.f32.mxu0 %vm618_vm2, %v10535_v37  ;;  %3112 = vperm.xlu1 %10301, %v419_v63   ;;  %v10748_v63 = vld [vmem:[%s10413_s16 + $0xf8] sm:$0xff] }
  0x26   : > { %9010 = vmatmul.mubr.msk.f32.gmra.mrb[8].mxu1 %vm618_vm2, %v10510_v32  ;;  %13830 = vst [vmem:[#allocation12_spill] sm:$0xff] %v10748_v63  ;;  %v608_v7 = vrot.slane %v10748_v63, 7 }
  0x27   : > { %9012 = vmatprep.mubr.msk.f32.mxu1 %vm618_vm2, %v10515_v33 }
  0x28   : > { %8860 = vmatmul.mubr.msk.f32.gmra.mrb[8].mxu0 %vm618_vm2, %v10551_v41  ;;  %3107 = vperm.xlu0 %10300, %v418_v17   ;;  %v10763_v17 = vsel %vm552_vm1, %v602_v2, %v604_v36  ;;  %v10781_v2 = vld [vmem:[%s10413_s16 + $0x110] sm:$0xff] }
  0x29   : > { %8862 = vmatprep.mubr.msk.f32.mxu0 %vm618_vm2, %v10557_v43  ;;  %3336 = vperm.xlu1 %10301, %v451_v42   ;;  %13832 = vst [vmem:[#allocation14_spill] sm:$0xff] %v10763_v17  ;;  %v421_v42 = vld [vmem:[%s13687_s1 + $0x38] sm:$0xff] }
  0x2a   : > { %9013 = vmatmul.mubr.msk.f32.gmra.mrb[10].mxu1 %vm618_vm2, %v10539_v39 }
  0x2b   : > { %9015 = vmatprep.mubr.msk.f32.mxu1 %vm618_vm2, %v10544_v40 }
  0x2c   : > { %8863 = vmatmul.mubr.msk.f32.gmra.mrb[10].mxu0 %vm618_vm2, %v10573_v47  ;;  %3331 = vperm.xlu0 %10300, %v450_v61   ;;  %v10791_v61 = vsel %vm552_vm1, %v606_v56, %v608_v7 }
  0x2d   : > { %8865 = vmatprep.mubr.msk.f32.mxu0 %vm618_vm2, %v10579_v49  ;;  %3122 = vperm.xlu1 %10301, %v421_v42   ;;  %13834 = vst [vmem:[#allocation16_spill] sm:$0xff] %v10791_v61  ;;  %v453_v42 = vld [vmem:[%s13688_s2 + $0x38] sm:$0xff] }
  0x2e   : > { %9016 = vmatmul.mubr.msk.f32.gmra.mrb[12].mxu1 %vm618_vm2, %v10561_v45 }
  0x2f   : > { %9018 = vmatprep.mubr.msk.f32.mxu1 %vm618_vm2, %v10566_v46 }
  0x30   : > { %8866 = vmatmul.mubr.msk.f32.gmra.mrb[12].mxu0 %vm618_vm2, %v10595_v53 }
  0x31   : > { %8868 = vmatprep.mubr.msk.f32.mxu0 %vm618_vm2, %v10604_v57  ;;  %3346 = vperm.xlu1 %10301, %v453_v42   ;;  %v423_v42 = vld [vmem:[%s13687_s1 + $0x48] sm:$0xff] }
  0x32   : > { %9019 = vmatmul.mubr.msk.f32.gmra.mrb[14].mxu1 %vm618_vm2, %v10583_v51 }
  0x33   : > { %9021 = vmatprep.mubr.msk.f32.mxu1 %vm618_vm2, %v10588_v52 }
  0x34   : > { %8869 = vmatmul.mubr.msk.f32.gmra.mrb[14].mxu0 %vm618_vm2, %v10623_v62 }
  0x35   : > { %8871 = vmatprep.mubr.msk.f32.mxu0 %vm618_vm2, %v10632_v1  ;;  %3132 = vperm.xlu1 %10301, %v423_v42   ;;  %v13837_v42 = vrot.slane %v10416_v4, 7 }
  0x36   : > { %9022 = vmatmul.mubr.msk.f32.gmra.mrb[16].mxu1 %vm618_vm2, %v10608_v59 }
  0x37   : > { %9024 = vmatprep.mubr.msk.f32.mxu1 %vm618_vm2, %v10613_v60 }
  0x38   : > { %8872 = vmatmul.mubr.msk.f32.gmra.mrb[16].mxu0 %vm618_vm2, %v10651_v13 }
  0x39   : > { %8874 = vmatprep.mubr.msk.f32.mxu0 %vm618_vm2, %v10660_v23 }
  0x3a   : > { %9025 = vmatmul.mubr.msk.f32.gmra.mrb[18].mxu1 %vm618_vm2, %v10636_v3 }
  0x3b   : > { %9027 = vmatprep.mubr.msk.f32.mxu1 %vm618_vm2, %v10641_v8 }
  0x3c   : > { %8875 = vmatmul.mubr.msk.f32.gmra.mrb[18].mxu0 %vm618_vm2, %v10679_v38 }
  0x3d   : > { %8877 = vmatprep.mubr.msk.f32.mxu0 %vm618_vm2, %v10688_v48 }
  0x3e   : > { %9028 = vmatmul.mubr.msk.f32.gmra.mrb[20].mxu1 %vm618_vm2, %v10664_v29 }
  0x3f   : > { %9030 = vmatprep.mubr.msk.f32.mxu1 %vm618_vm2, %v10669_v31 }
  0x40   : > { %8878 = vmatmul.mubr.msk.f32.gmra.mrb[20].mxu0 %vm618_vm2, %v10707_v58 }
  0x41   : > { %8880 = vmatprep.mubr.msk.f32.mxu0 %vm618_vm2, %v10716_v0 }
  0x42   : > { %9031 = vmatmul.mubr.msk.f32.gmra.mrb[22].mxu1 %vm618_vm2, %v10692_v54  ;;  %v10804_v54 = vld [vmem:[%s10413_s16 + $0x118] sm:$0xff] }
  0x43   : > { %9033 = vmatprep.mubr.msk.f32.mxu1 %vm618_vm2, %v10697_v55  ;;  %v610_v55 = vrot.slane %v10753_v50, 7 }
  0x44   : > { %8881 = vmatmul.mubr.msk.f32.gmra.mrb[22].mxu0 %vm618_vm2, %v10735_v25  ;;  %v10772_v25 = vsel %vm552_vm1, %v604_v36, %v606_v56  ;;  %v420_v36 = vld [vmem:[%s13687_s1 + $0x30] sm:$0xff]  ;;  %v478_v56 = vld [vmem:[%s10413_s16 + $0x8] sm:$0xff] }
  0x45   : > { %8883 = vmatprep.mubr.msk.f32.mxu0 %vm618_vm2, %v10744_v44  ;;  %13833 = vst [vmem:[#allocation15_spill] sm:$0xff] %v10772_v25  ;;  %v10776_v44 = vld [vmem:[%s10413_s16 + $0x108] sm:$0xff]  ;;  %3117 = vperm.xlu0 %10300, %v420_v36   ;;  %v452_v36 = vld [vmem:[%s13688_s2 + $0x30] sm:$0xff] }
  0x46   : > { %9034 = vmatmul.mubr.msk.f32.gmra.mrb[24].mxu1 %vm618_vm2, %v10720_v9  ;;  %v612_v9 = vrot.slane %v10776_v44, 7 }
  0x47   : > { %9036 = vmatprep.mubr.msk.f32.mxu1 %vm618_vm2, %v10725_v14  ;;  %v614_v14 = vrot.slane %v10781_v2, 7 }
  0x48   : > { %8884 = vmatmul.mubr.msk.f32.gmra.mrb[24].mxu0 %vm618_vm2, %v10763_v17  ;;  %v10800_v17 = vsel %vm552_vm1, %v608_v7, %v610_v55  ;;  %v10820_v7 = vsel %vm552_vm1, %v610_v55, %v612_v9  ;;  %v422_v55 = vld [vmem:[%s13687_s1 + $0x40] sm:$0xff] }
  0x49   : > { %8886 = vmatprep.mubr.msk.f32.mxu0 %vm618_vm2, %v10772_v25  ;;  %v10810_v25 = vld [vmem:[%s10413_s16 + $0x10] sm:$0xff]  ;;  %3341 = vperm.xlu0 %10300, %v452_v36  }
  0x4a   : > { %9037 = vmatmul.mubr.msk.f32.gmra.mrb[26].mxu1 %vm618_vm2, %v10748_v63  ;;  %13835 = vst [vmem:[#allocation17_spill] sm:$0xff] %v10810_v25  ;;  %v13724_v63 = vrot.slane %v10804_v54, 7  ;;  %v915_v0 = vrot.slane %v10810_v25, 7 }
  0x4b   : > { %9039 = vmatprep.mubr.msk.f32.mxu1 %vm618_vm2, %v10753_v50  ;;  %v914_v50 = vrot.slane %v478_v56, 7  ;;  %v455_v56 = vld [vmem:[%s13688_s2 + $0x48] sm:$0xff] }
  0x4c   : > { %8887 = vmatmul.mubr.msk.f32.gmra.mrb[26].mxu0 %vm618_vm2, %v10791_v61  ;;  %v10829_v61 = vsel %vm552_vm1, %v612_v9, %v614_v14  ;;  %v10844_v9 = vsel %vm552_vm1, %v614_v14, %v13724_v63  ;;  %3356 = vperm.xlu1 %10301, %v455_v56   ;;  %v454_v14 = vld [vmem:[%s13688_s2 + $0x40] sm:$0xff]  ;;  %v10873_v56 = vld [vmem:[%s13689_s3 + $0x14] sm:$0x7] }
  0x4d   : > { %8889 = vmatprep.mubr.msk.f32.mxu0 %vm618_vm2, %v10800_v17  ;;  %13836 = vst [vmem:[#allocation18_spill] sm:$0xff] %v10844_v9  ;;  %3127 = vperm.xlu0 %10300, %v422_v55   ;;  %v916_v36 = vsel %vm552_vm1, %v914_v50, %v915_v0  ;;  %v917_v55 = vsel %vm552_vm1, %v915_v0, %v13837_v42  ;;  %v425_v50 = vld [vmem:[%s13687_s1 + $0x58] sm:$0xff]  ;;  %v424_v0 = vld [vmem:[%s13687_s1 + $0x50] sm:$0xff]  ;;  %v13846_v63 = vld [vmem:[#allocation15_spill] sm:$0xff] }
  0x4e   : > { %9040 = vmatmul.mubr.msk.f32.gmra.mrb[28].mxu1 %vm618_vm2, %v10776_v44  ;;  %v428_v42 = vld [vmem:[%s13687_s1 + $0x70] sm:$0xff] }
  0x4f   : > { %9042 = vmatprep.mubr.msk.f32.mxu1 %vm618_vm2, %v10781_v2 }
  0x50   : > { %8890 = vmatmul.mubr.msk.f32.gmra.mrb[28].mxu0 %vm618_vm2, %v10820_v7  ;;  %3142 = vperm.xlu1 %10301, %v425_v50   ;;  %v460_v50 = vld [vmem:[%s13688_s2 + $0x70] sm:$0xff] }
  0x51   : > { %8892 = vmatprep.mubr.msk.f32.mxu0 %vm618_vm2, %v10829_v61  ;;  %3351 = vperm.xlu0 %10300, %v454_v14   ;;  %v429_v14 = vld [vmem:[%s13687_s1 + $0x78] sm:$0xff] }
  0x52   : > { %9043 = vmatmul.mubr.msk.f32.gmra.mrb[30].mxu1 %vm618_vm2, %v10804_v54 }
  0x53   : > { %9047 = vmatprep.mubr.msk.f32.mxu1 %vm618_vm2, %v10810_v25  ;;  %v439_v25 = vld [vmem:[%s13687_s1 + $0xc8] sm:$0xff] }
  0x54   : > { %8893 = vmatmul.mubr.msk.f32.gmra.mrb[30].mxu0 %vm618_vm2, %v10844_v9  ;;  %v13847_v9 = vld [vmem:[#allocation12_spill] sm:$0xff] }
  0x55   : > { %8897 = vmatprep.mubr.msk.f32.mxu0 %vm618_vm2, %v916_v36  ;;  %3137 = vperm.xlu0 %10300, %v424_v0   ;;  %v458_v36 = vld [vmem:[%s13688_s2 + $0x60] sm:$0xff]  ;;  %v431_v0 = vld [vmem:[%s13687_s1 + $0x88] sm:$0xff] }
  0x56   : > { %9048 = vmatmul.mubr.msk.f32.vlgmr.msra.gmra.mrb[0].mxu1 %vm618_vm2, %v10416_v4  ;;  %v457_v4 = vld [vmem:[%s13688_s2 + $0x58] sm:$0xff] }
  0x57   : > { %9050 = vmatprep.mubr.msk.f32.mxu1 %vm618_vm2, %v10419_v5  ;;  %9096 = vmatpush3.msk.msra.mxu1 %vm683_vm0, %v10520_v34  ;;  %v459_v34 = vld [vmem:[%s13688_s2 + $0x68] sm:$0xff] }
  0x58   : > { %8898 = vmatmul.mubr.msk.f32.vlgmr.msra.gmra.mrb[0].mxu0 %vm618_vm2, %v917_v55  ;;  %3366 = vperm.xlu1 %10301, %v457_v4   ;;  %v461_v55 = vld [vmem:[%s13688_s2 + $0x78] sm:$0xff]  ;;  %v430_v4 = vld [vmem:[%s13687_s1 + $0x80] sm:$0xff]  ;;  %v471_v5 = vld [vmem:[%s13688_s2 + $0xc8] sm:$0xff] }
  0x59   : > { %8946 = vmatpush3.msk.msra.mxu0 %vm683_vm0, %v10468_v21  ;;  %8900 = vmatprep.mubr.msk.f32.mxu0 %vm618_vm2, %v10445_v15  ;;  %v456_v15 = vld [vmem:[%s13688_s2 + $0x50] sm:$0xff]  ;;  %v427_v21 = vld [vmem:[%s13687_s1 + $0x68] sm:$0xff] }
  0x5a   : > { %9051 = vmatmul.mubr.msk.f32.gmra.mrb[2].mxu1 %vm618_vm2, %v10422_v6  ;;  %9145 = vmatprep.subr.msk.mxu0 %vm683_vm0, %v10873_v56  ;;  %v13848_v6 = vld [vmem:[#allocation13_spill] sm:$0xff] }
  0x5b   : > { %9053 = vmatprep.mubr.msk.f32.mxu1 %vm618_vm2, %v10430_v10  ;;  %3361 = vperm.xlu0 %10300, %v456_v15   ;;  %v463_v15 = vld [vmem:[%s13688_s2 + $0x88] sm:$0xff] }
  0x5c   : > { %8901 = vmatmul.mubr.msk.f32.gmra.mrb[2].mxu0 %vm618_vm2, %v10448_v16  ;;  %3152 = vperm.xlu1 %10301, %v427_v21   ;;  %v426_v16 = vld [vmem:[%s13687_s1 + $0x60] sm:$0xff] }
  0x5d   : > { %8903 = vmatprep.mubr.msk.f32.mxu0 %vm618_vm2, %v10460_v19  ;;  %v462_v21 = vld [vmem:[%s13688_s2 + $0x80] sm:$0xff] }
  0x5e   : > { %9054 = vmatmul.mubr.msk.f32.gmra.mrb[4].mxu1 %vm618_vm2, %v10433_v11 }
  0x5f   : > { %9056 = vmatprep.mubr.msk.f32.mxu1 %vm618_vm2, %v10436_v12  ;;  %3147 = vperm.xlu0 %10300, %v426_v16   ;;  %v433_v16 = vld [vmem:[%s13687_s1 + $0x98] sm:$0xff] }
  0x60   : > { %8904 = vmatmul.mubr.msk.f32.gmra.mrb[4].mxu0 %vm618_vm2, %v10476_v22  ;;  %3376 = vperm.xlu1 %10301, %v459_v34   ;;  %v432_v34 = vld [vmem:[%s13687_s1 + $0x90] sm:$0xff] }
  0x61   : > { %8906 = vmatprep.mubr.msk.f32.mxu0 %vm618_vm2, %v10482_v24 }
  0x62   : > { %9057 = vmatmul.mubr.msk.f32.gmra.mrb[6].mxu1 %vm618_vm2, %v10454_v18 }
  0x63   : > { %9059 = vmatprep.mubr.msk.f32.mxu1 %vm618_vm2, %v10463_v20  ;;  %3371 = vperm.xlu0 %10300, %v458_v36   ;;  %v465_v36 = vld [vmem:[%s13688_s2 + $0x98] sm:$0xff] }
  0x64   : > { %8907 = vmatmul.mubr.msk.f32.gmra.mrb[6].mxu0 %vm618_vm2, %v10500_v28  ;;  %3162 = vperm.xlu1 %10301, %v429_v14   ;;  %v464_v14 = vld [vmem:[%s13688_s2 + $0x90] sm:$0xff] }
  0x65   : > { %8909 = vmatprep.mubr.msk.f32.mxu0 %vm618_vm2, %v10506_v30 }
  0x66   : > { %9060 = vmatmul.mubr.msk.f32.gmra.mrb[8].mxu1 %vm618_vm2, %v10486_v26 }
  0x67   : > { %9062 = vmatprep.mubr.msk.f32.mxu1 %vm618_vm2, %v10493_v27  ;;  %3157 = vperm.xlu0 %10300, %v428_v42   ;;  %v435_v42 = vld [vmem:[%s13687_s1 + $0xa8] sm:$0xff] }
  0x68   : > { %8910 = vmatmul.mubr.msk.f32.gmra.mrb[8].mxu0 %vm618_vm2, %v10529_v35  ;;  %3386 = vperm.xlu1 %10301, %v461_v55   ;;  %v434_v55 = vld [vmem:[%s13687_s1 + $0xa0] sm:$0xff] }
  0x69   : > { %8912 = vmatprep.mubr.msk.f32.mxu0 %vm618_vm2, %v10535_v37 }
  0x6a   : > { %9063 = vmatmul.mubr.msk.f32.gmra.mrb[10].mxu1 %vm618_vm2, %v10510_v32 }
  0x6b   : > { %9065 = vmatprep.mubr.msk.f32.mxu1 %vm618_vm2, %v10515_v33  ;;  %3381 = vperm.xlu0 %10300, %v460_v50   ;;  %v467_v50 = vld [vmem:[%s13688_s2 + $0xa8] sm:$0xff] }
  0x6c   : > { %8913 = vmatmul.mubr.msk.f32.gmra.mrb[10].mxu0 %vm618_vm2, %v10551_v41  ;;  %3172 = vperm.xlu1 %10301, %v431_v0   ;;  %v466_v0 = vld [vmem:[%s13688_s2 + $0xa0] sm:$0xff] }
  0x6d   : > { %8915 = vmatprep.mubr.msk.f32.mxu0 %vm618_vm2, %v10557_v43 }
  0x6e   : > { %9066 = vmatmul.mubr.msk.f32.gmra.mrb[12].mxu1 %vm618_vm2, %v10539_v39 }
  0x6f   : > { %9068 = vmatprep.mubr.msk.f32.mxu1 %vm618_vm2, %v10544_v40  ;;  %3167 = vperm.xlu0 %10300, %v430_v4   ;;  %v13838_v4 = vld [vmem:[#allocation7_spill] sm:$0xff] }
  0x70   : > { %8916 = vmatmul.mubr.msk.f32.gmra.mrb[12].mxu0 %vm618_vm2, %v10573_v47  ;;  %3396 = vperm.xlu1 %10301, %v463_v15   ;;  %v437_v15 = vld [vmem:[%s13687_s1 + $0xb8] sm:$0xff] }
  0x71   : > { %8918 = vmatprep.mubr.msk.f32.mxu0 %vm618_vm2, %v10579_v49 }
  0x72   : > { %9069 = vmatmul.mubr.msk.f32.gmra.mrb[14].mxu1 %vm618_vm2, %v10561_v45 }
  0x73   : > { %9071 = vmatprep.mubr.msk.f32.mxu1 %vm618_vm2, %v10566_v46  ;;  %3391 = vperm.xlu0 %10300, %v462_v21   ;;  %v13839_v21 = vld [vmem:[#allocation5_spill] sm:$0xff] }
  0x74   : > { %8919 = vmatmul.mubr.msk.f32.gmra.mrb[14].mxu0 %vm618_vm2, %v10595_v53  ;;  %3182 = vperm.xlu1 %10301, %v433_v16   ;;  %v13840_v16 = vld [vmem:[#allocation6_spill] sm:$0xff] }
  0x75   : > { %8921 = vmatprep.mubr.msk.f32.mxu0 %vm618_vm2, %v10604_v57 }
  0x76   : > { %9072 = vmatmul.mubr.msk.f32.gmra.mrb[16].mxu1 %vm618_vm2, %v10583_v51 }
  0x77   : > { %9074 = vmatprep.mubr.msk.f32.mxu1 %vm618_vm2, %v10588_v52  ;;  %3177 = vperm.xlu0 %10300, %v432_v34   ;;  %v13841_v34 = vld [vmem:[#allocation10_spill] sm:$0xff] }
  0x78   : > { %8922 = vmatmul.mubr.msk.f32.gmra.mrb[16].mxu0 %vm618_vm2, %v10623_v62  ;;  %3406 = vperm.xlu1 %10301, %v465_v36   ;;  %v436_v36 = vld [vmem:[%s13687_s1 + $0xb0] sm:$0xff] }
  0x79   : > { %8924 = vmatprep.mubr.msk.f32.mxu0 %vm618_vm2, %v10632_v1 }
  0x7a   : > { %9075 = vmatmul.mubr.msk.f32.gmra.mrb[18].mxu1 %vm618_vm2, %v10608_v59 }
  0x7b   : > { %9077 = vmatprep.mubr.msk.f32.mxu1 %vm618_vm2, %v10613_v60  ;;  %3401 = vperm.xlu0 %10300, %v464_v14   ;;  %v13842_v14 = vld [vmem:[#allocation11_spill] sm:$0xff] }
  0x7c   : > { %8925 = vmatmul.mubr.msk.f32.gmra.mrb[18].mxu0 %vm618_vm2, %v10651_v13  ;;  %3192 = vperm.xlu1 %10301, %v435_v42   ;;  %v469_v42 = vld [vmem:[%s13688_s2 + $0xb8] sm:$0xff] }
  0x7d   : > { %8927 = vmatprep.mubr.msk.f32.mxu0 %vm618_vm2, %v10660_v23 }
  0x7e   : > { %9078 = vmatmul.mubr.msk.f32.gmra.mrb[20].mxu1 %vm618_vm2, %v10636_v3 }
  0x7f   : > { %9080 = vmatprep.mubr.msk.f32.mxu1 %vm618_vm2, %v10641_v8  ;;  %3187 = vperm.xlu0 %10300, %v434_v55   ;;  %v13843_v55 = vld [vmem:[#allocation8_spill] sm:$0xff] }
  0x80   : > { %8928 = vmatmul.mubr.msk.f32.gmra.mrb[20].mxu0 %vm618_vm2, %v10679_v38  ;;  %3416 = vperm.xlu1 %10301, %v467_v50   ;;  %v13844_v50 = vld [vmem:[#allocation9_spill] sm:$0xff] }
  0x81   : > { %8930 = vmatprep.mubr.msk.f32.mxu0 %vm618_vm2, %v10688_v48 }
  0x82   : > { %9081 = vmatmul.mubr.msk.f32.gmra.mrb[22].mxu1 %vm618_vm2, %v10664_v29 }
  0x83   : > { %9083 = vmatprep.mubr.msk.f32.mxu1 %vm618_vm2, %v10669_v31  ;;  %3411 = vperm.xlu0 %10300, %v466_v0   ;;  %v13845_v0 = vld [vmem:[#allocation14_spill] sm:$0xff] }
  0x84   : > { %8931 = vmatmul.mubr.msk.f32.gmra.mrb[22].mxu0 %vm618_vm2, %v10707_v58  ;;  %3202 = vperm.xlu1 %10301, %v437_v15   ;;  %v468_v15 = vld [vmem:[%s13688_s2 + $0xb0] sm:$0xff] }
  0x85   : > { %8933 = vmatprep.mubr.msk.f32.mxu0 %vm618_vm2, %v13838_v4 }
  0x86   : > { %9084 = vmatmul.mubr.msk.f32.gmra.mrb[24].mxu1 %vm618_vm2, %v13839_v21 }
  0x87   : > { %9086 = vmatprep.mubr.msk.f32.mxu1 %vm618_vm2, %v13840_v16  ;;  %3197 = vperm.xlu0 %10300, %v436_v36   ;;  %v13849_v36 = vld [vmem:[#allocation16_spill] sm:$0xff] }
  0x88   : > { %8934 = vmatmul.mubr.msk.f32.gmra.mrb[24].mxu0 %vm618_vm2, %v13841_v34  ;;  %3426 = vperm.xlu1 %10301, %v469_v42   ;;  %v438_v42 = vld [vmem:[%s13687_s1 + $0xc0] sm:$0xff] }
  0x89   : > { %8936 = vmatprep.mubr.msk.f32.mxu0 %vm618_vm2, %v13842_v14 }
  0x8a   : > { %9087 = vmatmul.mubr.msk.f32.gmra.mrb[26].mxu1 %vm618_vm2, %v13843_v55 }
  0x8b   : > { %9089 = vmatprep.mubr.msk.f32.mxu1 %vm618_vm2, %v13844_v50  ;;  %3421 = vperm.xlu0 %10300, %v468_v15   ;;  %v441_v15 = vld [vmem:[%s13687_s1 + $0xd8] sm:$0xff] }
  0x8c   : > { %8937 = vmatmul.mubr.msk.f32.gmra.mrb[26].mxu0 %vm618_vm2, %v13845_v0  ;;  %3212 = vperm.xlu1 %10301, %v439_v25   ;;  %v470_v25 = vld [vmem:[%s13688_s2 + $0xc0] sm:$0xff] }
  0x8d   : > { %8939 = vmatprep.mubr.msk.f32.mxu0 %vm618_vm2, %v13846_v63 }
  0x8e   : > { %9090 = vmatmul.mubr.msk.f32.gmra.mrb[28].mxu1 %vm618_vm2, %v13847_v9 }
  0x8f   : > { %9092 = vmatprep.mubr.msk.f32.mxu1 %vm618_vm2, %v13848_v6  ;;  %3207 = vperm.xlu0 %10300, %v438_v42   ;;  %v473_v42 = vld [vmem:[%s13688_s2 + $0xd8] sm:$0xff] }
  0x90   : > { %8940 = vmatmul.mubr.msk.f32.gmra.mrb[28].mxu0 %vm618_vm2, %v13849_v36  ;;  %3436 = vperm.xlu1 %10301, %v471_v5   ;;  %v11107_v5 = vld [vmem:[%s13689_s3 + $0x8] sm:$0x7] }
  0x91   : > { %8942 = vmatprep.mubr.msk.f32.mxu0 %vm618_vm2, %v10800_v17 }
  0x92   : > { %9093 = vmatmul.mubr.msk.f32.gmra.mrb[30].mxu1 %vm618_vm2, %v10776_v44 }
  0x93   : > { %9097 = vmatprep.mubr.msk.f32.mxu1 %vm618_vm2, %v10430_v10  ;;  %3431 = vperm.xlu0 %10300, %v470_v25   ;;  %v2238_v25 = vrot.slane %v10510_v32, 1 }
  0x94   : > { %8943 = vmatmul.mubr.msk.f32.gmra.mrb[30].mxu0 %vm618_vm2, %v10820_v7  ;;  %3222 = vperm.xlu1 %10301, %v441_v15   ;;  %v2240_v15 = vrot.slane %v10515_v33, 1 }
  0x95   : > { %8947 = vmatprep.mubr.msk.f32.mxu0 %vm618_vm2, %v10460_v19  ;;  %v440_v19 = vld [vmem:[%s13687_s1 + $0xd0] sm:$0xff] }
  0x96   : > { %9098 = vmatmul.mubr.msk.f32.vlgmr.msra.gmra.mrb[0].mxu1 %vm618_vm2, %v10433_v11 }
  0x97   : > { %9100 = vmatprep.mubr.msk.f32.mxu1 %vm618_vm2, %v10436_v12  ;;  %3217 = vperm.xlu0 %10300, %v440_v19   ;;  %v2244_v19 = vrot.slane %v10544_v40, 1 }
  0x98   : > { %8948 = vmatmul.mubr.msk.f32.vlgmr.msra.gmra.mrb[0].mxu0 %vm618_vm2, %v10476_v22  ;;  %3446 = vperm.xlu1 %10301, %v473_v42   ;;  %v472_v22 = vld [vmem:[%s13688_s2 + $0xd0] sm:$0xff] }
  0x99   : > { %9146 = vmatpush3.msk.msra.mxu0 %vm683_vm0, %v10873_v56  ;;  %8950 = vmatprep.mubr.msk.f32.mxu0 %vm618_vm2, %v10482_v24  ;;  %v443_v24 = vld [vmem:[%s13687_s1 + $0xe8] sm:$0xff] }
  0x9a   : > { %9101 = vmatmul.mubr.msk.f32.gmra.mrb[2].mxu1 %vm618_vm2, %v10454_v18  ;;  %9195 = vmatprep.subr.msk.mxu0 %vm683_vm0, %v11107_v5 }
  0x9b   : > { %9103 = vmatprep.mubr.msk.f32.mxu1 %vm618_vm2, %v10463_v20  ;;  %3441 = vperm.xlu0 %10300, %v472_v22   ;;  %v2248_v22 = vrot.slane %v10566_v46, 1 }
  0x9c   : > { %8951 = vmatmul.mubr.msk.f32.gmra.mrb[2].mxu0 %vm618_vm2, %v10500_v28  ;;  %3232 = vperm.xlu1 %10301, %v443_v24   ;;  %v442_v28 = vld [vmem:[%s13687_s1 + $0xe0] sm:$0xff] }
  0x9d   : > { %8953 = vmatprep.mubr.msk.f32.mxu0 %vm618_vm2, %v10506_v30  ;;  %v475_v30 = vld [vmem:[%s13688_s2 + $0xe8] sm:$0xff] }
  0x9e   : > { %9104 = vmatmul.mubr.msk.f32.gmra.mrb[4].mxu1 %vm618_vm2, %v10486_v26 }
  0x9f   : > { %9106 = vmatprep.mubr.msk.f32.mxu1 %vm618_vm2, %v10493_v27  ;;  %3227 = vperm.xlu0 %10300, %v442_v28  }
  0xa0   : > { %8954 = vmatmul.mubr.msk.f32.gmra.mrb[4].mxu0 %vm618_vm2, %v10529_v35  ;;  %3456 = vperm.xlu1 %10301, %v475_v30   ;;  %v474_v35 = vld [vmem:[%s13688_s2 + $0xe0] sm:$0xff] }
  0xa1   : > { %8956 = vmatprep.mubr.msk.f32.mxu0 %vm618_vm2, %v10535_v37  ;;  %v445_v37 = vld [vmem:[%s13687_s1 + $0xf8] sm:$0xff] }
  0xa2   : > { %9107 = vmatmul.mubr.msk.f32.gmra.mrb[6].mxu1 %vm618_vm2, %v10510_v32  ;;  %v11339_v32 = vsel %vm2220_vm3, %v2238_v25, %v2240_v15 }
  0xa3   : > { %9109 = vmatprep.mubr.msk.f32.mxu1 %vm618_vm2, %v10515_v33  ;;  %3451 = vperm.xlu0 %10300, %v474_v35   ;;  %v2246_v33 = vrot.slane %v10561_v45, 1  ;;  %v2254_v35 = vrot.slane %v10608_v59, 1 }
  0xa4   : > { %8957 = vmatmul.mubr.msk.f32.gmra.mrb[6].mxu0 %vm618_vm2, %v10551_v41  ;;  %3242 = vperm.xlu1 %10301, %v445_v37   ;;  %v444_v41 = vld [vmem:[%s13687_s1 + $0xf0] sm:$0xff] }
  0xa5   : > { %8959 = vmatprep.mubr.msk.f32.mxu0 %vm618_vm2, %v10557_v43  ;;  %v11237_v43 = vld [vmem:[%s10413_s16 + $0x120] sm:$0xff]  ;;  %v11355_v24 = vsel %vm2220_vm3, %v2244_v19, %v2246_v33  ;;  %v11366_v28 = vsel %vm2220_vm3, %v2246_v33, %v2248_v22  ;;  %v2280_v33 = vrot.slane %v10781_v2, 1 }
  0xa6   : > { %9110 = vmatmul.mubr.msk.f32.gmra.mrb[8].mxu1 %vm618_vm2, %v10539_v39 }
  0xa7   : > { %9112 = vmatprep.mubr.msk.f32.mxu1 %vm618_vm2, %v10544_v40  ;;  %3237 = vperm.xlu0 %10300, %v444_v41   ;;  %v2250_v40 = vrot.slane %v10583_v51, 1  ;;  %v11384_v41 = vpop.permute.xlu1 %3311 }
  0xa8   : > { %8960 = vmatmul.mubr.msk.f32.gmra.mrb[8].mxu0 %vm618_vm2, %v10573_v47  ;;  %v1154_v47 = vrot.slane %v11237_v43, 7  ;;  %13854 = vst [vmem:[#allocation7_spill] sm:$0xff] %v11384_v41 }
  0xa9   : > { %8962 = vmatprep.mubr.msk.f32.mxu0 %vm618_vm2, %v10579_v49  ;;  %v11247_v49 = vld [vmem:[%s10413_s16 + $0x128] sm:$0xff]  ;;  %v11373_v30 = vsel %vm2220_vm3, %v2248_v22, %v2250_v40 }
  0xaa   : > { %9113 = vmatmul.mubr.msk.f32.gmra.mrb[10].mxu1 %vm618_vm2, %v10561_v45  ;;  %v476_v45 = vld [vmem:[%s13688_s2 + $0xf0] sm:$0xff] }
  0xab   : > { %9115 = vmatprep.mubr.msk.f32.mxu1 %vm618_vm2, %v10566_v46  ;;  %v2252_v46 = vrot.slane %v10588_v52, 1  ;;  %3461 = vperm.xlu0 %10300, %v476_v45  }
  0xac   : > { %8963 = vmatmul.mubr.msk.f32.gmra.mrb[10].mxu0 %vm618_vm2, %v10595_v53  ;;  %v1156_v53 = vrot.slane %v11247_v49, 7 }
  0xad   : > { %8965 = vmatprep.mubr.msk.f32.mxu0 %vm618_vm2, %v10604_v57  ;;  %v13850_v57 = vrot.slane %v10804_v54, 7  ;;  %v11381_v37 = vsel %vm2220_vm3, %v2250_v40, %v2252_v46  ;;  %v2282_v40 = vrot.slane %v10804_v54, 1 }
  0xae   : > { %9116 = vmatmul.mubr.msk.f32.gmra.mrb[12].mxu1 %vm618_vm2, %v10583_v51  ;;  %v477_v51 = vld [vmem:[%s13688_s2 + $0xf8] sm:$0xff] }
  0xaf   : > { %9118 = vmatprep.mubr.msk.f32.mxu1 %vm618_vm2, %v10588_v52  ;;  %3466 = vperm.xlu1 %10301, %v477_v51   ;;  %v2256_v52 = vrot.slane %v10613_v60, 1  ;;  %v13864_v51 = vld [vmem:[#allocation17_spill] sm:$0xff] }
  0xb0   : > { %8966 = vmatmul.mubr.msk.f32.gmra.mrb[12].mxu0 %vm618_vm2, %v10623_v62  ;;  %v1155_v62 = vsel %vm552_vm1, %v13850_v57, %v1154_v47 }
  0xb1   : > { %8968 = vmatprep.mubr.msk.f32.mxu0 %vm618_vm2, %v10632_v1  ;;  %v13851_v1 = vld [vmem:[#allocation3_spill] sm:$0xff]  ;;  %v11397_v57 = vsel %vm2220_vm3, %v2254_v35, %v2256_v52 }
  0xb2   : > { %9119 = vmatmul.mubr.msk.f32.gmra.mrb[14].mxu1 %vm618_vm2, %v10608_v59  ;;  %v11390_v59 = vpop.permute.xlu0 %3087 }
  0xb3   : > { %9121 = vmatprep.mubr.msk.f32.mxu1 %vm618_vm2, %v10613_v60  ;;  %13855 = vst [vmem:[#allocation5_spill] sm:$0xff] %v11390_v59  ;;  %v2260_v60 = vrot.slane %v10641_v8, 1 }
  0xb4   : > { %8969 = vmatmul.mubr.msk.f32.gmra.mrb[14].mxu0 %vm618_vm2, %v10651_v13  ;;  %v2221_v13 = vrot.slane %v13851_v1, 1 }
  0xb5   : > { %8971 = vmatprep.mubr.msk.f32.mxu0 %vm618_vm2, %v10660_v23  ;;  %v13852_v23 = vld [vmem:[#allocation4_spill] sm:$0xff] }
  0xb6   : > { %9122 = vmatmul.mubr.msk.f32.gmra.mrb[16].mxu1 %vm618_vm2, %v10636_v3 }
  0xb7   : > { %9124 = vmatprep.mubr.msk.f32.mxu1 %vm618_vm2, %v10641_v8  ;;  %v2264_v8 = vrot.slane %v10669_v31, 1 }
  0xb8   : > { %8972 = vmatmul.mubr.msk.f32.gmra.mrb[16].mxu0 %vm618_vm2, %v10679_v38  ;;  %v2222_v38 = vrot.slane %v13852_v23, 1  ;;  %v2262_v23 = vrot.slane %v10664_v29, 1 }
  0xb9   : > { %8974 = vmatprep.mubr.msk.f32.mxu0 %vm618_vm2, %v10688_v48  ;;  %v13853_v48 = vld [vmem:[#allocation18_spill] sm:$0xff] }
  0xba   : > { %9125 = vmatmul.mubr.msk.f32.gmra.mrb[18].mxu1 %vm618_vm2, %v10664_v29  ;;  %v2266_v29 = vrot.slane %v13839_v21, 1 }
  0xbb   : > { %9127 = vmatprep.mubr.msk.f32.mxu1 %vm618_vm2, %v10669_v31 }
  0xbc   : > { %8975 = vmatmul.mubr.msk.f32.gmra.mrb[18].mxu0 %vm618_vm2, %v10707_v58  ;;  %v1157_v58 = vsel %vm552_vm1, %v1154_v47, %v1156_v53  ;;  %v11387_v47 = vsel %vm2220_vm3, %v2252_v46, %v2254_v35  ;;  %v2258_v53 = vrot.slane %v10636_v3, 1  ;;  %v11408_v3 = vpop.permute.xlu0 %3092  ;;  %v11431_v31 = vsel %vm2220_vm3, %v2264_v8, %v2266_v29 }
  0xbd   : > { %8977 = vmatprep.mubr.msk.f32.mxu0 %vm618_vm2, %v13838_v4  ;;  %v2230_v4 = vrot.slane %v10454_v18, 1  ;;  %13857 = vst [vmem:[#allocation10_spill] sm:$0xff] %v11408_v3  ;;  %v11489_v46 = vsel %vm2220_vm3, %v2280_v33, %v2282_v40  ;;  %v2578_v35 = vrot.slane %v13864_v51, 1 }
  0xbe   : > { %9128 = vmatmul.mubr.msk.f32.gmra.mrb[20].mxu1 %vm618_vm2, %v13839_v21 }
  0xbf   : > { %9130 = vmatprep.mubr.msk.f32.mxu1 %vm618_vm2, %v13840_v16 }
  0xc0   : > { %8978 = vmatmul.mubr.msk.f32.gmra.mrb[20].mxu0 %vm618_vm2, %v13841_v34  ;;  %v11292_v34 = vld [vmem:[%s13689_s3 + $0x20] sm:$0x7] }
  0xc1   : > { %8980 = vmatprep.mubr.msk.f32.mxu0 %vm618_vm2, %v13842_v14  ;;  %v2234_v14 = vrot.slane %v10486_v26, 1 }
  0xc2   : > { %9131 = vmatmul.mubr.msk.f32.gmra.mrb[22].mxu1 %vm618_vm2, %v13843_v55 }
  0xc3   : > { %9133 = vmatprep.mubr.msk.f32.mxu1 %vm618_vm2, %v13844_v50 }
  0xc4   : > { %8981 = vmatmul.mubr.msk.f32.gmra.mrb[22].mxu0 %vm618_vm2, %v13845_v0 }
  0xc5   : > { %8983 = vmatprep.mubr.msk.f32.mxu0 %vm618_vm2, %v13846_v63  ;;  %v2224_v63 = vrot.slane %v10430_v10, 1  ;;  %v2228_v10 = vrot.slane %v10436_v12, 1  ;;  %v2232_v12 = vrot.slane %v10463_v20, 1 }
  0xc6   : > { %9134 = vmatmul.mubr.msk.f32.gmra.mrb[24].mxu1 %vm618_vm2, %v13847_v9 }
  0xc7   : > { %9136 = vmatprep.mubr.msk.f32.mxu1 %vm618_vm2, %v13848_v6  ;;  %v11305_v18 = vsel %vm2220_vm3, %v2228_v10, %v2230_v4  ;;  %v11315_v0 = vsel %vm2220_vm3, %v2230_v4, %v2232_v12  ;;  %v11319_v20 = vsel %vm2220_vm3, %v2232_v12, %v2234_v14  ;;  %v2270_v4 = vrot.slane %v13843_v55, 1  ;;  %v11434_v12 = vpop.permute.xlu0 %3097 }
  0xc8   : > { %8984 = vmatmul.mubr.msk.f32.gmra.mrb[24].mxu0 %vm618_vm2, %v13849_v36  ;;  %v2236_v36 = vrot.slane %v10493_v27, 1  ;;  %v2242_v27 = vrot.slane %v10539_v39, 1  ;;  %13859 = vst [vmem:[#allocation8_spill] sm:$0xff] %v11434_v12 }
  0xc9   : > { %8986 = vmatprep.mubr.msk.f32.mxu0 %vm618_vm2, %v10800_v17  ;;  %v11275_v17 = vsel %vm2220_vm3, %v2221_v13, %v2222_v38 }
  0xca   : > { %9137 = vmatmul.mubr.msk.f32.gmra.mrb[26].mxu1 %vm618_vm2, %v10776_v44  ;;  %v11327_v26 = vsel %vm2220_vm3, %v2234_v14, %v2236_v36  ;;  %v11343_v42 = vsel %vm2220_vm3, %v2240_v15, %v2242_v27  ;;  %v11351_v39 = vsel %vm2220_vm3, %v2242_v27, %v2244_v19 }
  0xcb   : > { %9139 = vmatprep.mubr.msk.f32.mxu1 %vm618_vm2, %v10781_v2  ;;  %v11452_v55 = vpop.permute.xlu0 %3321  ;;  %v13730_v2 = vrot.slane %v11237_v43, 1 }
  0xcc   : > { %8987 = vmatmul.mubr.msk.f32.gmra.mrb[26].mxu0 %vm618_vm2, %v10820_v7  ;;  %v11282_v7 = vsel %vm2220_vm3, %v2222_v38, %v2224_v63  ;;  %v11404_v38 = vpop.permute.xlu1 %3316  ;;  %13861 = vst [vmem:[#allocation14_spill] sm:$0xff] %v11452_v55 }
  0xcd   : > { %8989 = vmatprep.mubr.msk.f32.mxu0 %vm618_vm2, %v10829_v61  ;;  %v2226_v61 = vrot.slane %v10433_v11, 1  ;;  %13856 = vst [vmem:[#allocation6_spill] sm:$0xff] %v11404_v38 }
  0xce   : > { %9140 = vmatmul.mubr.msk.f32.gmra.mrb[28].mxu1 %vm618_vm2, %v10804_v54 }
  0xcf   : > { %9142 = vmatprep.mubr.msk.f32.mxu1 %vm618_vm2, %v11237_v43  ;;  %v11286_v56 = vsel %vm2220_vm3, %v2224_v63, %v2226_v61  ;;  %v11301_v11 = vsel %vm2220_vm3, %v2226_v61, %v2228_v10  ;;  %v11425_v63 = vsel %vm2220_vm3, %v2262_v23, %v2264_v8  ;;  %v2268_v61 = vrot.slane %v13840_v16, 1  ;;  %v11478_v45 = vpop.permute.xlu0 %3107 }
  0xd0   : > { %8990 = vmatmul.mubr.msk.f32.gmra.mrb[28].mxu0 %vm618_vm2, %v13853_v48  ;;  %v11413_v48 = vsel %vm2220_vm3, %v2258_v53, %v2260_v60  ;;  %v11428_v10 = vpop.permute.xlu1 %3102  ;;  %v2272_v16 = vrot.slane %v13844_v50, 1  ;;  %v2276_v50 = vrot.slane %v13848_v6, 1  ;;  %13863 = vst [vmem:[#allocation12_spill] sm:$0xff] %v11478_v45 }
  0xd1   : > { %8992 = vmatprep.mubr.msk.f32.mxu0 %vm618_vm2, %v1155_v62  ;;  %v11401_v62 = vsel %vm2220_vm3, %v2256_v52, %v2258_v53  ;;  %13858 = vst [vmem:[#allocation11_spill] sm:$0xff] %v11428_v10  ;;  %v11441_v21 = vsel %vm2220_vm3, %v2266_v29, %v2268_v61  ;;  %v11445_v14 = vsel %vm2220_vm3, %v2268_v61, %v2270_v4  ;;  %v10304_v52 = vld [vmem:[%s10413_s16 + $0x18] sm:$0xff] }
  0xd2   : > { %9143 = vmatmul.mubr.msk.f32.gmra.mrb[30].mxu1 %vm618_vm2, %v11247_v49  ;;  %v11457_v15 = vsel %vm2220_vm3, %v2270_v4, %v2272_v16  ;;  %v2579_v54 = vrot.slane %v10304_v52, 1 }
  0xd4   : > { %8993 = vmatmul.mubr.msk.f32.gmra.mrb[30].mxu0 %vm618_vm2, %v1157_v58  ;;  %v11417_v58 = vsel %vm2220_vm3, %v2260_v60, %v2262_v23  ;;  %v11497_v60 = vpop.permute.xlu0 %3331  ;;  %v11504_v23 = vsel %vm2220_vm3, %v2282_v40, %v13730_v2  ;;  %v2580_v8 = vsel %vm2220_vm3, %v2578_v35, %v2579_v54  ;;  %v2581_v29 = vsel %vm2220_vm3, %v2579_v54, %v2221_v13 }
  0xd5   : > { %9147 = vmatprep.mubr.msk.f32.mxu0 %vm618_vm2, %v11275_v17  ;;  %13866 = vst [vmem:[#allocation16_spill] sm:$0xff] %v11497_v60 }
  0xd8   : > { %9148 = vmatmul.mubr.msk.f32.vlgmr.msra.gmra.mrb[32].mxu0 %vm618_vm2, %v11282_v7  ;;  %v11515_v4 = vpop.permute.xlu0 %3117 }
  0xd9   : > { %9196 = vmatpush3.msk.msra.mxu0 %vm683_vm0, %v11107_v5  ;;  %9150 = vmatprep.mubr.msk.f32.mxu0 %vm618_vm2, %v11286_v56  ;;  %v11331_v5 = vsel %vm2220_vm3, %v2236_v36, %v2238_v25  ;;  %v2274_v36 = vrot.slane %v13847_v9, 1  ;;  %v11448_v25 = vpop.permute.xlu1 %3326  ;;  %v2278_v9 = vrot.slane %v10776_v44, 1  ;;  %13868 = vst [vmem:[#allocation4_spill] sm:$0xff] %v11515_v4 }
  0xda   : > { %9245 = vmatprep.subr.msk.mxu0 %vm683_vm0, %v11292_v34  ;;  %13860 = vst [vmem:[#allocation9_spill] sm:$0xff] %v11448_v25 }
  0xdb   : > { %v11461_v27 = vsel %vm2220_vm3, %v2272_v16, %v2274_v36  ;;  %v11469_v19 = vsel %vm2220_vm3, %v2274_v36, %v2276_v50  ;;  %v11475_v6 = vsel %vm2220_vm3, %v2276_v50, %v2278_v9  ;;  %v11485_v44 = vsel %vm2220_vm3, %v2278_v9, %v2280_v33  ;;  %v3604_v36 = vld [vmem:[%s13691_s5] sm:$0xff] }
  0xdc   : > { %9151 = vmatmul.mubr.msk.f32.gmra.mrb[34].mxu0 %vm618_vm2, %v11301_v11  ;;  %v11526_v1 = vpop.permute.xlu0 %3341  ;;  %9295 = vmatprep.subr.mxu1 %v3604_v36 }
  0xdd   : > { %9153 = vmatprep.mubr.msk.f32.mxu0 %vm618_vm2, %v11305_v18  ;;  %v11472_v22 = vpop.permute.xlu1 %3112  ;;  %13870 = vst [vmem:[#allocation17_spill] sm:$0xff] %v11526_v1  ;;  %9296 = vmatpush3.msra.mxu1 %v3604_v36 }
  0xde   : > { %13862 = vst [vmem:[#allocation15_spill] sm:$0xff] %v11472_v22 }
  0xe0   : > { %9154 = vmatmul.mubr.msk.f32.gmra.mrb[36].mxu0 %vm618_vm2, %v11315_v0 }
  0xe1   : > { %9156 = vmatprep.mubr.msk.f32.mxu0 %vm618_vm2, %v11319_v20  ;;  %v11493_v53 = vpop.permute.xlu1 %3336 }
  0xe2   : > { %13865 = vst [vmem:[#allocation13_spill] sm:$0xff] %v11493_v53 }
  0xe4   : > { %9157 = vmatmul.mubr.msk.f32.gmra.mrb[38].mxu0 %vm618_vm2, %v11327_v26 }
  0xe5   : > { %9159 = vmatprep.mubr.msk.f32.mxu0 %vm618_vm2, %v11331_v5  ;;  %v11513_v61 = vpop.permute.xlu1 %3122 }
  0xe6   : > { %13867 = vst [vmem:[#allocation3_spill] sm:$0xff] %v11513_v61 }
  0xe8   : > { %9160 = vmatmul.mubr.msk.f32.gmra.mrb[40].mxu0 %vm618_vm2, %v11339_v32 }
  0xe9   : > { %9162 = vmatprep.mubr.msk.f32.mxu0 %vm618_vm2, %v11343_v42  ;;  %v11522_v16 = vpop.permute.xlu1 %3346 }
  0xea   : > { %13869 = vst [vmem:[#allocation18_spill] sm:$0xff] %v11522_v16 }
  0xec   : > { %9163 = vmatmul.mubr.msk.f32.gmra.mrb[42].mxu0 %vm618_vm2, %v11351_v39 }
  0xed   : > { %9165 = vmatprep.mubr.msk.f32.mxu0 %vm618_vm2, %v11355_v24  ;;  %v11534_v13 = vpop.permute.xlu1 %3132 }
  0xee   : > { %13871 = vst [vmem:[#allocation19_spill] sm:$0xff] %v11534_v13 }
  0xf0   : > { %9166 = vmatmul.mubr.msk.f32.gmra.mrb[44].mxu0 %vm618_vm2, %v11366_v28 }
  0xf1   : > { %9168 = vmatprep.mubr.msk.f32.mxu0 %vm618_vm2, %v11373_v30 }
  0xf4   : > { %9169 = vmatmul.mubr.msk.f32.gmra.mrb[46].mxu0 %vm618_vm2, %v11381_v37 }
  0xf5   : > { %9171 = vmatprep.mubr.msk.f32.mxu0 %vm618_vm2, %v11387_v47 }
  0xf8   : > { %9172 = vmatmul.mubr.msk.f32.gmra.mrb[48].mxu0 %vm618_vm2, %v11397_v57 }
  0xf9   : > { %9174 = vmatprep.mubr.msk.f32.mxu0 %vm618_vm2, %v11401_v62 }
  0xfc   : > { %9175 = vmatmul.mubr.msk.f32.gmra.mrb[50].mxu0 %vm618_vm2, %v11413_v48 }
  0xfd   : > { %9177 = vmatprep.mubr.msk.f32.mxu0 %vm618_vm2, %v11417_v58 }
 0x100   : > { %9178 = vmatmul.mubr.msk.f32.gmra.mrb[52].mxu0 %vm618_vm2, %v11425_v63 }
 0x101   : > { %9180 = vmatprep.mubr.msk.f32.mxu0 %vm618_vm2, %v11431_v31 }
 0x104   : > { %9181 = vmatmul.mubr.msk.f32.gmra.mrb[54].mxu0 %vm618_vm2, %v11441_v21 }
 0x105   : > { %9183 = vmatprep.mubr.msk.f32.mxu0 %vm618_vm2, %v11445_v14 }
 0x108   : > { %9184 = vmatmul.mubr.msk.f32.gmra.mrb[56].mxu0 %vm618_vm2, %v11457_v15 }
 0x109   : > { %9186 = vmatprep.mubr.msk.f32.mxu0 %vm618_vm2, %v11461_v27 }
 0x10c   : > { %9187 = vmatmul.mubr.msk.f32.gmra.mrb[58].mxu0 %vm618_vm2, %v11469_v19 }
 0x10d   : > { %9189 = vmatprep.mubr.msk.f32.mxu0 %vm618_vm2, %v11475_v6 }
 0x110   : > { %9190 = vmatmul.mubr.msk.f32.gmra.mrb[60].mxu0 %vm618_vm2, %v11485_v44 }
 0x111   : > { %9192 = vmatprep.mubr.msk.f32.mxu0 %vm618_vm2, %v11489_v46 }
 0x114   : > { %9193 = vmatmul.mubr.msk.f32.gmra.mrb[62].mxu0 %vm618_vm2, %v11504_v23 }
 0x115   : > { %9197 = vmatprep.mubr.msk.f32.mxu0 %vm618_vm2, %v2580_v8 }
 0x118   : > { %9198 = vmatmul.mubr.msk.f32.vlgmr.msra.gmra.mrb[32].mxu0 %vm618_vm2, %v2581_v29 }
 0x119   : > { %9246 = vmatpush3.msk.msra.mxu0 %vm683_vm0, %v11292_v34  ;;  %9200 = vmatprep.mubr.msk.f32.mxu0 %vm618_vm2, %v11275_v17  ;;  %v11536_v34 = vpop.permute.xlu0 %3127  ;;  %v11542_v17 = vpop.permute.xlu1 %3356 }
 0x11a   : > { %13872 = vst [vmem:[#allocation20_spill] sm:$0xff] %v11536_v34  ;;  %13873 = vst [vmem:[#allocation21_spill] sm:$0xff] %v11542_v17 }
 0x11c   : > { %9201 = vmatmul.mubr.msk.f32.gmra.mrb[34].mxu0 %vm618_vm2, %v11282_v7 }
 0x11d   : > { %9203 = vmatprep.mubr.msk.f32.mxu0 %vm618_vm2, %v11286_v56  ;;  %v11546_v7 = vpop.permute.xlu0 %3351  ;;  %v11557_v50 = vpop.permute.xlu1 %3142 }
 0x11e   : > { %13874 = vst [vmem:[#allocation22_spill] sm:$0xff] %v11546_v7  ;;  %13875 = vst [vmem:[#allocation23_spill] sm:$0xff] %v11557_v50 }
 0x120   : > { %9204 = vmatmul.mubr.msk.f32.gmra.mrb[36].mxu0 %vm618_vm2, %v11301_v11 }
 0x121   : > { %9206 = vmatprep.mubr.msk.f32.mxu0 %vm618_vm2, %v11305_v18  ;;  %v11559_v9 = vpop.permute.xlu0 %3137  ;;  %v11565_v33 = vpop.permute.xlu1 %3366 }
 0x122   : > { %13876 = vst [vmem:[#allocation24_spill] sm:$0xff] %v11559_v9  ;;  %13877 = vst [vmem:[#allocation25_spill] sm:$0xff] %v11565_v33 }
 0x124   : > { %9207 = vmatmul.mubr.msk.f32.gmra.mrb[38].mxu0 %vm618_vm2, %v11315_v0 }
 0x125   : > { %9209 = vmatprep.mubr.msk.f32.mxu0 %vm618_vm2, %v11319_v20  ;;  %v11569_v40 = vpop.permute.xlu0 %3361  ;;  %v11577_v51 = vpop.permute.xlu1 %3152 }
 0x126   : > { %13878 = vst [vmem:[#allocation26_spill] sm:$0xff] %v11569_v40  ;;  %13879 = vst [vmem:[#allocation27_spill] sm:$0xff] %v11577_v51 }
 0x128   : > { %9210 = vmatmul.mubr.msk.f32.gmra.mrb[40].mxu0 %vm618_vm2, %v11327_v26 }
 0x129   : > { %9212 = vmatprep.mubr.msk.f32.mxu0 %vm618_vm2, %v11331_v5  ;;  %v11579_v35 = vpop.permute.xlu0 %3147  ;;  %v11585_v52 = vpop.permute.xlu1 %3376 }
 0x12a   : > { %13880 = vst [vmem:[#allocation28_spill] sm:$0xff] %v11579_v35  ;;  %13881 = vst [vmem:[#allocation29_spill] sm:$0xff] %v11585_v52 }
 0x12c   : > { %9213 = vmatmul.mubr.msk.f32.gmra.mrb[42].mxu0 %vm618_vm2, %v11339_v32 }
 0x12d   : > { %9215 = vmatprep.mubr.msk.f32.mxu0 %vm618_vm2, %v11343_v42  ;;  %v11589_v54 = vpop.permute.xlu0 %3371  ;;  %v11597_v8 = vpop.permute.xlu1 %3162 }
 0x12e   : > { %13882 = vst [vmem:[#allocation30_spill] sm:$0xff] %v11589_v54  ;;  %13883 = vst [vmem:[#allocation31_spill] sm:$0xff] %v11597_v8 }
 0x130   : > { %9216 = vmatmul.mubr.msk.f32.gmra.mrb[44].mxu0 %vm618_vm2, %v11351_v39 }
 0x131   : > { %9218 = vmatprep.mubr.msk.f32.mxu0 %vm618_vm2, %v11355_v24  ;;  %v11599_v29 = vpop.permute.xlu0 %3157  ;;  %v11605_v36 = vpop.permute.xlu1 %3386 }
 0x132   : > { %13884 = vst [vmem:[#allocation32_spill] sm:$0xff] %v11599_v29  ;;  %13885 = vst [vmem:[#allocation33_spill] sm:$0xff] %v11605_v36 }
 0x134   : > { %9219 = vmatmul.mubr.msk.f32.gmra.mrb[46].mxu0 %vm618_vm2, %v11366_v28 }
 0x135   : > { %9221 = vmatprep.mubr.msk.f32.mxu0 %vm618_vm2, %v11373_v30  ;;  %v11609_v2 = vpop.permute.xlu0 %3381  ;;  %v11617_v54 = vpop.permute.xlu1 %3172 }
 0x136   : > { %13886 = vst [vmem:[#allocation34_spill] sm:$0xff] %v11609_v2  ;;  %13887 = vst [vmem:[#allocation35_spill] sm:$0xff] %v11617_v54 }
 0x138   : > { %9222 = vmatmul.mubr.msk.f32.gmra.mrb[48].mxu0 %vm618_vm2, %v11381_v37 }
 0x139   : > { %9224 = vmatprep.mubr.msk.f32.mxu0 %vm618_vm2, %v11387_v47  ;;  %v11619_v52 = vpop.permute.xlu0 %3167  ;;  %v11625_v2 = vpop.permute.xlu1 %3396 }
 0x13a   : > { %13888 = vst [vmem:[#allocation36_spill] sm:$0xff] %v11619_v52  ;;  %13889 = vst [vmem:[#allocation37_spill] sm:$0xff] %v11625_v2 }
 0x13c   : > { %9225 = vmatmul.mubr.msk.f32.gmra.mrb[50].mxu0 %vm618_vm2, %v11397_v57 }
 0x13d   : > { %9227 = vmatprep.mubr.msk.f32.mxu0 %vm618_vm2, %v11401_v62  ;;  %v11629_v36 = vpop.permute.xlu0 %3391  ;;  %v11637_v40 = vpop.permute.xlu1 %3182 }
 0x13e   : > { %13890 = vst [vmem:[#allocation38_spill] sm:$0xff] %v11629_v36  ;;  %13891 = vst [vmem:[#allocation39_spill] sm:$0xff] %v11637_v40 }
 0x140   : > { %9228 = vmatmul.mubr.msk.f32.gmra.mrb[52].mxu0 %vm618_vm2, %v11413_v48 }
 0x141   : > { %9230 = vmatprep.mubr.msk.f32.mxu0 %vm618_vm2, %v11417_v58  ;;  %v11639_v33 = vpop.permute.xlu0 %3177 }
 0x142   : > { %13892 = vst [vmem:[#allocation40_spill] sm:$0xff] %v11639_v33 }
 0x144   : > { %9231 = vmatmul.mubr.msk.f32.gmra.mrb[54].mxu0 %vm618_vm2, %v11425_v63 }
 0x145   : > { %9233 = vmatprep.mubr.msk.f32.mxu0 %vm618_vm2, %v11431_v31 }
 0x148   : > { %9234 = vmatmul.mubr.msk.f32.gmra.mrb[56].mxu0 %vm618_vm2, %v11441_v21 }
 0x149   : > { %9236 = vmatprep.mubr.msk.f32.mxu0 %vm618_vm2, %v11445_v14 }
 0x14c   : > { %9237 = vmatmul.mubr.msk.f32.gmra.mrb[58].mxu0 %vm618_vm2, %v11457_v15 }
 0x14d   : > { %9239 = vmatprep.mubr.msk.f32.mxu0 %vm618_vm2, %v11461_v27 }
 0x150   : > { %9240 = vmatmul.mubr.msk.f32.gmra.mrb[60].mxu0 %vm618_vm2, %v11469_v19 }
 0x151   : > { %9242 = vmatprep.mubr.msk.f32.mxu0 %vm618_vm2, %v11475_v6 }
 0x154   : > { %9243 = vmatmul.mubr.msk.f32.gmra.mrb[62].mxu0 %vm618_vm2, %v11485_v44 }
 0x155   : > { %9247 = vmatprep.mubr.msk.f32.mxu0 %vm618_vm2, %v11286_v56  ;;  %v11645_v56 = vpop.permute.xlu1 %3406 }
 0x156   : > { %13893 = vst [vmem:[#allocation41_spill] sm:$0xff] %v11645_v56 }
 0x158   : > { %9248 = vmatmul.mubr.msk.f32.vlgmr.msra.gmra.mrb[32].mxu0 %vm618_vm2, %v11301_v11  ;;  %v11649_v11 = vpop.permute.xlu0 %3401 }
 0x159   : > { %9250 = vmatprep.mubr.msk.f32.mxu0 %vm618_vm2, %v11305_v18  ;;  %13894 = vst [vmem:[#allocation42_spill] sm:$0xff] %v11649_v11 }
 0x15c   : > { %9251 = vmatmul.mubr.msk.f32.gmra.mrb[34].mxu0 %vm618_vm2, %v11315_v0  ;;  %v11657_v0 = vpop.permute.xlu1 %3192 }
 0x15d   : > { %9253 = vmatprep.mubr.msk.f32.mxu0 %vm618_vm2, %v11319_v20  ;;  %13895 = vst [vmem:[#allocation43_spill] sm:$0xff] %v11657_v0 }
 0x160   : > { %9254 = vmatmul.mubr.msk.f32.gmra.mrb[36].mxu0 %vm618_vm2, %v11327_v26  ;;  %v11659_v26 = vpop.permute.xlu0 %3187  ;;  %v11671_v7 = vpop.permute.xlu1 %3416 }
 0x161   : > { %9256 = vmatprep.mubr.msk.f32.mxu0 %vm618_vm2, %v11331_v5  ;;  %13896 = vst [vmem:[#allocation44_spill] sm:$0xff] %v11659_v26  ;;  %13897 = vst [vmem:[#allocation45_spill] sm:$0xff] %v11671_v7 }
 0x164   : > { %9257 = vmatmul.mubr.msk.f32.gmra.mrb[38].mxu0 %vm618_vm2, %v11339_v32 }
 0x165   : > { %9259 = vmatprep.mubr.msk.f32.mxu0 %vm618_vm2, %v11343_v42 }
 0x168   : > { %9260 = vmatmul.mubr.msk.f32.gmra.mrb[40].mxu0 %vm618_vm2, %v11351_v39 }
 0x169   : > { %9262 = vmatprep.mubr.msk.f32.mxu0 %vm618_vm2, %v11355_v24  ;;  %v9099_v18 = vpop.f32.mrb[0].mxu1 }
 0x16a   : > { %v2025_v20 = vpop.f32.mrb[1].mxu1 }
 0x16b   : > { %v8949_v5 = vpop.f32.mrb[0].mxu0 }
 0x16c   : > { %v3246_v32 = vmul.f32 %v8949_v5, %v11408_v3  ;;  %v1231_v56 = vpop.f32.mrb[1].mxu0  ;;  %9263 = vmatmul.mubr.msk.f32.gmra.mrb[42].mxu0 %vm618_vm2, %v11366_v28  ;;  %v11676_v28 = vpop.permute.xlu0 %3411 }
 0x16d   : > { %v3245_v42 = vmul.f32 %v11390_v59, %v1231_v56  ;;  %9265 = vmatprep.mubr.msk.f32.mxu0 %vm618_vm2, %v11373_v30  ;;  %v9102_v39 = vpop.f32.mrb[2].mxu1  ;;  %13898 = vst [vmem:[#allocation46_spill] sm:$0xff] %v11676_v28 }
 0x16e   : > { %v11667_v24 = vadd.f32 %v9099_v18, %v3246_v32  ;;  %v2035_v11 = vpop.f32.mrb[3].mxu1 }
 0x16f   : > { %v11669_v36 = vadd.f32 %v3245_v42, %v2025_v20  ;;  %v8952_v2 = vpop.f32.mrb[2].mxu0 }
 0x170   : > { %v3248_v5 = vmul.f32 %v8952_v2, %v11428_v10  ;;  %v1241_v3 = vpop.f32.mrb[3].mxu0  ;;  %9266 = vmatmul.mubr.msk.f32.gmra.mrb[44].mxu0 %vm618_vm2, %v11381_v37 }
 0x171   : > { %v3247_v56 = vmul.f32 %v11434_v12, %v1241_v3  ;;  %9268 = vmatprep.mubr.msk.f32.mxu0 %vm618_vm2, %v11387_v47  ;;  %v9105_v30 = vpop.f32.mrb[4].mxu1  ;;  %v11691_v47 = vpop.permute.xlu1 %3202 }
 0x172   : > { %v11681_v18 = vadd.f32 %v9102_v39, %v3248_v5  ;;  %v2045_v20 = vpop.f32.mrb[5].mxu1  ;;  %13899 = vst [vmem:[#allocation47_spill] sm:$0xff] %v11691_v47 }
 0x173   : > { %v11683_v32 = vadd.f32 %v3247_v56, %v2035_v11  ;;  %v8955_v42 = vpop.f32.mrb[4].mxu0  ;;  %v11695_v11 = vpop.permute.xlu0 %3197 }
 0x174   : > { %v3250_v2 = vmul.f32 %v8955_v42, %v11472_v22  ;;  %v1251_v10 = vpop.f32.mrb[5].mxu0  ;;  %9269 = vmatmul.mubr.msk.f32.gmra.mrb[46].mxu0 %vm618_vm2, %v11397_v57  ;;  %13900 = vst [vmem:[#allocation48_spill] sm:$0xff] %v11695_v11 }
 0x175   : > { %v3249_v37 = vmul.f32 %v11478_v45, %v1251_v10  ;;  %9271 = vmatprep.mubr.msk.f32.mxu0 %vm618_vm2, %v11401_v62  ;;  %v9108_v3 = vpop.f32.mrb[6].mxu1 }
 0x176   : > { %v11693_v39 = vadd.f32 %v9105_v30, %v3250_v2  ;;  %v2055_v5 = vpop.f32.mrb[7].mxu1 }
 0x177   : > { %v11697_v56 = vadd.f32 %v3249_v37, %v2045_v20  ;;  %v8958_v42 = vpop.f32.mrb[6].mxu0  ;;  %v11709_v37 = vpop.permute.xlu1 %3426 }
 0x178   : > { %v3252_v22 = vmul.f32 %v8958_v42, %v11513_v61  ;;  %v1261_v12 = vpop.f32.mrb[7].mxu0  ;;  %9272 = vmatmul.mubr.msk.f32.gmra.mrb[48].mxu0 %vm618_vm2, %v11413_v48  ;;  %13901 = vst [vmem:[#allocation49_spill] sm:$0xff] %v11709_v37  ;;  %v11714_v48 = vpop.permute.xlu0 %3421 }
 0x179   : > { %v3251_v57 = vmul.f32 %v11515_v4, %v1261_v12  ;;  %9274 = vmatprep.mubr.msk.f32.mxu0 %vm618_vm2, %v11417_v58  ;;  %v9111_v62 = vpop.f32.mrb[8].mxu1  ;;  %13902 = vst [vmem:[#allocation50_spill] sm:$0xff] %v11714_v48 }
 0x17a   : > { %v11705_v10 = vadd.f32 %v9108_v3, %v3252_v22  ;;  %v2065_v30 = vpop.f32.mrb[9].mxu1 }
 0x17b   : > { %v11707_v2 = vadd.f32 %v3251_v57, %v2055_v5  ;;  %v8961_v20 = vpop.f32.mrb[8].mxu0 }
 0x17c   : > { %v3254_v42 = vmul.f32 %v8961_v20, %v11534_v13  ;;  %v1271_v61 = vpop.f32.mrb[9].mxu0  ;;  %9275 = vmatmul.mubr.msk.f32.gmra.mrb[50].mxu0 %vm618_vm2, %v11425_v63 }
 0x17d   : > { %v3253_v12 = vmul.f32 %v11536_v34, %v1271_v61  ;;  %9277 = vmatprep.mubr.msk.f32.mxu0 %vm618_vm2, %v11431_v31  ;;  %v9114_v58 = vpop.f32.mrb[10].mxu1  ;;  %v11729_v31 = vpop.permute.xlu1 %3212 }
 0x17e   : > { %v11719_v22 = vadd.f32 %v9111_v62, %v3254_v42  ;;  %v2075_v3 = vpop.f32.mrb[11].mxu1  ;;  %13903 = vst [vmem:[#allocation51_spill] sm:$0xff] %v11729_v31 }
 0x17f   : > { %v11721_v5 = vadd.f32 %v3253_v12, %v2065_v30  ;;  %v8964_v57 = vpop.f32.mrb[10].mxu0  ;;  %v11733_v30 = vpop.permute.xlu0 %3207 }
 0x180   : > { %v3256_v20 = vmul.f32 %v8964_v57, %v11557_v50  ;;  %v1281_v13 = vpop.f32.mrb[11].mxu0  ;;  %9278 = vmatmul.mubr.msk.f32.gmra.mrb[52].mxu0 %vm618_vm2, %v11441_v21  ;;  %13904 = vst [vmem:[#allocation52_spill] sm:$0xff] %v11733_v30 }
 0x181   : > { %v3255_v63 = vmul.f32 %v11559_v9, %v1281_v13  ;;  %9280 = vmatprep.mubr.msk.f32.mxu0 %vm618_vm2, %v11445_v14  ;;  %v9117_v61 = vpop.f32.mrb[12].mxu1 }
 0x182   : > { %v11731_v62 = vadd.f32 %v9114_v58, %v3256_v20  ;;  %v2085_v42 = vpop.f32.mrb[13].mxu1 }
 0x183   : > { %v11735_v12 = vadd.f32 %v3255_v63, %v2075_v3  ;;  %v8967_v57 = vpop.f32.mrb[12].mxu0  ;;  %v11747_v63 = vpop.permute.xlu1 %3436 }
 0x184   : > { %v3258_v50 = vmul.f32 %v8967_v57, %v11577_v51  ;;  %v1291_v34 = vpop.f32.mrb[13].mxu0  ;;  %9281 = vmatmul.mubr.msk.f32.gmra.mrb[54].mxu0 %vm618_vm2, %v11457_v15  ;;  %13905 = vst [vmem:[#allocation53_spill] sm:$0xff] %v11747_v63  ;;  %v11752_v15 = vpop.permute.xlu0 %3431 }
 0x185   : > { %v3257_v21 = vmul.f32 %v11579_v35, %v1291_v34  ;;  %9283 = vmatprep.mubr.msk.f32.mxu0 %vm618_vm2, %v11461_v27  ;;  %v9120_v14 = vpop.f32.mrb[14].mxu1  ;;  %13906 = vst [vmem:[#allocation54_spill] sm:$0xff] %v11752_v15 }
 0x186   : > { %v11743_v13 = vadd.f32 %v9117_v61, %v3258_v50  ;;  %v2095_v58 = vpop.f32.mrb[15].mxu1 }
 0x187   : > { %v11745_v20 = vadd.f32 %v3257_v21, %v2085_v42  ;;  %v8970_v3 = vpop.f32.mrb[14].mxu0  ;;  %v2817_v42 = vrot.slane %v11247_v49, 1  ;;  %v515_v21 = vld [vmem:[%s10413_s16 + $0x130] sm:$0xff]  ;;  %s8174_s16 = sshll.u32 %s14025_s22, 8 }
 0x188   : > { %v3260_v57 = vmul.f32 %v8970_v3, %v11597_v8  ;;  %v1301_v51 = vpop.f32.mrb[15].mxu0  ;;  %9284 = vmatmul.mubr.msk.f32.gmra.mrb[56].mxu0 %vm618_vm2, %v11469_v19  ;;  %s13613_s27 = scalar_lea.vmem %s13698_s12, %s8174_s16 }
 0x189   : > { %v3259_v27 = vmul.f32 %v11599_v29, %v1301_v51  ;;  %9286 = vmatprep.mubr.msk.f32.mxu0 %vm618_vm2, %v11475_v6  ;;  %v9123_v34 = vpop.f32.mrb[16].mxu1 }
 0x18a   : > { %v11757_v50 = vadd.f32 %v9120_v14, %v3260_v57  ;;  %v2105_v61 = vpop.f32.mrb[17].mxu1  ;;  %v2819_v14 = vrot.slane %v515_v21, 1  ;;  %v11769_v57 = vpop.permute.xlu1 %3222 }
 0x18b   : > { %v11761_v35 = vadd.f32 %v3259_v27, %v2095_v58  ;;  %v8973_v3 = vpop.f32.mrb[16].mxu0  ;;  %13907 = vst [vmem:[#allocation55_spill] sm:$0xff] %v11769_v57  ;;  %v13908_v27 = vrot.slane %v11237_v43, 1 }
 0x18c   : > { %v3262_v8 = vmul.f32 %v8973_v3, %v11617_v54  ;;  %v1311_v19 = vpop.f32.mrb[17].mxu0  ;;  %9287 = vmatmul.mubr.msk.f32.gmra.mrb[58].mxu0 %vm618_vm2, %v11485_v44  ;;  %v11776_v54 = vpop.permute.xlu0 %3217 }
 0x18d   : > { %v3261_v51 = vmul.f32 %v11619_v52, %v1311_v19  ;;  %9289 = vmatprep.mubr.msk.f32.mxu0 %vm618_vm2, %v11489_v46  ;;  %v9126_v6 = vpop.f32.mrb[18].mxu1  ;;  %v2818_v3 = vsel %vm2220_vm3, %v13908_v27, %v2817_v42  ;;  %13909 = vst [vmem:[#allocation56_spill] sm:$0xff] %v11776_v54 }
 0x18e   : > { %v11771_v49 = vadd.f32 %v9123_v34, %v3262_v8  ;;  %v2115_v58 = vpop.f32.mrb[19].mxu1  ;;  %v2820_v8 = vsel %vm2220_vm3, %v2817_v42, %v2819_v14 }
 0x18f   : > { %v11778_v29 = vadd.f32 %v3261_v51, %v2105_v61  ;;  %v8976_v44 = vpop.f32.mrb[18].mxu0  ;;  %v11790_v51 = vpop.permute.xlu1 %3446 }
 0x190   : > { %v3264_v19 = vmul.f32 %v8976_v44, %v11637_v40  ;;  %v1321_v52 = vpop.f32.mrb[19].mxu0  ;;  %9290 = vmatmul.mubr.msk.f32.gmra.mrb[60].mxu0 %vm618_vm2, %v11504_v23  ;;  %13910 = vst [vmem:[#allocation57_spill] sm:$0xff] %v11790_v51  ;;  %v11794_v23 = vpop.permute.xlu0 %3441 }
 0x191   : > { %v3263_v46 = vmul.f32 %v11639_v33, %v1321_v52  ;;  %9292 = vmatprep.mubr.msk.f32.mxu0 %vm618_vm2, %v2818_v3  ;;  %v9129_v43 = vpop.f32.mrb[20].mxu1  ;;  %13911 = vst [vmem:[#allocation58_spill] sm:$0xff] %v11794_v23 }
 0x192   : > { %v11786_v34 = vadd.f32 %v9126_v6, %v3264_v19  ;;  %v2125_v21 = vpop.f32.mrb[21].mxu1 }
 0x193   : > { %v11788_v27 = vadd.f32 %v3263_v46, %v2115_v58  ;;  %v8979_v61 = vpop.f32.mrb[20].mxu0 }
 0x194   : > { %v3266_v44 = vmul.f32 %v8979_v61, %v11657_v0  ;;  %v1331_v40 = vpop.f32.mrb[21].mxu0  ;;  %9293 = vmatmul.mubr.msk.f32.gmra.mrb[62].mxu0 %vm618_vm2, %v2820_v8  ;;  %v11803_v0 = vpop.permute.xlu1 %3232 }
 0x195   : > { %v3265_v52 = vmul.f32 %v11659_v26, %v1331_v40  ;;  %v9132_v3 = vpop.f32.mrb[22].mxu1  ;;  %13912 = vst [vmem:[#allocation59_spill] sm:$0xff] %v11803_v0  ;;  %v11807_v4 = vpop.permute.xlu0 %3227 }
 0x196   : > { %v11797_v42 = vadd.f32 %v9129_v43, %v3266_v44  ;;  %v2135_v6 = vpop.f32.mrb[23].mxu1  ;;  %13913 = vst [vmem:[#allocation60_spill] sm:$0xff] %v11807_v4 }
 0x197   : > { %v11799_v14 = vadd.f32 %v3265_v52, %v2125_v21  ;;  %v8982_v58 = vpop.f32.mrb[22].mxu0 }
 0x198   : > { %v3268_v19 = vmul.f32 %v8982_v58, %v11691_v47  ;;  %v1341_v46 = vpop.f32.mrb[23].mxu0 }
 0x199   : > { %v3267_v33 = vmul.f32 %v11695_v11, %v1341_v46  ;;  %v9135_v61 = vpop.f32.mrb[24].mxu1 }
 0x19a   : > { %v11805_v8 = vadd.f32 %v9132_v3, %v3268_v19  ;;  %v2145_v9 = vpop.f32.mrb[25].mxu1  ;;  %v11817_v3 = vpop.permute.xlu1 %3456 }
 0x19b   : > { %v11809_v40 = vadd.f32 %v3267_v33, %v2135_v6  ;;  %v8985_v43 = vpop.f32.mrb[24].mxu0  ;;  %13914 = vst [vmem:[#allocation61_spill] sm:$0xff] %v11817_v3  ;;  %v11820_v33 = vpop.permute.xlu0 %3451 }
 0x19c   : > { %v3270_v21 = vmul.f32 %v8985_v43, %v11729_v31  ;;  %v1351_v44 = vpop.f32.mrb[25].mxu0  ;;  %13915 = vst [vmem:[#allocation62_spill] sm:$0xff] %v11820_v33 }
 0x19d   : > { %v3269_v52 = vmul.f32 %v11733_v30, %v1351_v44  ;;  %v9138_v58 = vpop.f32.mrb[26].mxu1 }
 0x19e   : > { %v11813_v47 = vadd.f32 %v9135_v61, %v3270_v21  ;;  %v2155_v46 = vpop.f32.mrb[27].mxu1  ;;  %v11829_v59 = vpop.permute.xlu1 %3242 }
 0x19f   : > { %v11815_v11 = vadd.f32 %v3269_v52, %v2145_v9  ;;  %v8988_v26 = vpop.f32.mrb[26].mxu0  ;;  %13916 = vst [vmem:[#allocation63_spill] sm:$0xff] %v11829_v59  ;;  %v11833_v33 = vpop.permute.xlu0 %3237 }
 0x1a0   : > { %v3272_v19 = vmul.f32 %v8988_v26, %v11769_v57  ;;  %v1361_v45 = vpop.f32.mrb[27].mxu0  ;;  %13917 = vst [vmem:[#allocation64_spill] sm:$0xff] %v11833_v33 }
 0x1a1   : > { %v3271_v6 = vmul.f32 %v11776_v54, %v1361_v45  ;;  %v9141_v43 = vpop.f32.mrb[28].mxu1 }
 0x1a2   : > { %v11823_v31 = vadd.f32 %v9138_v58, %v3272_v19  ;;  %v2165_v44 = vpop.f32.mrb[29].mxu1 }
 0x1a3   : > { %v11825_v30 = vadd.f32 %v3271_v6, %v2155_v46  ;;  %v8991_v61 = vpop.f32.mrb[28].mxu0 }
 0x1a4   : > { %v3274_v9 = vmul.f32 %v8991_v61, %v11803_v0  ;;  %v1371_v21 = vpop.f32.mrb[29].mxu0 }
 0x1a5   : > { %v3273_v52 = vmul.f32 %v11807_v4, %v1371_v21  ;;  %v9144_v26 = vpop.f32.mrb[30].mxu1 }
 0x1a6   : > { %v11831_v57 = vadd.f32 %v9141_v43, %v3274_v9  ;;  %v2175_v45 = vpop.f32.mrb[31].mxu1  ;;  %v7834_v43 = vld [vmem:[%s13693_s7 + $0x30] sm:$0xff]  ;;  %v7835_v9 = vld [vmem:[%s13693_s7 + $0x38] sm:$0xff] }
 0x1a7   : > { %v11835_v54 = vadd.f32 %v3273_v52, %v2165_v44  ;;  %v8994_v58 = vpop.f32.mrb[30].mxu0  ;;  %v9865_v44 = vpack.c.bf16 %v7835_v9, %v7834_v43 }
 0x1a8   : > { %v3276_v46 = vmul.f32 %v8994_v58, %v11829_v59  ;;  %v1381_v19 = vpop.f32.mrb[31].mxu0 }
 0x1a9   : > { %v3275_v6 = vmul.f32 %v11833_v33, %v1381_v19  ;;  %9866 = vmatprep.subr.bf16.mxu1 %v9865_v44 }
 0x1aa   : > { %v11839_v61 = vadd.f32 %v9144_v26, %v3276_v46  ;;  %v11853_v26 = vld [vmem:[%s13690_s4] ss:$0 sm:$0xff] }
 0x1ab   : > { %v11841_v0 = vadd.f32 %v3275_v6, %v2175_v45 }
 0x22b   : > { %v9249_v21 = vpop.f32.mrb[32].mxu0 }
 0x22c   : > { %v3470_v52 = vmul.f32 %v9249_v21, %v11404_v38  ;;  %v2894_v58 = vpop.f32.mrb[33].mxu0 }
 0x22d   : > { %v3469_v45 = vmul.f32 %v11384_v41, %v2894_v58 }
 0x22e   : > { %v3502_v46 = vadd.f32 %v3470_v52, %v11667_v24 }
 0x22f   : > { %v3501_v19 = vadd.f32 %v3469_v45, %v11669_v36  ;;  %v9252_v6 = vpop.f32.mrb[34].mxu0 }
 0x230   : > { %v3541_v33 = vadd.f32 %v11853_v26, %v3502_v46  ;;  %v3472_v43 = vmul.f32 %v9252_v6, %v11448_v25  ;;  %v2904_v9 = vpop.f32.mrb[35].mxu0 }
 0x231   : > { %v3540_v21 = vadd.f32 %v11853_v26, %v3501_v19  ;;  %v3471_v38 = vmul.f32 %v11452_v55, %v2904_v9 }
 0x232   : > { %v3504_v59 = vadd.f32 %v3472_v43, %v11681_v18  ;;  %v3573_v24 = vmax.f32 %v3541_v33, 0.0 }
 0x233   : > { %v3572_v4 = vmax.f32 %v3540_v21, 0.0  ;;  %v3503_v58 = vadd.f32 %v3471_v38, %v11683_v32  ;;  %v9255_v41 = vpop.f32.mrb[36].mxu0 }
 0x234   : > { %v3543_v36 = vadd.f32 %v11853_v26, %v3504_v59  ;;  %v3474_v52 = vmul.f32 %v9255_v41, %v11493_v53  ;;  %v2914_v45 = vpop.f32.mrb[37].mxu0 }
 0x235   : > { %v3542_v46 = vadd.f32 %v11853_v26, %v3503_v58  ;;  %v3473_v6 = vmul.f32 %v11497_v60, %v2914_v45  ;;  %9297 = vmatprep.mubr.msk.f32.mxu1 %vm3612_vm4, %v3572_v4 }
 0x236   : > { %v3506_v19 = vadd.f32 %v3474_v52, %v11693_v39  ;;  %9298 = vmatmul.mubr.msk.f32.vlgmr.msra.gmra.mrb[32].mxu1 %vm3612_vm4, %v3573_v24  ;;  %v3575_v33 = vmax.f32 %v3543_v36, 0.0 }
 0x237   : > { %v3574_v18 = vmax.f32 %v3542_v46, 0.0  ;;  %v3505_v38 = vadd.f32 %v3473_v6, %v11697_v56  ;;  %v9258_v32 = vpop.f32.mrb[38].mxu0  ;;  %9868 = vmatpush3.bf16.msra.mxu1 %v9865_v44  ;;  %v13918_v46 = vld [vmem:[#allocation22_spill] sm:$0xff] }
 0x238   : > { %v3545_v59 = vadd.f32 %v11853_v26, %v3506_v19  ;;  %v3476_v41 = vmul.f32 %v9258_v32, %v11522_v16  ;;  %v2924_v43 = vpop.f32.mrb[39].mxu0 }
 0x239   : > { %v3544_v9 = vadd.f32 %v11853_v26, %v3505_v38  ;;  %v3475_v21 = vmul.f32 %v11526_v1, %v2924_v43  ;;  %9300 = vmatprep.mubr.msk.f32.mxu1 %vm3612_vm4, %v3574_v18 }
 0x23a   : > { %v3508_v4 = vadd.f32 %v3476_v41, %v11705_v10  ;;  %9301 = vmatmul.mubr.msk.f32.gmra.mrb[34].mxu1 %vm3612_vm4, %v3575_v33  ;;  %v3577_v58 = vmax.f32 %v3545_v59, 0.0  ;;  %v13919_v33 = vld [vmem:[#allocation25_spill] sm:$0xff] }
 0x23b   : > { %v3576_v39 = vmax.f32 %v3544_v9, 0.0  ;;  %v3507_v56 = vadd.f32 %v3475_v21, %v11707_v2  ;;  %v9261_v44 = vpop.f32.mrb[40].mxu0  ;;  %v13920_v9 = vld [vmem:[#allocation26_spill] sm:$0xff] }
 0x23c   : > { %v3547_v24 = vadd.f32 %v11853_v26, %v3508_v4  ;;  %v3478_v36 = vmul.f32 %v9261_v44, %v11542_v17  ;;  %v2934_v52 = vpop.f32.mrb[41].mxu0 }
 0x23d   : > { %v3546_v45 = vadd.f32 %v11853_v26, %v3507_v56  ;;  %v3477_v6 = vmul.f32 %v13918_v46, %v2934_v52  ;;  %9303 = vmatprep.mubr.msk.f32.mxu1 %vm3612_vm4, %v3576_v39 }
 0x23e   : > { %v3510_v10 = vadd.f32 %v3478_v36, %v11719_v22  ;;  %9304 = vmatmul.mubr.msk.f32.gmra.mrb[36].mxu1 %vm3612_vm4, %v3577_v58  ;;  %v3579_v38 = vmax.f32 %v3547_v24, 0.0  ;;  %v13921_v58 = vld [vmem:[#allocation29_spill] sm:$0xff] }
 0x23f   : > { %v3578_v19 = vmax.f32 %v3546_v45, 0.0  ;;  %v3509_v2 = vadd.f32 %v3477_v6, %v11721_v5  ;;  %v9264_v18 = vpop.f32.mrb[42].mxu0  ;;  %v13922_v45 = vld [vmem:[#allocation30_spill] sm:$0xff] }
 0x240   : > { %v3549_v32 = vadd.f32 %v11853_v26, %v3510_v10  ;;  %v3480_v59 = vmul.f32 %v9264_v18, %v13919_v33  ;;  %v2944_v41 = vpop.f32.mrb[43].mxu0 }
 0x241   : > { %v3548_v43 = vadd.f32 %v11853_v26, %v3509_v2  ;;  %v3479_v21 = vmul.f32 %v13920_v9, %v2944_v41  ;;  %9306 = vmatprep.mubr.msk.f32.mxu1 %vm3612_vm4, %v3578_v19 }
 0x242   : > { %v3512_v22 = vadd.f32 %v3480_v59, %v11731_v62  ;;  %9307 = vmatmul.mubr.msk.f32.gmra.mrb[38].mxu1 %vm3612_vm4, %v3579_v38  ;;  %v3581_v56 = vmax.f32 %v3549_v32, 0.0  ;;  %v13923_v38 = vld [vmem:[#allocation33_spill] sm:$0xff] }
 0x243   : > { %v3580_v4 = vmax.f32 %v3548_v43, 0.0  ;;  %v3511_v5 = vadd.f32 %v3479_v21, %v11735_v12  ;;  %v9267_v39 = vpop.f32.mrb[44].mxu0  ;;  %v13924_v43 = vld [vmem:[#allocation34_spill] sm:$0xff] }
 0x244   : > { %v3551_v44 = vadd.f32 %v11853_v26, %v3512_v22  ;;  %v3482_v24 = vmul.f32 %v9267_v39, %v13921_v58  ;;  %v2954_v36 = vpop.f32.mrb[45].mxu0 }
 0x245   : > { %v3550_v52 = vadd.f32 %v11853_v26, %v3511_v5  ;;  %v3481_v6 = vmul.f32 %v13922_v45, %v2954_v36  ;;  %9309 = vmatprep.mubr.msk.f32.mxu1 %vm3612_vm4, %v3580_v4 }
 0x246   : > { %v3514_v62 = vadd.f32 %v3482_v24, %v11743_v13  ;;  %9310 = vmatmul.mubr.msk.f32.gmra.mrb[40].mxu1 %vm3612_vm4, %v3581_v56  ;;  %v3583_v2 = vmax.f32 %v3551_v44, 0.0  ;;  %v13925_v56 = vld [vmem:[#allocation37_spill] sm:$0xff] }
 0x247   : > { %v3582_v10 = vmax.f32 %v3550_v52, 0.0  ;;  %v3513_v12 = vadd.f32 %v3481_v6, %v11745_v20  ;;  %v9270_v19 = vpop.f32.mrb[46].mxu0  ;;  %v13926_v52 = vld [vmem:[#allocation38_spill] sm:$0xff] }
 0x248   : > { %v3553_v18 = vadd.f32 %v11853_v26, %v3514_v62  ;;  %v3484_v32 = vmul.f32 %v9270_v19, %v13923_v38  ;;  %v2964_v59 = vpop.f32.mrb[47].mxu0 }
 0x249   : > { %v3552_v41 = vadd.f32 %v11853_v26, %v3513_v12  ;;  %v3483_v21 = vmul.f32 %v13924_v43, %v2964_v59  ;;  %9312 = vmatprep.mubr.msk.f32.mxu1 %vm3612_vm4, %v3582_v10 }
 0x24a   : > { %v3516_v13 = vadd.f32 %v3484_v32, %v11757_v50  ;;  %9313 = vmatmul.mubr.msk.f32.gmra.mrb[42].mxu1 %vm3612_vm4, %v3583_v2  ;;  %v3585_v5 = vmax.f32 %v3553_v18, 0.0  ;;  %v13927_v2 = vld [vmem:[#allocation41_spill] sm:$0xff] }
 0x24b   : > { %v3584_v22 = vmax.f32 %v3552_v41, 0.0  ;;  %v3515_v20 = vadd.f32 %v3483_v21, %v11761_v35  ;;  %v9273_v4 = vpop.f32.mrb[48].mxu0  ;;  %v13928_v41 = vld [vmem:[#allocation42_spill] sm:$0xff] }
 0x24c   : > { %v3555_v39 = vadd.f32 %v11853_v26, %v3516_v13  ;;  %v3486_v44 = vmul.f32 %v9273_v4, %v13925_v56  ;;  %v2974_v24 = vpop.f32.mrb[49].mxu0 }
 0x24d   : > { %v3554_v36 = vadd.f32 %v11853_v26, %v3515_v20  ;;  %v3485_v6 = vmul.f32 %v13926_v52, %v2974_v24  ;;  %9315 = vmatprep.mubr.msk.f32.mxu1 %vm3612_vm4, %v3584_v22 }
 0x24e   : > { %v3518_v50 = vadd.f32 %v3486_v44, %v11771_v49  ;;  %9316 = vmatmul.mubr.msk.f32.gmra.mrb[44].mxu1 %vm3612_vm4, %v3585_v5  ;;  %v3587_v12 = vmax.f32 %v3555_v39, 0.0 }
 0x24f   : > { %v3586_v62 = vmax.f32 %v3554_v36, 0.0  ;;  %v3517_v35 = vadd.f32 %v3485_v6, %v11778_v29  ;;  %v9276_v10 = vpop.f32.mrb[50].mxu0 }
 0x250   : > { %v3557_v19 = vadd.f32 %v11853_v26, %v3518_v50  ;;  %v3488_v18 = vmul.f32 %v9276_v10, %v13927_v2  ;;  %v2984_v32 = vpop.f32.mrb[51].mxu0 }
 0x251   : > { %v3556_v59 = vadd.f32 %v11853_v26, %v3517_v35  ;;  %v3487_v21 = vmul.f32 %v13928_v41, %v2984_v32  ;;  %9318 = vmatprep.mubr.msk.f32.mxu1 %vm3612_vm4, %v3586_v62 }
 0x252   : > { %v3520_v49 = vadd.f32 %v3488_v18, %v11786_v34  ;;  %9319 = vmatmul.mubr.msk.f32.gmra.mrb[46].mxu1 %vm3612_vm4, %v3587_v12  ;;  %v3589_v20 = vmax.f32 %v3557_v19, 0.0 }
 0x253   : > { %v3588_v13 = vmax.f32 %v3556_v59, 0.0  ;;  %v3519_v29 = vadd.f32 %v3487_v21, %v11788_v27  ;;  %v9279_v22 = vpop.f32.mrb[52].mxu0 }
 0x254   : > { %v3559_v4 = vadd.f32 %v11853_v26, %v3520_v49  ;;  %v3490_v5 = vmul.f32 %v9279_v22, %v11671_v7  ;;  %v2994_v39 = vpop.f32.mrb[53].mxu0 }
 0x255   : > { %v3558_v44 = vadd.f32 %v11853_v26, %v3519_v29  ;;  %v3489_v24 = vmul.f32 %v11676_v28, %v2994_v39  ;;  %9321 = vmatprep.mubr.msk.f32.mxu1 %vm3612_vm4, %v3588_v13 }
 0x256   : > { %v3522_v34 = vadd.f32 %v3490_v5, %v11797_v42  ;;  %9322 = vmatmul.mubr.msk.f32.gmra.mrb[48].mxu1 %vm3612_vm4, %v3589_v20  ;;  %v3591_v50 = vmax.f32 %v3559_v4, 0.0 }
 0x257   : > { %v3590_v36 = vmax.f32 %v3558_v44, 0.0  ;;  %v3521_v27 = vadd.f32 %v3489_v24, %v11799_v14  ;;  %v9282_v6 = vpop.f32.mrb[54].mxu0 }
 0x258   : > { %v3561_v62 = vadd.f32 %v11853_v26, %v3522_v34  ;;  %v3492_v35 = vmul.f32 %v9282_v6, %v11709_v37  ;;  %v3004_v10 = vpop.f32.mrb[55].mxu0 }
 0x259   : > { %v3560_v12 = vadd.f32 %v11853_v26, %v3521_v27  ;;  %v3491_v19 = vmul.f32 %v11714_v48, %v3004_v10  ;;  %9324 = vmatprep.mubr.msk.f32.mxu1 %vm3612_vm4, %v3590_v36 }
 0x25a   : > { %v3524_v42 = vadd.f32 %v3492_v35, %v11805_v8  ;;  %9325 = vmatmul.mubr.msk.f32.gmra.mrb[50].mxu1 %vm3612_vm4, %v3591_v50  ;;  %v3593_v59 = vmax.f32 %v3561_v62, 0.0 }
 0x25b   : > { %v3592_v18 = vmax.f32 %v3560_v12, 0.0  ;;  %v3523_v14 = vadd.f32 %v3491_v19, %v11809_v40  ;;  %v9285_v32 = vpop.f32.mrb[56].mxu0  ;;  %v13929_v19 = vld [vmem:[#allocation62_spill] sm:$0xff] }
 0x25c   : > { %v3563_v21 = vadd.f32 %v11853_v26, %v3524_v42  ;;  %v3494_v49 = vmul.f32 %v9285_v32, %v11747_v63  ;;  %v3014_v13 = vpop.f32.mrb[57].mxu0 }
 0x25d   : > { %v3562_v29 = vadd.f32 %v11853_v26, %v3523_v14  ;;  %v3493_v22 = vmul.f32 %v11752_v15, %v3014_v13  ;;  %9327 = vmatprep.mubr.msk.f32.mxu1 %vm3612_vm4, %v3592_v18  ;;  %v11967_v18 = vpop.permute.xlu1 %3466 }
 0x25e   : > { %v3526_v8 = vadd.f32 %v3494_v49, %v11813_v47  ;;  %9328 = vmatmul.mubr.msk.f32.gmra.mrb[52].mxu1 %vm3612_vm4, %v3593_v59  ;;  %v3595_v5 = vmax.f32 %v3563_v21, 0.0  ;;  %13930 = vst [vmem:[#allocation65_spill] sm:$0xff] %v11967_v18  ;;  %v11970_v59 = vpop.permute.xlu0 %3461 }
 0x25f   : > { %v3594_v20 = vmax.f32 %v3562_v29, 0.0  ;;  %v3525_v40 = vadd.f32 %v3493_v22, %v11815_v11  ;;  %v9288_v4 = vpop.f32.mrb[58].mxu0  ;;  %13931 = vst [vmem:[#allocation66_spill] sm:$0xff] %v11970_v59 }
 0x260   : > { %v3565_v39 = vadd.f32 %v11853_v26, %v3526_v8  ;;  %v3496_v44 = vmul.f32 %v9288_v4, %v11790_v51  ;;  %v3024_v24 = vpop.f32.mrb[59].mxu0 }
 0x261   : > { %v3564_v34 = vadd.f32 %v11853_v26, %v3525_v40  ;;  %v3495_v36 = vmul.f32 %v11794_v23, %v3024_v24  ;;  %9330 = vmatprep.mubr.msk.f32.mxu1 %vm3612_vm4, %v3594_v20 }
 0x262   : > { %v3528_v47 = vadd.f32 %v3496_v44, %v11823_v31  ;;  %9331 = vmatmul.mubr.msk.f32.gmra.mrb[54].mxu1 %vm3612_vm4, %v3595_v5  ;;  %v3597_v50 = vmax.f32 %v3565_v39, 0.0 }
 0x263   : > { %v3596_v27 = vmax.f32 %v3564_v34, 0.0  ;;  %v3527_v11 = vadd.f32 %v3495_v36, %v11825_v30  ;;  %v9291_v6 = vpop.f32.mrb[60].mxu0  ;;  %v4045_v34 = vld [vmem:[%s13693_s7] sm:$0xff]  ;;  %v4046_v36 = vld [vmem:[%s13693_s7 + $0x8] sm:$0xff] }
 0x264   : > { %v3567_v62 = vadd.f32 %v11853_v26, %v3528_v47  ;;  %v3498_v35 = vmul.f32 %v9291_v6, %v11817_v3  ;;  %v3034_v10 = vpop.f32.mrb[61].mxu0  ;;  %v12004_v47 = vpack.c.bf16 %v4046_v36, %v4045_v34  ;;  %v7900_v36 = vld [vmem:[%s13693_s7 + $0x60] sm:$0xff] }
 0x265   : > { %v3566_v12 = vadd.f32 %v11853_v26, %v3527_v11  ;;  %v3497_v42 = vmul.f32 %v13929_v19, %v3034_v10  ;;  %9333 = vmatprep.mubr.msk.f32.mxu1 %vm3612_vm4, %v3596_v27  ;;  %v7934_v27 = vld [vmem:[%s13693_s7 + $0x10] sm:$0xff]  ;;  %v7935_v11 = vld [vmem:[%s13693_s7 + $0x18] sm:$0xff] }
 0x266   : > { %v3530_v31 = vadd.f32 %v3498_v35, %v11831_v57  ;;  %9334 = vmatmul.mubr.msk.f32.gmra.mrb[56].mxu1 %vm3612_vm4, %v3597_v50  ;;  %v3599_v21 = vmax.f32 %v3567_v62, 0.0  ;;  %9870 = vmatprep.subr.bf16.mxu1 %v12004_v47  ;;  %v9881_v6 = vpack.c.bf16 %v7935_v11, %v7934_v27  ;;  %v12016_v50 = vld [vmem:[%s13692_s6] ss:$0 sm:$0xff]  ;;  %v7901_v27 = vld [vmem:[%s13693_s7 + $0x68] sm:$0xff] }
 0x267   : > { %v3598_v30 = vmax.f32 %v3566_v12, 0.0  ;;  %v3529_v14 = vadd.f32 %v3497_v42, %v11835_v54  ;;  %v9294_v32 = vpop.f32.mrb[62].mxu0 }
 0x268   : > { %v3569_v49 = vadd.f32 %v11853_v26, %v3530_v31  ;;  %v3500_v13 = vmul.f32 %v9294_v32, %v11967_v18  ;;  %v3044_v29 = vpop.f32.mrb[63].mxu0 }
 0x269   : > { %v3568_v22 = vadd.f32 %v11853_v26, %v3529_v14  ;;  %v3499_v57 = vmul.f32 %v11970_v59, %v3044_v29  ;;  %9336 = vmatprep.mubr.msk.f32.mxu1 %vm3612_vm4, %v3598_v30 }
 0x26a   : > { %v3532_v8 = vadd.f32 %v3500_v13, %v11839_v61  ;;  %9337 = vmatmul.mubr.msk.f32.gmra.mrb[58].mxu1 %vm3612_vm4, %v3599_v21  ;;  %v3601_v40 = vmax.f32 %v3569_v49, 0.0  ;;  %v10315_v61 = vmov 0.0  }
 0x26b   : > { %v3600_v54 = vmax.f32 %v3568_v22, 0.0  ;;  %v3531_v20 = vadd.f32 %v3499_v57, %v11841_v0  ;;  %3970 = vst.msk [vmem:[#allocation2 + $0x18] sm:$0xff] %vm3966_vm5, %v10315_v61  ;;  %3968 = vst.msk [vmem:[#allocation2 + $0x8] sm:$0xff] %vm3966_vm5, %v10315_v61  ;;  %v7936_v0 = vld [vmem:[%s13693_s7 + $0x40] sm:$0xff] }
 0x26c   : > { %v3571_v4 = vadd.f32 %v11853_v26, %v3532_v8  ;;  %3969 = vst.msk [vmem:[#allocation2 + $0x10] sm:$0xff] %vm3966_vm5, %v10315_v61  ;;  %3971 = vst.msk [vmem:[#allocation2 + $0x120] sm:$0xff] %vm3966_vm5, %v10315_v61 }
 0x26d   : > { %v3570_v5 = vadd.f32 %v11853_v26, %v3531_v20  ;;  %9339 = vmatprep.mubr.msk.f32.mxu1 %vm3612_vm4, %v3600_v54  ;;  %3972 = vst.msk [vmem:[#allocation2 + $0x128] sm:$0xff] %vm3966_vm5, %v10315_v61  ;;  %3973 = vst.msk [vmem:[#allocation2 + $0x130] sm:$0xff] %vm3966_vm5, %v10315_v61  ;;  %v7937_v26 = vld [vmem:[%s13693_s7 + $0x48] sm:$0xff]  ;;  %v8002_v20 = vld [vmem:[%s13693_s7 + $0x70] sm:$0xff] }
 0x26e   : > { %9340 = vmatmul.mubr.msk.f32.gmra.mrb[60].mxu1 %vm3612_vm4, %v3601_v40  ;;  %v3603_v44 = vmax.f32 %v3571_v4, 0.0  ;;  %v9877_v24 = vpack.c.bf16 %v7937_v26, %v7936_v0  ;;  %v8003_v40 = vld [vmem:[%s13693_s7 + $0x78] sm:$0xff] }
 0x26f   : > { %v3602_v39 = vmax.f32 %v3570_v5, 0.0  ;;  %v12050_v11 = vpack.c.bf16 %v8003_v40, %v8002_v20 }
 0x270   : > { %9878 = vmatprep.subr.bf16.mxu0 %v9877_v24 }
 0x271   : > { %9342 = vmatprep.mubr.msk.f32.mxu1 %vm3612_vm4, %v3602_v39  ;;  %9880 = vmatpush3.bf16.msra.mxu0 %v9877_v24 }
 0x272   : > { %9343 = vmatmul.mubr.msk.f32.gmra.mrb[62].mxu1 %vm3612_vm4, %v3603_v44  ;;  %9882 = vmatprep.subr.bf16.mxu0 %v9881_v6  ;;  %v12026_v8 = vld [vmem:[#allocation2 + $0x18] sm:$0xff] }
 0x273   : > { %v13777_v61 = vrot.slane %v12026_v8, 7 }
 0x309   : > { %v9299_v62 = vpop.f32.mrb[32].mxu1 }
 0x30a   : > { %v3781_v35 = vadd.f32 %v9299_v62, %v12016_v50  ;;  %v3775_v10 = vpop.f32.mrb[33].mxu1 }
 0x30b   : > { %v3776_v12 = vadd.f32 %v12016_v50, %v3775_v10 }
 0x30c   : > { %v3935_v42 = vmax.f32 %v3781_v35, 0.0 }
 0x30d   : > { %v3934_v31 = vmax.f32 %v3776_v12, 0.0  ;;  %v9302_v30 = vpop.f32.mrb[34].mxu1 }
 0x30e   : > { %3976 = vst.msk [vmem:[#allocation2 + $0x28] sm:$0xff] %vm3966_vm5, %v3935_v42  ;;  %v3791_v14 = vadd.f32 %v9302_v30, %v12016_v50  ;;  %v3785_v32 = vpop.f32.mrb[35].mxu1 }
 0x30f   : > { %3975 = vst.msk [vmem:[#allocation2 + $0x20] sm:$0xff] %vm3966_vm5, %v3934_v31  ;;  %v3786_v21 = vadd.f32 %v12016_v50, %v3785_v32  ;;  %v12069_v32 = vpack.c.bf16 %v7901_v27, %v7900_v36 }
 0x310   : > { %v3937_v49 = vmax.f32 %v3791_v14, 0.0 }
 0x311   : > { %v3936_v13 = vmax.f32 %v3786_v21, 0.0  ;;  %v9305_v29 = vpop.f32.mrb[36].mxu1 }
 0x312   : > { %3978 = vst.msk [vmem:[#allocation2 + $0x38] sm:$0xff] %vm3966_vm5, %v3937_v49  ;;  %v3801_v22 = vadd.f32 %v9305_v29, %v12016_v50  ;;  %v3795_v57 = vpop.f32.mrb[37].mxu1 }
 0x313   : > { %3977 = vst.msk [vmem:[#allocation2 + $0x30] sm:$0xff] %vm3966_vm5, %v3936_v13  ;;  %v3796_v54 = vadd.f32 %v12016_v50, %v3795_v57 }
 0x314   : > { %v3939_v4 = vmax.f32 %v3801_v22, 0.0 }
 0x315   : > { %v3938_v5 = vmax.f32 %v3796_v54, 0.0  ;;  %v9308_v39 = vpop.f32.mrb[38].mxu1  ;;  %v12036_v44 = vld [vmem:[#allocation2 + $0x28] sm:$0xff] }
 0x316   : > { %13932 = vst [vmem:[#allocation67_spill] sm:$0xff] %v12036_v44  ;;  %3980 = vst.msk [vmem:[#allocation2 + $0x48] sm:$0xff] %vm3966_vm5, %v3939_v4  ;;  %v3811_v0 = vadd.f32 %v9308_v39, %v12016_v50  ;;  %v3805_v26 = vpop.f32.mrb[39].mxu1  ;;  %v12041_v24 = vld [vmem:[#allocation2 + $0x20] sm:$0xff]  ;;  %v4086_v34 = vrot.slane %v12036_v44, 7 }
 0x317   : > { %3979 = vst.msk [vmem:[#allocation2 + $0x40] sm:$0xff] %vm3966_vm5, %v3938_v5  ;;  %v3806_v62 = vadd.f32 %v12016_v50, %v3805_v26  ;;  %v4084_v35 = vrot.slane %v12041_v24, 7  ;;  %9505 = vmatprep.mubr.msk.f32.mxu0 %vm3966_vm5, %v12041_v24 }
 0x318   : > { %v3941_v10 = vmax.f32 %v3811_v0, 0.0  ;;  %9506 = vmatmul.mubr.msk.f32.vlgmr.msra.gmra.mrb[64].mxu0 %vm3966_vm5, %v12036_v44 }
 0x319   : > { %v3940_v12 = vmax.f32 %v3806_v62, 0.0  ;;  %v9311_v42 = vpop.f32.mrb[40].mxu1  ;;  %v12062_v31 = vsel %vm552_vm1, %v13777_v61, %v4084_v35  ;;  %v12065_v30 = vsel %vm552_vm1, %v4084_v35, %v4086_v34  ;;  %v12067_v14 = vld [vmem:[#allocation2 + $0x38] sm:$0xff]  ;;  %9884 = vmatpush3.bf16.msra.mxu0 %v9881_v6 }
 0x31a   : > { %3982 = vst.msk [vmem:[#allocation2 + $0x58] sm:$0xff] %vm3966_vm5, %v3941_v10  ;;  %v3821_v21 = vadd.f32 %v9311_v42, %v12016_v50  ;;  %v3815_v49 = vpop.f32.mrb[41].mxu1  ;;  %9349 = vmatprep.mubr.msk.f32.mxu1 %vm3966_vm5, %v12062_v31  ;;  %v12075_v13 = vld [vmem:[#allocation2 + $0x30] sm:$0xff]  ;;  %v4090_v29 = vrot.slane %v12067_v14, 7  ;;  %9886 = vmatprep.subr.bf16.mxu0 %v12050_v11 }
 0x31b   : > { %3981 = vst.msk [vmem:[#allocation2 + $0x50] sm:$0xff] %vm3966_vm5, %v3940_v12  ;;  %v3816_v6 = vadd.f32 %v12016_v50, %v3815_v49  ;;  %9350 = vmatmul.mubr.msk.f32.vlgmr.msra.gmra.mrb[64].mxu1 %vm3966_vm5, %v12065_v30  ;;  %9508 = vmatprep.mubr.msk.f32.mxu0 %vm3966_vm5, %v12075_v13  ;;  %v4088_v22 = vrot.slane %v12075_v13, 7 }
 0x31c   : > { %v3943_v57 = vmax.f32 %v3821_v21, 0.0  ;;  %9872 = vmatpush3.bf16.msra.mxu1 %v12004_v47  ;;  %9509 = vmatmul.mubr.msk.f32.gmra.mrb[66].mxu0 %vm3966_vm5, %v12067_v14 }
 0x31d   : > { %v3942_v54 = vmax.f32 %v3816_v6, 0.0  ;;  %v9314_v20 = vpop.f32.mrb[42].mxu1  ;;  %v12090_v40 = vsel %vm552_vm1, %v4086_v34, %v4088_v22  ;;  %v12093_v4 = vsel %vm552_vm1, %v4088_v22, %v4090_v29  ;;  %v12095_v5 = vld [vmem:[#allocation2 + $0x48] sm:$0xff]  ;;  %9874 = vmatprep.subr.bf16.mxu1 %v12069_v32 }
 0x31e   : > { %3984 = vst.msk [vmem:[#allocation2 + $0x68] sm:$0xff] %vm3966_vm5, %v3943_v57  ;;  %v3831_v39 = vadd.f32 %v9314_v20, %v12016_v50  ;;  %v3825_v47 = vpop.f32.mrb[43].mxu1  ;;  %9352 = vmatprep.mubr.msk.f32.mxu1 %vm3966_vm5, %v12090_v40  ;;  %v12102_v0 = vld [vmem:[#allocation2 + $0x40] sm:$0xff]  ;;  %v4094_v26 = vrot.slane %v12095_v5, 7 }
 0x31f   : > { %3983 = vst.msk [vmem:[#allocation2 + $0x60] sm:$0xff] %vm3966_vm5, %v3942_v54  ;;  %v3826_v34 = vadd.f32 %v12016_v50, %v3825_v47  ;;  %9353 = vmatmul.mubr.msk.f32.gmra.mrb[66].mxu1 %vm3966_vm5, %v12093_v4  ;;  %9511 = vmatprep.mubr.msk.f32.mxu0 %vm3966_vm5, %v12102_v0  ;;  %v4092_v36 = vrot.slane %v12102_v0, 7 }
 0x320   : > { %v3945_v27 = vmax.f32 %v3831_v39, 0.0  ;;  %9512 = vmatmul.mubr.msk.f32.gmra.mrb[68].mxu0 %vm3966_vm5, %v12095_v5 }
 0x321   : > { %v3944_v62 = vmax.f32 %v3826_v34, 0.0  ;;  %v9317_v35 = vpop.f32.mrb[44].mxu1  ;;  %v12115_v10 = vsel %vm552_vm1, %v4090_v29, %v4092_v36  ;;  %v12118_v12 = vsel %vm552_vm1, %v4092_v36, %v4094_v26  ;;  %v12120_v42 = vld [vmem:[#allocation2 + $0x58] sm:$0xff] }
 0x322   : > { %3986 = vst.msk [vmem:[#allocation2 + $0x78] sm:$0xff] %vm3966_vm5, %v3945_v27  ;;  %v3841_v21 = vadd.f32 %v9317_v35, %v12016_v50  ;;  %v3835_v49 = vpop.f32.mrb[45].mxu1  ;;  %9355 = vmatprep.mubr.msk.f32.mxu1 %vm3966_vm5, %v12115_v10  ;;  %v12126_v6 = vld [vmem:[#allocation2 + $0x50] sm:$0xff]  ;;  %v4098_v22 = vrot.slane %v12120_v42, 7 }
 0x323   : > { %3985 = vst.msk [vmem:[#allocation2 + $0x70] sm:$0xff] %vm3966_vm5, %v3944_v62  ;;  %v3836_v29 = vadd.f32 %v12016_v50, %v3835_v49  ;;  %9356 = vmatmul.mubr.msk.f32.gmra.mrb[68].mxu1 %vm3966_vm5, %v12118_v12  ;;  %9514 = vmatprep.mubr.msk.f32.mxu0 %vm3966_vm5, %v12126_v6  ;;  %v4096_v57 = vrot.slane %v12126_v6, 7 }
 0x324   : > { %v3947_v54 = vmax.f32 %v3841_v21, 0.0  ;;  %9515 = vmatmul.mubr.msk.f32.gmra.mrb[70].mxu0 %vm3966_vm5, %v12120_v42 }
 0x325   : > { %v3946_v20 = vmax.f32 %v3836_v29, 0.0  ;;  %v9320_v39 = vpop.f32.mrb[46].mxu1  ;;  %v12139_v47 = vsel %vm552_vm1, %v4094_v26, %v4096_v57  ;;  %v12142_v34 = vsel %vm552_vm1, %v4096_v57, %v4098_v22  ;;  %v12144_v36 = vld [vmem:[#allocation2 + $0x68] sm:$0xff] }
 0x326   : > { %3988 = vst.msk [vmem:[#allocation2 + $0x88] sm:$0xff] %vm3966_vm5, %v3947_v54  ;;  %v3851_v27 = vadd.f32 %v9320_v39, %v12016_v50  ;;  %v3845_v62 = vpop.f32.mrb[47].mxu1  ;;  %9358 = vmatprep.mubr.msk.f32.mxu1 %vm3966_vm5, %v12139_v47  ;;  %v12150_v35 = vld [vmem:[#allocation2 + $0x60] sm:$0xff]  ;;  %v4102_v21 = vrot.slane %v12144_v36, 7 }
 0x327   : > { %3987 = vst.msk [vmem:[#allocation2 + $0x80] sm:$0xff] %vm3966_vm5, %v3946_v20  ;;  %v3846_v26 = vadd.f32 %v12016_v50, %v3845_v62  ;;  %9359 = vmatmul.mubr.msk.f32.gmra.mrb[70].mxu1 %vm3966_vm5, %v12142_v34  ;;  %9517 = vmatprep.mubr.msk.f32.mxu0 %vm3966_vm5, %v12150_v35  ;;  %v4100_v49 = vrot.slane %v12150_v35, 7 }
 0x328   : > { %v3949_v29 = vmax.f32 %v3851_v27, 0.0  ;;  %9518 = vmatmul.mubr.msk.f32.gmra.mrb[72].mxu0 %vm3966_vm5, %v12144_v36 }
 0x329   : > { %v3948_v57 = vmax.f32 %v3846_v26, 0.0  ;;  %v9323_v54 = vpop.f32.mrb[48].mxu1  ;;  %v12163_v39 = vsel %vm552_vm1, %v4098_v22, %v4100_v49  ;;  %v12166_v20 = vsel %vm552_vm1, %v4100_v49, %v4102_v21  ;;  %v12168_v62 = vld [vmem:[#allocation2 + $0x78] sm:$0xff] }
 0x32a   : > { %3990 = vst.msk [vmem:[#allocation2 + $0x98] sm:$0xff] %vm3966_vm5, %v3949_v29  ;;  %v3861_v61 = vadd.f32 %v9323_v54, %v12016_v50  ;;  %v3855_v59 = vpop.f32.mrb[49].mxu1  ;;  %9361 = vmatprep.mubr.msk.f32.mxu1 %vm3966_vm5, %v12163_v39  ;;  %v12174_v27 = vld [vmem:[#allocation2 + $0x70] sm:$0xff]  ;;  %v4106_v26 = vrot.slane %v12168_v62, 7 }
 0x32b   : > { %3989 = vst.msk [vmem:[#allocation2 + $0x90] sm:$0xff] %vm3966_vm5, %v3948_v57  ;;  %v3856_v22 = vadd.f32 %v12016_v50, %v3855_v59  ;;  %9362 = vmatmul.mubr.msk.f32.gmra.mrb[72].mxu1 %vm3966_vm5, %v12166_v20  ;;  %9520 = vmatprep.mubr.msk.f32.mxu0 %vm3966_vm5, %v12174_v27  ;;  %v4104_v49 = vrot.slane %v12174_v27, 7 }
 0x32c   : > { %v3951_v29 = vmax.f32 %v3861_v61, 0.0  ;;  %9521 = vmatmul.mubr.msk.f32.gmra.mrb[74].mxu0 %vm3966_vm5, %v12168_v62 }
 0x32d   : > { %v3950_v54 = vmax.f32 %v3856_v22, 0.0  ;;  %v9326_v18 = vpop.f32.mrb[50].mxu1  ;;  %v12187_v19 = vsel %vm552_vm1, %v4102_v21, %v4104_v49  ;;  %v12190_v57 = vsel %vm552_vm1, %v4104_v49, %v4106_v26  ;;  %v12192_v59 = vld [vmem:[#allocation2 + $0x88] sm:$0xff] }
 0x32e   : > { %3992 = vst.msk [vmem:[#allocation2 + $0xa8] sm:$0xff] %vm3966_vm5, %v3951_v29  ;;  %v3871_v3 = vadd.f32 %v9326_v18, %v12016_v50  ;;  %v3865_v23 = vpop.f32.mrb[51].mxu1  ;;  %9364 = vmatprep.mubr.msk.f32.mxu1 %vm3966_vm5, %v12187_v19  ;;  %v12198_v61 = vld [vmem:[#allocation2 + $0x80] sm:$0xff]  ;;  %v4110_v22 = vrot.slane %v12192_v59, 7 }
 0x32f   : > { %3991 = vst.msk [vmem:[#allocation2 + $0xa0] sm:$0xff] %vm3966_vm5, %v3950_v54  ;;  %v3866_v21 = vadd.f32 %v12016_v50, %v3865_v23  ;;  %9365 = vmatmul.mubr.msk.f32.gmra.mrb[74].mxu1 %vm3966_vm5, %v12190_v57  ;;  %9523 = vmatprep.mubr.msk.f32.mxu0 %vm3966_vm5, %v12198_v61  ;;  %v4108_v18 = vrot.slane %v12198_v61, 7 }
 0x330   : > { %v3953_v49 = vmax.f32 %v3871_v3, 0.0  ;;  %9524 = vmatmul.mubr.msk.f32.gmra.mrb[76].mxu0 %vm3966_vm5, %v12192_v59 }
 0x331   : > { %v3952_v29 = vmax.f32 %v3866_v21, 0.0  ;;  %v9329_v51 = vpop.f32.mrb[52].mxu1  ;;  %v12211_v15 = vsel %vm552_vm1, %v4106_v26, %v4108_v18  ;;  %v12214_v54 = vsel %vm552_vm1, %v4108_v18, %v4110_v22  ;;  %v12216_v23 = vld [vmem:[#allocation2 + $0x98] sm:$0xff] }
 0x332   : > { %3994 = vst.msk [vmem:[#allocation2 + $0xb8] sm:$0xff] %vm3966_vm5, %v3953_v49  ;;  %v3881_v63 = vadd.f32 %v9329_v51, %v12016_v50  ;;  %v3875_v48 = vpop.f32.mrb[53].mxu1  ;;  %9367 = vmatprep.mubr.msk.f32.mxu1 %vm3966_vm5, %v12211_v15  ;;  %v12222_v3 = vld [vmem:[#allocation2 + $0x90] sm:$0xff]  ;;  %v4114_v21 = vrot.slane %v12216_v23, 7 }
 0x333   : > { %3993 = vst.msk [vmem:[#allocation2 + $0xb0] sm:$0xff] %vm3966_vm5, %v3952_v29  ;;  %v3876_v26 = vadd.f32 %v12016_v50, %v3875_v48  ;;  %9368 = vmatmul.mubr.msk.f32.gmra.mrb[76].mxu1 %vm3966_vm5, %v12214_v54  ;;  %9526 = vmatprep.mubr.msk.f32.mxu0 %vm3966_vm5, %v12222_v3  ;;  %v4112_v51 = vrot.slane %v12222_v3, 7 }
 0x334   : > { %v3955_v18 = vmax.f32 %v3881_v63, 0.0  ;;  %9527 = vmatmul.mubr.msk.f32.gmra.mrb[78].mxu0 %vm3966_vm5, %v12216_v23 }
 0x335   : > { %v3954_v49 = vmax.f32 %v3876_v26, 0.0  ;;  %v9332_v37 = vpop.f32.mrb[54].mxu1  ;;  %v12235_v28 = vsel %vm552_vm1, %v4110_v22, %v4112_v51  ;;  %v12238_v29 = vsel %vm552_vm1, %v4112_v51, %v4114_v21  ;;  %v12240_v48 = vld [vmem:[#allocation2 + $0xa8] sm:$0xff] }
 0x336   : > { %3996 = vst.msk [vmem:[#allocation2 + $0xc8] sm:$0xff] %vm3966_vm5, %v3955_v18  ;;  %v3891_v7 = vadd.f32 %v9332_v37, %v12016_v50  ;;  %v3885_v41 = vpop.f32.mrb[55].mxu1  ;;  %9370 = vmatprep.mubr.msk.f32.mxu1 %vm3966_vm5, %v12235_v28  ;;  %v12246_v63 = vld [vmem:[#allocation2 + $0xa0] sm:$0xff]  ;;  %v4118_v26 = vrot.slane %v12240_v48, 7 }
 0x337   : > { %3995 = vst.msk [vmem:[#allocation2 + $0xc0] sm:$0xff] %vm3966_vm5, %v3954_v49  ;;  %v3886_v22 = vadd.f32 %v12016_v50, %v3885_v41  ;;  %9371 = vmatmul.mubr.msk.f32.gmra.mrb[78].mxu1 %vm3966_vm5, %v12238_v29  ;;  %9529 = vmatprep.mubr.msk.f32.mxu0 %vm3966_vm5, %v12246_v63  ;;  %v4116_v37 = vrot.slane %v12246_v63, 7 }
 0x338   : > { %v3957_v51 = vmax.f32 %v3891_v7, 0.0  ;;  %9530 = vmatmul.mubr.msk.f32.gmra.mrb[80].mxu0 %vm3966_vm5, %v12240_v48 }
 0x339   : > { %v3956_v18 = vmax.f32 %v3886_v22, 0.0  ;;  %v9335_v2 = vpop.f32.mrb[56].mxu1  ;;  %v12259_v52 = vsel %vm552_vm1, %v4114_v21, %v4116_v37  ;;  %v12262_v49 = vsel %vm552_vm1, %v4116_v37, %v4118_v26  ;;  %v12264_v41 = vld [vmem:[#allocation2 + $0xb8] sm:$0xff] }
 0x33a   : > { %3998 = vst.msk [vmem:[#allocation2 + $0xd8] sm:$0xff] %vm3966_vm5, %v3957_v51  ;;  %v3901_v56 = vadd.f32 %v9335_v2, %v12016_v50  ;;  %v3895_v43 = vpop.f32.mrb[57].mxu1  ;;  %9373 = vmatprep.mubr.msk.f32.mxu1 %vm3966_vm5, %v12259_v52  ;;  %v12270_v7 = vld [vmem:[#allocation2 + $0xb0] sm:$0xff]  ;;  %v4122_v22 = vrot.slane %v12264_v41, 7 }
 0x33b   : > { %3997 = vst.msk [vmem:[#allocation2 + $0xd0] sm:$0xff] %vm3966_vm5, %v3956_v18  ;;  %v3896_v21 = vadd.f32 %v12016_v50, %v3895_v43  ;;  %9374 = vmatmul.mubr.msk.f32.gmra.mrb[80].mxu1 %vm3966_vm5, %v12262_v49  ;;  %9532 = vmatprep.mubr.msk.f32.mxu0 %vm3966_vm5, %v12270_v7  ;;  %v4120_v2 = vrot.slane %v12270_v7, 7 }
 0x33c   : > { %v3959_v37 = vmax.f32 %v3901_v56, 0.0  ;;  %9533 = vmatmul.mubr.msk.f32.gmra.mrb[82].mxu0 %vm3966_vm5, %v12264_v41 }
 0x33d   : > { %v3958_v51 = vmax.f32 %v3896_v21, 0.0  ;;  %v9338_v38 = vpop.f32.mrb[58].mxu1  ;;  %v12283_v45 = vsel %vm552_vm1, %v4118_v26, %v4120_v2  ;;  %v12286_v18 = vsel %vm552_vm1, %v4120_v2, %v4122_v22  ;;  %v12288_v43 = vld [vmem:[#allocation2 + $0xc8] sm:$0xff] }
 0x33e   : > { %4000 = vst.msk [vmem:[#allocation2 + $0xe8] sm:$0xff] %vm3966_vm5, %v3959_v37  ;;  %v3911_v58 = vadd.f32 %v9338_v38, %v12016_v50  ;;  %v3905_v9 = vpop.f32.mrb[59].mxu1  ;;  %9376 = vmatprep.mubr.msk.f32.mxu1 %vm3966_vm5, %v12283_v45  ;;  %v12294_v56 = vld [vmem:[#allocation2 + $0xc0] sm:$0xff]  ;;  %v4126_v21 = vrot.slane %v12288_v43, 7 }
 0x33f   : > { %3999 = vst.msk [vmem:[#allocation2 + $0xe0] sm:$0xff] %vm3966_vm5, %v3958_v51  ;;  %v3906_v26 = vadd.f32 %v12016_v50, %v3905_v9  ;;  %9377 = vmatmul.mubr.msk.f32.gmra.mrb[82].mxu1 %vm3966_vm5, %v12286_v18  ;;  %9535 = vmatprep.mubr.msk.f32.mxu0 %vm3966_vm5, %v12294_v56  ;;  %v4124_v38 = vrot.slane %v12294_v56, 7 }
 0x340   : > { %v3961_v2 = vmax.f32 %v3911_v58, 0.0  ;;  %9536 = vmatmul.mubr.msk.f32.gmra.mrb[84].mxu0 %vm3966_vm5, %v12288_v43 }
 0x341   : > { %v3960_v37 = vmax.f32 %v3906_v26, 0.0  ;;  %v9341_v33 = vpop.f32.mrb[60].mxu1  ;;  %v12307_v46 = vsel %vm552_vm1, %v4122_v22, %v4124_v38  ;;  %v12310_v51 = vsel %vm552_vm1, %v4124_v38, %v4126_v21  ;;  %v12312_v9 = vld [vmem:[#allocation2 + $0xd8] sm:$0xff] }
 0x342   : > { %4002 = vst.msk [vmem:[#allocation2 + $0xf8] sm:$0xff] %vm3966_vm5, %v3961_v2  ;;  %v3921_v17 = vadd.f32 %v9341_v33, %v12016_v50  ;;  %v3915_v1 = vpop.f32.mrb[61].mxu1  ;;  %9379 = vmatprep.mubr.msk.f32.mxu1 %vm3966_vm5, %v12307_v46  ;;  %v12318_v58 = vld [vmem:[#allocation2 + $0xd0] sm:$0xff]  ;;  %v4130_v26 = vrot.slane %v12312_v9, 7 }
 0x343   : > { %4001 = vst.msk [vmem:[#allocation2 + $0xf0] sm:$0xff] %vm3966_vm5, %v3960_v37  ;;  %v3916_v22 = vadd.f32 %v12016_v50, %v3915_v1  ;;  %9380 = vmatmul.mubr.msk.f32.gmra.mrb[84].mxu1 %vm3966_vm5, %v12310_v51  ;;  %9538 = vmatprep.mubr.msk.f32.mxu0 %vm3966_vm5, %v12318_v58  ;;  %v4128_v33 = vrot.slane %v12318_v58, 7 }
 0x344   : > { %v3963_v38 = vmax.f32 %v3921_v17, 0.0  ;;  %9539 = vmatmul.mubr.msk.f32.gmra.mrb[86].mxu0 %vm3966_vm5, %v12312_v9 }
 0x345   : > { %v3962_v2 = vmax.f32 %v3916_v22, 0.0  ;;  %v9344_v16 = vpop.f32.mrb[62].mxu1  ;;  %v12331_v60 = vsel %vm552_vm1, %v4126_v21, %v4128_v33  ;;  %v12334_v37 = vsel %vm552_vm1, %v4128_v33, %v4130_v26  ;;  %v12336_v1 = vld [vmem:[#allocation2 + $0xe8] sm:$0xff] }
 0x346   : > { %13933 = vst [vmem:[#allocation68_spill] sm:$0xff] %v12334_v37  ;;  %13934 = vst [vmem:[#allocation69_spill] sm:$0xff] %v12336_v1  ;;  %v3931_v53 = vadd.f32 %v9344_v16, %v12016_v50  ;;  %v3925_v55 = vpop.f32.mrb[63].mxu1  ;;  %9382 = vmatprep.mubr.msk.f32.mxu1 %vm3966_vm5, %v12331_v60  ;;  %v12342_v17 = vld [vmem:[#allocation2 + $0xe0] sm:$0xff]  ;;  %v4134_v22 = vrot.slane %v12336_v1, 7 }
 0x347   : > { %4004 = vst.msk [vmem:[#allocation2 + $0x108] sm:$0xff] %vm3966_vm5, %v3963_v38  ;;  %4003 = vst.msk [vmem:[#allocation2 + $0x100] sm:$0xff] %vm3966_vm5, %v3962_v2  ;;  %v3926_v21 = vadd.f32 %v12016_v50, %v3925_v55  ;;  %9383 = vmatmul.mubr.msk.f32.gmra.mrb[86].mxu1 %vm3966_vm5, %v12334_v37  ;;  %9541 = vmatprep.mubr.msk.f32.mxu0 %vm3966_vm5, %v12342_v17  ;;  %v4132_v16 = vrot.slane %v12342_v17, 7 }
 0x348   : > { %v3965_v33 = vmax.f32 %v3931_v53, 0.0  ;;  %9542 = vmatmul.mubr.msk.f32.gmra.mrb[88].mxu0 %vm3966_vm5, %v12336_v1  ;;  %v12389_v1 = vld [vmem:[#allocation2 + $0x10] sm:$0xff] }
 0x349   : > { %v3964_v38 = vmax.f32 %v3926_v21, 0.0  ;;  %v12355_v25 = vsel %vm552_vm1, %v4130_v26, %v4132_v16  ;;  %v12358_v2 = vsel %vm552_vm1, %v4132_v16, %v4134_v22  ;;  %v12360_v55 = vld [vmem:[#allocation2 + $0xf8] sm:$0xff]  ;;  %13942 = vst [vmem:[#allocation77_spill] sm:$0xff] %v12389_v1 }
 0x34a   : > { %13935 = vst [vmem:[#allocation70_spill] sm:$0xff] %v12355_v25  ;;  %13936 = vst [vmem:[#allocation71_spill] sm:$0xff] %v12358_v2  ;;  %9385 = vmatprep.mubr.msk.f32.mxu1 %vm3966_vm5, %v12355_v25  ;;  %v12365_v50 = vld [vmem:[#allocation2 + $0xf0] sm:$0xff]  ;;  %v4138_v53 = vrot.slane %v12360_v55, 7  ;;  %v4440_v25 = vrot.slane %v12389_v1, 7 }
 0x34b   : > { %13937 = vst [vmem:[#allocation72_spill] sm:$0xff] %v12360_v55  ;;  %4006 = vst.msk [vmem:[#allocation2 + $0x118] sm:$0xff] %vm3966_vm5, %v3965_v33  ;;  %9386 = vmatmul.mubr.msk.f32.gmra.mrb[88].mxu1 %vm3966_vm5, %v12358_v2  ;;  %9544 = vmatprep.mubr.msk.f32.mxu0 %vm3966_vm5, %v12365_v50  ;;  %v4136_v26 = vrot.slane %v12365_v50, 7 }
 0x34c   : > { %13938 = vst [vmem:[#allocation73_spill] sm:$0xff] %v12365_v50  ;;  %4005 = vst.msk [vmem:[#allocation2 + $0x110] sm:$0xff] %vm3966_vm5, %v3964_v38  ;;  %9545 = vmatmul.mubr.msk.f32.gmra.mrb[90].mxu0 %vm3966_vm5, %v12360_v55  ;;  %v4007_v50 = vld [vmem:[#allocation2 + $0x8] sm:$0xff] }
 0x34d   : > { %v12377_v21 = vsel %vm552_vm1, %v4134_v22, %v4136_v26  ;;  %v12380_v16 = vsel %vm552_vm1, %v4136_v26, %v4138_v53  ;;  %v4439_v37 = vrot.slane %v4007_v50, 7 }
 0x34e   : > { %13939 = vst [vmem:[#allocation74_spill] sm:$0xff] %v12377_v21  ;;  %13940 = vst [vmem:[#allocation75_spill] sm:$0xff] %v12380_v16  ;;  %v12382_v33 = vld [vmem:[#allocation2 + $0x108] sm:$0xff]  ;;  %9388 = vmatprep.mubr.msk.f32.mxu1 %vm3966_vm5, %v12377_v21  ;;  %v12386_v38 = vld [vmem:[#allocation2 + $0x100] sm:$0xff] }
 0x34f   : > { %13941 = vst [vmem:[#allocation76_spill] sm:$0xff] %v12386_v38  ;;  %v4142_v2 = vrot.slane %v12382_v33, 7  ;;  %9389 = vmatmul.mubr.msk.f32.gmra.mrb[90].mxu1 %vm3966_vm5, %v12380_v16  ;;  %9547 = vmatprep.mubr.msk.f32.mxu0 %vm3966_vm5, %v12386_v38  ;;  %v4140_v22 = vrot.slane %v12386_v38, 7 }
 0x350   : > { %9548 = vmatmul.mubr.msk.f32.gmra.mrb[92].mxu0 %vm3966_vm5, %v12382_v33 }
 0x351   : > { %v12399_v26 = vsel %vm552_vm1, %v4138_v53, %v4140_v22  ;;  %v12402_v55 = vsel %vm552_vm1, %v4140_v22, %v4142_v2 }
 0x352   : > { %13943 = vst [vmem:[#allocation78_spill] sm:$0xff] %v12402_v55  ;;  %v12404_v21 = vld [vmem:[#allocation2 + $0x118] sm:$0xff]  ;;  %9391 = vmatprep.mubr.msk.f32.mxu1 %vm3966_vm5, %v12399_v26 }
 0x353   : > { %v12409_v16 = vld [vmem:[#allocation2 + $0x110] sm:$0xff]  ;;  %v13818_v38 = vrot.slane %v12404_v21, 7  ;;  %9392 = vmatmul.mubr.msk.f32.gmra.mrb[92].mxu1 %vm3966_vm5, %v12402_v55  ;;  %v4441_v55 = vsel %vm552_vm1, %v4439_v37, %v4440_v25  ;;  %v13945_v37 = vrot.slane %v12026_v8, 7 }
 0x354   : > { %13944 = vst [vmem:[#allocation79_spill] sm:$0xff] %v12409_v16  ;;  %v4144_v53 = vrot.slane %v12409_v16, 7  ;;  %9550 = vmatprep.mubr.msk.f32.mxu0 %vm3966_vm5, %v12409_v16  ;;  %v8038_v16 = vld [vmem:[%s13693_s7 + $0x50] sm:$0xff] }
 0x355   : > { %9551 = vmatmul.mubr.msk.f32.gmra.mrb[94].mxu0 %vm3966_vm5, %v12404_v21 }
 0x356   : > { %v12420_v50 = vsel %vm552_vm1, %v4142_v2, %v4144_v53  ;;  %v12425_v22 = vsel %vm552_vm1, %v4144_v53, %v13818_v38  ;;  %9557 = vmatprep.mubr.msk.f32.mxu0 %vm3966_vm5, %v12389_v1  ;;  %v8039_v2 = vld [vmem:[%s13693_s7 + $0x58] sm:$0xff]  ;;  %v4442_v53 = vsel %vm552_vm1, %v4440_v25, %v13945_v37  ;;  %v13946_v25 = vld [vmem:[#allocation68_spill] sm:$0xff]  ;;  %v8036_v37 = vld [vmem:[%s13693_s7 + $0x20] sm:$0xff] }
 0x357   : > { %9394 = vmatprep.mubr.msk.f32.mxu1 %vm3966_vm5, %v12420_v50  ;;  %v12449_v38 = vpack.c.bf16 %v8039_v2, %v8038_v16  ;;  %v13953_v16 = vld [vmem:[#allocation76_spill] sm:$0xff]  ;;  %v13954_v2 = vld [vmem:[#allocation75_spill] sm:$0xff] }
 0x358   : > { %9395 = vmatmul.mubr.msk.f32.gmra.mrb[94].mxu1 %vm3966_vm5, %v12425_v22 }
 0x359   : > { %9558 = vmatmul.mubr.msk.f32.vlgmr.msra.gmra.mrb[64].mxu0 %vm3966_vm5, %v12026_v8  ;;  %9401 = vmatprep.mubr.msk.f32.mxu1 %vm3966_vm5, %v4441_v55  ;;  %v13947_v8 = vld [vmem:[#allocation70_spill] sm:$0xff]  ;;  %v13952_v55 = vld [vmem:[#allocation72_spill] sm:$0xff] }
 0x35a   : > { %9560 = vmatprep.mubr.msk.f32.mxu0 %vm3966_vm5, %v12041_v24  ;;  %9888 = vmatpush3.bf16.msra.mxu0 %v12050_v11  ;;  %v13948_v11 = vld [vmem:[#allocation69_spill] sm:$0xff]  ;;  %v13955_v1 = vld [vmem:[#allocation78_spill] sm:$0xff] }
 0x35c   : > { %9402 = vmatmul.mubr.msk.f32.vlgmr.msra.gmra.mrb[64].mxu1 %vm3966_vm5, %v4442_v53  ;;  %v8037_v53 = vld [vmem:[%s13693_s7 + $0x28] sm:$0xff] }
 0x35d   : > { %9876 = vmatpush3.bf16.msra.mxu1 %v12069_v32  ;;  %9404 = vmatprep.mubr.msk.f32.mxu1 %vm3966_vm5, %v12062_v31  ;;  %v13949_v31 = vld [vmem:[#allocation73_spill] sm:$0xff]  ;;  %v13951_v32 = vld [vmem:[#allocation74_spill] sm:$0xff] }
 0x35e   : > { %9561 = vmatmul.mubr.msk.f32.gmra.mrb[66].mxu0 %vm3966_vm5, %v12036_v44  ;;  %9890 = vmatprep.subr.bf16.mxu1 %v12449_v38  ;;  %v12584_v44 = vpack.c.bf16 %v8037_v53, %v8036_v37  ;;  %v5771_v37 = vrot.slane %v12270_v7, 1  ;;  %v5773_v53 = vrot.slane %v12264_v41, 1 }
 0x35f   : > { %9563 = vmatprep.mubr.msk.f32.mxu0 %vm3966_vm5, %v12075_v13 }
 0x360   : > { %9405 = vmatmul.mubr.msk.f32.gmra.mrb[66].mxu1 %vm3966_vm5, %v12065_v30  ;;  %v13950_v30 = vld [vmem:[#allocation71_spill] sm:$0xff] }
 0x361   : > { %9407 = vmatprep.mubr.msk.f32.mxu1 %vm3966_vm5, %v12090_v40 }
 0x362   : > { %9564 = vmatmul.mubr.msk.f32.gmra.mrb[68].mxu0 %vm3966_vm5, %v12067_v14 }
 0x363   : > { %9566 = vmatprep.mubr.msk.f32.mxu0 %vm3966_vm5, %v12102_v0 }
 0x364   : > { %9408 = vmatmul.mubr.msk.f32.gmra.mrb[68].mxu1 %vm3966_vm5, %v12093_v4 }
 0x365   : > { %9410 = vmatprep.mubr.msk.f32.mxu1 %vm3966_vm5, %v12115_v10 }
 0x366   : > { %9567 = vmatmul.mubr.msk.f32.gmra.mrb[70].mxu0 %vm3966_vm5, %v12095_v5 }
 0x367   : > { %9569 = vmatprep.mubr.msk.f32.mxu0 %vm3966_vm5, %v12126_v6 }
 0x368   : > { %9411 = vmatmul.mubr.msk.f32.gmra.mrb[70].mxu1 %vm3966_vm5, %v12118_v12 }
 0x369   : > { %9413 = vmatprep.mubr.msk.f32.mxu1 %vm3966_vm5, %v12139_v47 }
 0x36a   : > { %9570 = vmatmul.mubr.msk.f32.gmra.mrb[72].mxu0 %vm3966_vm5, %v12120_v42 }
 0x36b   : > { %9572 = vmatprep.mubr.msk.f32.mxu0 %vm3966_vm5, %v12150_v35 }
 0x36c   : > { %9414 = vmatmul.mubr.msk.f32.gmra.mrb[72].mxu1 %vm3966_vm5, %v12142_v34 }
 0x36d   : > { %9416 = vmatprep.mubr.msk.f32.mxu1 %vm3966_vm5, %v12163_v39 }
 0x36e   : > { %9573 = vmatmul.mubr.msk.f32.gmra.mrb[74].mxu0 %vm3966_vm5, %v12144_v36 }
 0x36f   : > { %9575 = vmatprep.mubr.msk.f32.mxu0 %vm3966_vm5, %v12174_v27 }
 0x370   : > { %9417 = vmatmul.mubr.msk.f32.gmra.mrb[74].mxu1 %vm3966_vm5, %v12166_v20 }
 0x371   : > { %9419 = vmatprep.mubr.msk.f32.mxu1 %vm3966_vm5, %v12187_v19 }
 0x372   : > { %9576 = vmatmul.mubr.msk.f32.gmra.mrb[76].mxu0 %vm3966_vm5, %v12168_v62 }
 0x373   : > { %9578 = vmatprep.mubr.msk.f32.mxu0 %vm3966_vm5, %v12198_v61 }
 0x374   : > { %9420 = vmatmul.mubr.msk.f32.gmra.mrb[76].mxu1 %vm3966_vm5, %v12190_v57 }
 0x375   : > { %9422 = vmatprep.mubr.msk.f32.mxu1 %vm3966_vm5, %v12211_v15 }
 0x376   : > { %9579 = vmatmul.mubr.msk.f32.gmra.mrb[78].mxu0 %vm3966_vm5, %v12192_v59 }
 0x377   : > { %9581 = vmatprep.mubr.msk.f32.mxu0 %vm3966_vm5, %v12222_v3 }
 0x378   : > { %9423 = vmatmul.mubr.msk.f32.gmra.mrb[78].mxu1 %vm3966_vm5, %v12214_v54 }
 0x379   : > { %9425 = vmatprep.mubr.msk.f32.mxu1 %vm3966_vm5, %v12235_v28 }
 0x37a   : > { %9582 = vmatmul.mubr.msk.f32.gmra.mrb[80].mxu0 %vm3966_vm5, %v12216_v23 }
 0x37b   : > { %9584 = vmatprep.mubr.msk.f32.mxu0 %vm3966_vm5, %v12246_v63 }
 0x37c   : > { %9426 = vmatmul.mubr.msk.f32.gmra.mrb[80].mxu1 %vm3966_vm5, %v12238_v29 }
 0x37d   : > { %9428 = vmatprep.mubr.msk.f32.mxu1 %vm3966_vm5, %v12259_v52 }
 0x37e   : > { %9585 = vmatmul.mubr.msk.f32.gmra.mrb[82].mxu0 %vm3966_vm5, %v12240_v48 }
 0x37f   : > { %9587 = vmatprep.mubr.msk.f32.mxu0 %vm3966_vm5, %v12270_v7 }
 0x380   : > { %9429 = vmatmul.mubr.msk.f32.gmra.mrb[82].mxu1 %vm3966_vm5, %v12262_v49 }
 0x381   : > { %9431 = vmatprep.mubr.msk.f32.mxu1 %vm3966_vm5, %v12283_v45 }
 0x382   : > { %9588 = vmatmul.mubr.msk.f32.gmra.mrb[84].mxu0 %vm3966_vm5, %v12264_v41 }
 0x383   : > { %9590 = vmatprep.mubr.msk.f32.mxu0 %vm3966_vm5, %v12294_v56 }
 0x384   : > { %9432 = vmatmul.mubr.msk.f32.gmra.mrb[84].mxu1 %vm3966_vm5, %v12286_v18 }
 0x385   : > { %9434 = vmatprep.mubr.msk.f32.mxu1 %vm3966_vm5, %v12307_v46 }
 0x386   : > { %9591 = vmatmul.mubr.msk.f32.gmra.mrb[86].mxu0 %vm3966_vm5, %v12288_v43 }
 0x387   : > { %9593 = vmatprep.mubr.msk.f32.mxu0 %vm3966_vm5, %v12318_v58 }
 0x388   : > { %9435 = vmatmul.mubr.msk.f32.gmra.mrb[86].mxu1 %vm3966_vm5, %v12310_v51 }
 0x389   : > { %9437 = vmatprep.mubr.msk.f32.mxu1 %vm3966_vm5, %v12331_v60 }
 0x38a   : > { %9594 = vmatmul.mubr.msk.f32.gmra.mrb[88].mxu0 %vm3966_vm5, %v12312_v9 }
 0x38b   : > { %9596 = vmatprep.mubr.msk.f32.mxu0 %vm3966_vm5, %v12342_v17 }
 0x38c   : > { %9438 = vmatmul.mubr.msk.f32.gmra.mrb[88].mxu1 %vm3966_vm5, %v13946_v25 }
 0x38d   : > { %9440 = vmatprep.mubr.msk.f32.mxu1 %vm3966_vm5, %v13947_v8 }
 0x38e   : > { %9597 = vmatmul.mubr.msk.f32.gmra.mrb[90].mxu0 %vm3966_vm5, %v13948_v11 }
 0x38f   : > { %9599 = vmatprep.mubr.msk.f32.mxu0 %vm3966_vm5, %v13949_v31 }
 0x390   : > { %9441 = vmatmul.mubr.msk.f32.gmra.mrb[90].mxu1 %vm3966_vm5, %v13950_v30 }
 0x391   : > { %9443 = vmatprep.mubr.msk.f32.mxu1 %vm3966_vm5, %v13951_v32 }
 0x392   : > { %9600 = vmatmul.mubr.msk.f32.gmra.mrb[92].mxu0 %vm3966_vm5, %v13952_v55 }
 0x393   : > { %9602 = vmatprep.mubr.msk.f32.mxu0 %vm3966_vm5, %v13953_v16 }
 0x394   : > { %9444 = vmatmul.mubr.msk.f32.gmra.mrb[92].mxu1 %vm3966_vm5, %v13954_v2 }
 0x395   : > { %9446 = vmatprep.mubr.msk.f32.mxu1 %vm3966_vm5, %v12399_v26 }
 0x396   : > { %9603 = vmatmul.mubr.msk.f32.gmra.mrb[94].mxu0 %vm3966_vm5, %v12382_v33 }
 0x397   : > { %9609 = vmatprep.mubr.msk.f32.mxu0 %vm3966_vm5, %v12075_v13 }
 0x398   : > { %9447 = vmatmul.mubr.msk.f32.gmra.mrb[94].mxu1 %vm3966_vm5, %v13955_v1 }
 0x399   : > { %9453 = vmatprep.mubr.msk.f32.mxu1 %vm3966_vm5, %v12090_v40 }
 0x39a   : > { %9610 = vmatmul.mubr.msk.f32.vlgmr.msra.gmra.mrb[64].mxu0 %vm3966_vm5, %v12067_v14 }
 0x39b   : > { %9612 = vmatprep.mubr.msk.f32.mxu0 %vm3966_vm5, %v12102_v0 }
 0x39c   : > { %9454 = vmatmul.mubr.msk.f32.vlgmr.msra.gmra.mrb[64].mxu1 %vm3966_vm5, %v12093_v4  ;;  %v13958_v4 = vld [vmem:[#allocation67_spill] sm:$0xff] }
 0x39d   : > { %9892 = vmatpush3.bf16.msra.mxu1 %v12449_v38  ;;  %9456 = vmatprep.mubr.msk.f32.mxu1 %vm3966_vm5, %v12115_v10  ;;  %v5737_v10 = vrot.slane %v13958_v4, 1  ;;  %v5753_v38 = vrot.slane %v12144_v36, 1  ;;  %v5783_v4 = vrot.slane %v12342_v17, 1 }
 0x39e   : > { %9613 = vmatmul.mubr.msk.f32.gmra.mrb[66].mxu0 %vm3966_vm5, %v12095_v5  ;;  %9894 = vmatprep.subr.bf16.mxu1 %v12584_v44 }
 0x39f   : > { %9615 = vmatprep.mubr.msk.f32.mxu0 %vm3966_vm5, %v12126_v6 }
 0x3a0   : > { %9457 = vmatmul.mubr.msk.f32.gmra.mrb[66].mxu1 %vm3966_vm5, %v12118_v12 }
 0x3a1   : > { %9459 = vmatprep.mubr.msk.f32.mxu1 %vm3966_vm5, %v12139_v47  ;;  %v5739_v47 = vrot.slane %v12075_v13, 1 }
 0x3a2   : > { %9616 = vmatmul.mubr.msk.f32.gmra.mrb[68].mxu0 %vm3966_vm5, %v12120_v42 }
 0x3a3   : > { %9618 = vmatprep.mubr.msk.f32.mxu0 %vm3966_vm5, %v12150_v35 }
 0x3a4   : > { %9460 = vmatmul.mubr.msk.f32.gmra.mrb[68].mxu1 %vm3966_vm5, %v12142_v34  ;;  %v8104_v34 = vld [vmem:[%s13693_s7 + $0x80] sm:$0xff] }
 0x3a5   : > { %9462 = vmatprep.mubr.msk.f32.mxu1 %vm3966_vm5, %v12163_v39  ;;  %v8105_v39 = vld [vmem:[%s13693_s7 + $0x88] sm:$0xff] }
 0x3a6   : > { %9619 = vmatmul.mubr.msk.f32.gmra.mrb[70].mxu0 %vm3966_vm5, %v12144_v36  ;;  %v12735_v13 = vpack.c.bf16 %v8105_v39, %v8104_v34  ;;  %v5791_v34 = vrot.slane %v13953_v16, 1  ;;  %v5793_v39 = vrot.slane %v12382_v33, 1 }
 0x3a7   : > { %9621 = vmatprep.mubr.msk.f32.mxu0 %vm3966_vm5, %v12174_v27 }
 0x3a8   : > { %9463 = vmatmul.mubr.msk.f32.gmra.mrb[70].mxu1 %vm3966_vm5, %v12166_v20 }
 0x3a9   : > { %9465 = vmatprep.mubr.msk.f32.mxu1 %vm3966_vm5, %v12187_v19  ;;  %v13957_v19 = vrot.slane %v12404_v21, 7 }
 0x3aa   : > { %9622 = vmatmul.mubr.msk.f32.gmra.mrb[72].mxu0 %vm3966_vm5, %v12168_v62 }
 0x3ab   : > { %9624 = vmatprep.mubr.msk.f32.mxu0 %vm3966_vm5, %v12198_v61 }
 0x3ac   : > { %9466 = vmatmul.mubr.msk.f32.gmra.mrb[72].mxu1 %vm3966_vm5, %v12190_v57  ;;  %v5741_v57 = vrot.slane %v12067_v14, 1 }
 0x3ad   : > { %9468 = vmatprep.mubr.msk.f32.mxu1 %vm3966_vm5, %v12211_v15  ;;  %v13956_v15 = vld [vmem:[#allocation79_spill] sm:$0xff] }
 0x3ae   : > { %9625 = vmatmul.mubr.msk.f32.gmra.mrb[74].mxu0 %vm3966_vm5, %v12192_v59 }
 0x3af   : > { %9627 = vmatprep.mubr.msk.f32.mxu0 %vm3966_vm5, %v12222_v3 }
 0x3b0   : > { %9469 = vmatmul.mubr.msk.f32.gmra.mrb[74].mxu1 %vm3966_vm5, %v12214_v54  ;;  %v12738_v54 = vsel %vm2220_vm3, %v5737_v10, %v5739_v47 }
 0x3b1   : > { %9471 = vmatprep.mubr.msk.f32.mxu1 %vm3966_vm5, %v12235_v28  ;;  %v12694_v28 = vld [vmem:[#allocation2 + $0x128] sm:$0xff] }
 0x3b2   : > { %9628 = vmatmul.mubr.msk.f32.gmra.mrb[76].mxu0 %vm3966_vm5, %v12216_v23 }
 0x3b3   : > { %9630 = vmatprep.mubr.msk.f32.mxu0 %vm3966_vm5, %v12246_v63 }
 0x3b4   : > { %9472 = vmatmul.mubr.msk.f32.gmra.mrb[76].mxu1 %vm3966_vm5, %v12238_v29  ;;  %v5743_v29 = vrot.slane %v12102_v0, 1  ;;  %v5747_v0 = vrot.slane %v12126_v6, 1 }
 0x3b5   : > { %9474 = vmatprep.mubr.msk.f32.mxu1 %vm3966_vm5, %v12259_v52  ;;  %v5736_v52 = vrot.slane %v12041_v24, 1  ;;  %v6791_v24 = vld [vmem:[%s13695_s9] sm:$0xff] }
 0x3b6   : > { %9631 = vmatmul.mubr.msk.f32.gmra.mrb[78].mxu0 %vm3966_vm5, %v12240_v48  ;;  %v12752_v14 = vsel %vm2220_vm3, %v5741_v57, %v5743_v29 }
 0x3b7   : > { %9633 = vmatprep.mubr.msk.f32.mxu0 %vm3966_vm5, %v12270_v7  ;;  %v12730_v20 = vsel %vm2220_vm3, %v5736_v52, %v5737_v10  ;;  %v12842_v7 = vsel %vm2220_vm3, %v5771_v37, %v5773_v53  ;;  %v5785_v10 = vrot.slane %v13948_v11, 1 }
 0x3b8   : > { %9475 = vmatmul.mubr.msk.f32.gmra.mrb[78].mxu1 %vm3966_vm5, %v12262_v49  ;;  %v12744_v49 = vsel %vm2220_vm3, %v5739_v47, %v5741_v57  ;;  %v5789_v47 = vrot.slane %v13952_v55, 1 }
 0x3b9   : > { %9477 = vmatprep.mubr.msk.f32.mxu1 %vm3966_vm5, %v12283_v45  ;;  %v4679_v45 = vrot.slane %v12694_v28, 7 }
 0x3ba   : > { %9634 = vmatmul.mubr.msk.f32.gmra.mrb[80].mxu0 %vm3966_vm5, %v12264_v41  ;;  %v12897_v57 = vsel %vm2220_vm3, %v5789_v47, %v5791_v34 }
 0x3bb   : > { %9636 = vmatprep.mubr.msk.f32.mxu0 %vm3966_vm5, %v12294_v56 }
 0x3bc   : > { %9478 = vmatmul.mubr.msk.f32.gmra.mrb[80].mxu1 %vm3966_vm5, %v12286_v18  ;;  %v5745_v18 = vrot.slane %v12095_v5, 1  ;;  %v5749_v5 = vrot.slane %v12120_v42, 1 }
 0x3bd   : > { %9480 = vmatprep.mubr.msk.f32.mxu1 %vm3966_vm5, %v12307_v46 }
 0x3be   : > { %9637 = vmatmul.mubr.msk.f32.gmra.mrb[82].mxu0 %vm3966_vm5, %v12288_v43  ;;  %v12770_v6 = vsel %vm2220_vm3, %v5747_v0, %v5749_v5 }
 0x3bf   : > { %9639 = vmatprep.mubr.msk.f32.mxu0 %vm3966_vm5, %v12318_v58 }
 0x3c0   : > { %9481 = vmatmul.mubr.msk.f32.gmra.mrb[82].mxu1 %vm3966_vm5, %v12310_v51  ;;  %v12758_v51 = vsel %vm2220_vm3, %v5743_v29, %v5745_v18  ;;  %v5797_v29 = vrot.slane %v12404_v21, 1 }
 0x3c1   : > { %9483 = vmatprep.mubr.msk.f32.mxu1 %vm3966_vm5, %v12331_v60  ;;  %v12690_v60 = vld [vmem:[#allocation2 + $0x120] sm:$0xff] }
 0x3c2   : > { %9640 = vmatmul.mubr.msk.f32.gmra.mrb[84].mxu0 %vm3966_vm5, %v12312_v9  ;;  %v4677_v46 = vrot.slane %v12690_v60, 7 }
 0x3c3   : > { %9642 = vmatprep.mubr.msk.f32.mxu0 %vm3966_vm5, %v12342_v17  ;;  %v12878_v17 = vsel %vm2220_vm3, %v5783_v4, %v5785_v10 }
 0x3c4   : > { %9484 = vmatmul.mubr.msk.f32.gmra.mrb[84].mxu1 %vm3966_vm5, %v13946_v25  ;;  %v4678_v40 = vsel %vm552_vm1, %v13957_v19, %v4677_v46  ;;  %v4680_v12 = vsel %vm552_vm1, %v4677_v46, %v4679_v45  ;;  %v5761_v25 = vrot.slane %v12192_v59, 1  ;;  %v5775_v46 = vrot.slane %v12294_v56, 1 }
 0x3c5   : > { %9486 = vmatprep.mubr.msk.f32.mxu1 %vm3966_vm5, %v13947_v8  ;;  %v5763_v8 = vrot.slane %v12222_v3, 1  ;;  %v5777_v45 = vrot.slane %v12288_v43, 1  ;;  %v5779_v19 = vrot.slane %v12318_v58, 1 }
 0x3c6   : > { %9643 = vmatmul.mubr.msk.f32.gmra.mrb[86].mxu0 %vm3966_vm5, %v13948_v11  ;;  %v12848_v41 = vsel %vm2220_vm3, %v5773_v53, %v5775_v46 }
 0x3c7   : > { %9645 = vmatprep.mubr.msk.f32.mxu0 %vm3966_vm5, %v13949_v31  ;;  %v12812_v59 = vsel %vm2220_vm3, %v5761_v25, %v5763_v8  ;;  %v12854_v56 = vsel %vm2220_vm3, %v5775_v46, %v5777_v45  ;;  %v12860_v43 = vsel %vm2220_vm3, %v5777_v45, %v5779_v19  ;;  %v13964_v46 = vld [vmem:[#allocation15_spill] sm:$0xff] }
 0x3c8   : > { %9487 = vmatmul.mubr.msk.f32.gmra.mrb[86].mxu1 %vm3966_vm5, %v13950_v30  ;;  %v5765_v30 = vrot.slane %v12216_v23, 1 }
 0x3c9   : > { %9489 = vmatprep.mubr.msk.f32.mxu1 %vm3966_vm5, %v13951_v32  ;;  %v5767_v32 = vrot.slane %v12246_v63, 1 }
 0x3ca   : > { %9646 = vmatmul.mubr.msk.f32.gmra.mrb[88].mxu0 %vm3966_vm5, %v13952_v55  ;;  %v12818_v3 = vsel %vm2220_vm3, %v5763_v8, %v5765_v30  ;;  %v5795_v55 = vrot.slane %v13956_v15, 1 }
 0x3cb   : > { %9648 = vmatprep.mubr.msk.f32.mxu0 %vm3966_vm5, %v13953_v16  ;;  %v12824_v23 = vsel %vm2220_vm3, %v5765_v30, %v5767_v32  ;;  %v12903_v16 = vsel %vm2220_vm3, %v5791_v34, %v5793_v39  ;;  %v13963_v30 = vld [vmem:[#allocation8_spill] sm:$0xff]  ;;  %v13966_v34 = vld [vmem:[#allocation3_spill] sm:$0xff] }
 0x3cc   : > { %9490 = vmatmul.mubr.msk.f32.gmra.mrb[88].mxu1 %vm3966_vm5, %v13954_v2  ;;  %v5769_v2 = vrot.slane %v12240_v48, 1 }
 0x3cd   : > { %9492 = vmatprep.mubr.msk.f32.mxu1 %vm3966_vm5, %v12399_v26  ;;  %v5755_v26 = vrot.slane %v12174_v27, 1 }
 0x3ce   : > { %9649 = vmatmul.mubr.msk.f32.gmra.mrb[90].mxu0 %vm3966_vm5, %v12382_v33  ;;  %v12830_v63 = vsel %vm2220_vm3, %v5767_v32, %v5769_v2  ;;  %v12836_v48 = vsel %vm2220_vm3, %v5769_v2, %v5771_v37  ;;  %v13959_v33 = vld [vmem:[#allocation77_spill] sm:$0xff] }
 0x3cf   : > { %9651 = vmatprep.mubr.msk.f32.mxu0 %vm3966_vm5, %v13956_v15  ;;  %v12788_v36 = vsel %vm2220_vm3, %v5753_v38, %v5755_v26  ;;  %v12910_v15 = vsel %vm2220_vm3, %v5793_v39, %v5795_v55 }
 0x3d0   : > { %9493 = vmatmul.mubr.msk.f32.gmra.mrb[90].mxu1 %vm3966_vm5, %v13955_v1  ;;  %v5751_v1 = vrot.slane %v12150_v35, 1 }
 0x3d1   : > { %9495 = vmatprep.mubr.msk.f32.mxu1 %vm3966_vm5, %v12420_v50  ;;  %v5757_v50 = vrot.slane %v12168_v62, 1 }
 0x3d2   : > { %9652 = vmatmul.mubr.msk.f32.gmra.mrb[92].mxu0 %vm3966_vm5, %v12404_v21  ;;  %v12776_v42 = vsel %vm2220_vm3, %v5749_v5, %v5751_v1  ;;  %v12782_v35 = vsel %vm2220_vm3, %v5751_v1, %v5753_v38  ;;  %v12915_v21 = vsel %vm2220_vm3, %v5795_v55, %v5797_v29  ;;  %v10305_v5 = vld [vmem:[#allocation2 + $0x18] sm:$0xff] }
 0x3d3   : > { %9654 = vmatprep.mubr.msk.f32.mxu0 %vm3966_vm5, %v12690_v60  ;;  %v12794_v27 = vsel %vm2220_vm3, %v5755_v26, %v5757_v50  ;;  %v6091_v1 = vrot.slane %v10305_v5, 1 }
 0x3d4   : > { %9496 = vmatmul.mubr.msk.f32.gmra.mrb[92].mxu1 %vm3966_vm5, %v12425_v22  ;;  %v5759_v22 = vrot.slane %v12198_v61, 1 }
 0x3d5   : > { %9498 = vmatprep.mubr.msk.f32.mxu1 %vm3966_vm5, %v4678_v40  ;;  %v5781_v40 = vrot.slane %v12312_v9, 1 }
 0x3d6   : > { %9655 = vmatmul.mubr.msk.f32.gmra.mrb[94].mxu0 %vm3966_vm5, %v12694_v28  ;;  %v12800_v62 = vsel %vm2220_vm3, %v5757_v50, %v5759_v22  ;;  %v12806_v61 = vsel %vm2220_vm3, %v5759_v22, %v5761_v25  ;;  %v6093_v50 = vsel %vm2220_vm3, %v6091_v1, %v5736_v52  ;;  %v6792_v52 = vld [vmem:[%s13695_s9 + $0x8] sm:$0xff] }
 0x3d7   : > { %v12866_v58 = vsel %vm2220_vm3, %v5779_v19, %v5781_v40  ;;  %v12872_v9 = vsel %vm2220_vm3, %v5781_v40, %v5783_v4  ;;  %v13965_v40 = vld [vmem:[#allocation12_spill] sm:$0xff] }
 0x3d8   : > { %9499 = vmatmul.mubr.msk.f32.gmra.mrb[94].mxu1 %vm3966_vm5, %v4680_v12  ;;  %v5787_v12 = vrot.slane %v13949_v31, 1 }
 0x3d9   : > { %9661 = vmatprep.mubr.msk.f32.mxu1 %vm3966_vm5, %v12730_v20 }
 0x3da   : > { %v12884_v11 = vsel %vm2220_vm3, %v5785_v10, %v5787_v12  ;;  %v12890_v31 = vsel %vm2220_vm3, %v5787_v12, %v5789_v47 }
 0x3dc   : > { %9662 = vmatmul.mubr.msk.f32.vlgmr.msra.gmra.mrb[96].mxu1 %vm3966_vm5, %v12738_v54 }
 0x3dd   : > { %9896 = vmatpush3.bf16.msra.mxu1 %v12584_v44  ;;  %9664 = vmatprep.mubr.msk.f32.mxu1 %vm3966_vm5, %v12744_v49  ;;  %v12764_v44 = vsel %vm2220_vm3, %v5745_v18, %v5747_v0  ;;  %v6090_v18 = vrot.slane %v13959_v33, 1  ;;  %v5799_v0 = vrot.slane %v12690_v60, 1 }
 0x3de   : > { %9898 = vmatprep.subr.bf16.mxu1 %v12735_v13 }
 0x3df   : > { %v6092_v38 = vsel %vm2220_vm3, %v6090_v18, %v6091_v1  ;;  %v12923_v26 = vsel %vm2220_vm3, %v5797_v29, %v5799_v0  ;;  %v13967_v29 = vld [vmem:[#allocation4_spill] sm:$0xff] }
 0x3e0   : > { %9665 = vmatmul.mubr.msk.f32.gmra.mrb[98].mxu1 %vm3966_vm5, %v12752_v14 }
 0x3e1   : > { %9667 = vmatprep.mubr.msk.f32.mxu1 %vm3966_vm5, %v12758_v51 }
 0x3e4   : > { %9668 = vmatmul.mubr.msk.f32.gmra.mrb[100].mxu1 %vm3966_vm5, %v12764_v44 }
 0x3e5   : > { %9670 = vmatprep.mubr.msk.f32.mxu1 %vm3966_vm5, %v12770_v6 }
 0x3e8   : > { %9671 = vmatmul.mubr.msk.f32.gmra.mrb[102].mxu1 %vm3966_vm5, %v12776_v42 }
 0x3e9   : > { %9673 = vmatprep.mubr.msk.f32.mxu1 %vm3966_vm5, %v12782_v35 }
 0x3ec   : > { %9674 = vmatmul.mubr.msk.f32.gmra.mrb[104].mxu1 %vm3966_vm5, %v12788_v36 }
 0x3ed   : > { %9676 = vmatprep.mubr.msk.f32.mxu1 %vm3966_vm5, %v12794_v27 }
 0x3f0   : > { %9677 = vmatmul.mubr.msk.f32.gmra.mrb[106].mxu1 %vm3966_vm5, %v12800_v62 }
 0x3f1   : > { %9679 = vmatprep.mubr.msk.f32.mxu1 %vm3966_vm5, %v12806_v61 }
 0x3f4   : > { %9680 = vmatmul.mubr.msk.f32.gmra.mrb[108].mxu1 %vm3966_vm5, %v12812_v59 }
 0x3f5   : > { %9682 = vmatprep.mubr.msk.f32.mxu1 %vm3966_vm5, %v12818_v3 }
 0x3f8   : > { %9683 = vmatmul.mubr.msk.f32.gmra.mrb[110].mxu1 %vm3966_vm5, %v12824_v23 }
 0x3f9   : > { %9685 = vmatprep.mubr.msk.f32.mxu1 %vm3966_vm5, %v12830_v63 }
 0x3fc   : > { %9686 = vmatmul.mubr.msk.f32.gmra.mrb[112].mxu1 %vm3966_vm5, %v12836_v48 }
 0x3fd   : > { %9688 = vmatprep.mubr.msk.f32.mxu1 %vm3966_vm5, %v12842_v7 }
 0x400   : > { %9689 = vmatmul.mubr.msk.f32.gmra.mrb[114].mxu1 %vm3966_vm5, %v12848_v41 }
 0x401   : > { %9691 = vmatprep.mubr.msk.f32.mxu1 %vm3966_vm5, %v12854_v56 }
 0x404   : > { %9692 = vmatmul.mubr.msk.f32.gmra.mrb[116].mxu1 %vm3966_vm5, %v12860_v43 }
 0x405   : > { %9694 = vmatprep.mubr.msk.f32.mxu1 %vm3966_vm5, %v12866_v58 }
 0x408   : > { %9695 = vmatmul.mubr.msk.f32.gmra.mrb[118].mxu1 %vm3966_vm5, %v12872_v9 }
 0x409   : > { %9697 = vmatprep.mubr.msk.f32.mxu1 %vm3966_vm5, %v12878_v17 }
 0x40c   : > { %9698 = vmatmul.mubr.msk.f32.gmra.mrb[120].mxu1 %vm3966_vm5, %v12884_v11 }
 0x40d   : > { %9700 = vmatprep.mubr.msk.f32.mxu1 %vm3966_vm5, %v12890_v31 }
 0x410   : > { %9701 = vmatmul.mubr.msk.f32.gmra.mrb[122].mxu1 %vm3966_vm5, %v12897_v57 }
 0x411   : > { %9703 = vmatprep.mubr.msk.f32.mxu1 %vm3966_vm5, %v12903_v16 }
 0x414   : > { %9704 = vmatmul.mubr.msk.f32.gmra.mrb[124].mxu1 %vm3966_vm5, %v12910_v15 }
 0x415   : > { %9706 = vmatprep.mubr.msk.f32.mxu1 %vm3966_vm5, %v12915_v21 }
 0x418   : > { %9707 = vmatmul.mubr.msk.f32.gmra.mrb[126].mxu1 %vm3966_vm5, %v12923_v26 }
 0x419   : > { %9713 = vmatprep.mubr.msk.f32.mxu1 %vm3966_vm5, %v6092_v38  ;;  %v13968_v38 = vld [vmem:[#allocation19_spill] sm:$0xff] }
 0x41c   : > { %9714 = vmatmul.mubr.msk.f32.vlgmr.msra.gmra.mrb[96].mxu1 %vm3966_vm5, %v6093_v50 }
 0x41d   : > { %9900 = vmatpush3.bf16.msra.mxu1 %v12735_v13  ;;  %9716 = vmatprep.mubr.msk.f32.mxu1 %vm3966_vm5, %v12730_v20  ;;  %v9901_v20 = vpack.c.bf16 %v6792_v52, %v6791_v24  ;;  %v13969_v52 = vld [vmem:[#allocation20_spill] sm:$0xff] }
 0x41f   : > { %9902 = vmatprep.subr.bf16.mxu0 %v9901_v20 }
 0x420   : > { %9717 = vmatmul.mubr.msk.f32.gmra.mrb[98].mxu1 %vm3966_vm5, %v12738_v54  ;;  %9904 = vmatpush3.bf16.msra.mxu0 %v9901_v20 }
 0x421   : > { %9719 = vmatprep.mubr.msk.f32.mxu1 %vm3966_vm5, %v12744_v49 }
 0x424   : > { %9720 = vmatmul.mubr.msk.f32.gmra.mrb[100].mxu1 %vm3966_vm5, %v12752_v14 }
 0x425   : > { %9722 = vmatprep.mubr.msk.f32.mxu1 %vm3966_vm5, %v12758_v51 }
 0x428   : > { %9723 = vmatmul.mubr.msk.f32.gmra.mrb[102].mxu1 %vm3966_vm5, %v12764_v44 }
 0x429   : > { %9725 = vmatprep.mubr.msk.f32.mxu1 %vm3966_vm5, %v12770_v6 }
 0x42c   : > { %9726 = vmatmul.mubr.msk.f32.gmra.mrb[104].mxu1 %vm3966_vm5, %v12776_v42 }
 0x42d   : > { %9728 = vmatprep.mubr.msk.f32.mxu1 %vm3966_vm5, %v12782_v35 }
 0x430   : > { %9729 = vmatmul.mubr.msk.f32.gmra.mrb[106].mxu1 %vm3966_vm5, %v12788_v36 }
 0x431   : > { %9731 = vmatprep.mubr.msk.f32.mxu1 %vm3966_vm5, %v12794_v27 }
 0x434   : > { %9732 = vmatmul.mubr.msk.f32.gmra.mrb[108].mxu1 %vm3966_vm5, %v12800_v62 }
 0x435   : > { %9734 = vmatprep.mubr.msk.f32.mxu1 %vm3966_vm5, %v12806_v61 }
 0x438   : > { %9735 = vmatmul.mubr.msk.f32.gmra.mrb[110].mxu1 %vm3966_vm5, %v12812_v59 }
 0x439   : > { %9737 = vmatprep.mubr.msk.f32.mxu1 %vm3966_vm5, %v12818_v3 }
 0x43c   : > { %9738 = vmatmul.mubr.msk.f32.gmra.mrb[112].mxu1 %vm3966_vm5, %v12824_v23 }
 0x43d   : > { %9740 = vmatprep.mubr.msk.f32.mxu1 %vm3966_vm5, %v12830_v63 }
 0x440   : > { %9741 = vmatmul.mubr.msk.f32.gmra.mrb[114].mxu1 %vm3966_vm5, %v12836_v48 }
 0x441   : > { %9743 = vmatprep.mubr.msk.f32.mxu1 %vm3966_vm5, %v12842_v7 }
 0x444   : > { %9744 = vmatmul.mubr.msk.f32.gmra.mrb[116].mxu1 %vm3966_vm5, %v12848_v41 }
 0x445   : > { %9746 = vmatprep.mubr.msk.f32.mxu1 %vm3966_vm5, %v12854_v56 }
 0x448   : > { %9747 = vmatmul.mubr.msk.f32.gmra.mrb[118].mxu1 %vm3966_vm5, %v12860_v43 }
 0x449   : > { %9749 = vmatprep.mubr.msk.f32.mxu1 %vm3966_vm5, %v12866_v58 }
 0x44c   : > { %9750 = vmatmul.mubr.msk.f32.gmra.mrb[120].mxu1 %vm3966_vm5, %v12872_v9 }
 0x44d   : > { %9752 = vmatprep.mubr.msk.f32.mxu1 %vm3966_vm5, %v12878_v17 }
 0x450   : > { %9753 = vmatmul.mubr.msk.f32.gmra.mrb[122].mxu1 %vm3966_vm5, %v12884_v11 }
 0x451   : > { %9755 = vmatprep.mubr.msk.f32.mxu1 %vm3966_vm5, %v12890_v31 }
 0x454   : > { %9756 = vmatmul.mubr.msk.f32.gmra.mrb[124].mxu1 %vm3966_vm5, %v12897_v57 }
 0x455   : > { %9758 = vmatprep.mubr.msk.f32.mxu1 %vm3966_vm5, %v12903_v16 }
 0x458   : > { %9759 = vmatmul.mubr.msk.f32.gmra.mrb[126].mxu1 %vm3966_vm5, %v12910_v15 }
 0x459   : > { %9765 = vmatprep.mubr.msk.f32.mxu1 %vm3966_vm5, %v12744_v49 }
 0x45c   : > { %9766 = vmatmul.mubr.msk.f32.vlgmr.msra.gmra.mrb[96].mxu1 %vm3966_vm5, %v12752_v14  ;;  %v13960_v14 = vld [vmem:[#allocation10_spill] sm:$0xff] }
 0x45d   : > { %9768 = vmatprep.mubr.msk.f32.mxu1 %vm3966_vm5, %v12758_v51 }
 0x460   : > { %9769 = vmatmul.mubr.msk.f32.gmra.mrb[98].mxu1 %vm3966_vm5, %v12764_v44 }
 0x461   : > { %9771 = vmatprep.mubr.msk.f32.mxu1 %vm3966_vm5, %v12770_v6  ;;  %v13961_v6 = vld [vmem:[#allocation5_spill] sm:$0xff] }
 0x464   : > { %9772 = vmatmul.mubr.msk.f32.gmra.mrb[100].mxu1 %vm3966_vm5, %v12776_v42 }
 0x465   : > { %9774 = vmatprep.mubr.msk.f32.mxu1 %vm3966_vm5, %v12782_v35 }
 0x468   : > { %9775 = vmatmul.mubr.msk.f32.gmra.mrb[102].mxu1 %vm3966_vm5, %v12788_v36 }
 0x469   : > { %9777 = vmatprep.mubr.msk.f32.mxu1 %vm3966_vm5, %v12794_v27 }
 0x46c   : > { %9778 = vmatmul.mubr.msk.f32.gmra.mrb[104].mxu1 %vm3966_vm5, %v12800_v62  ;;  %v13962_v62 = vld [vmem:[#allocation11_spill] sm:$0xff] }
 0x46d   : > { %v9611_v13 = vpop.f32.mrb[64].mxu0  ;;  %9780 = vmatprep.mubr.msk.f32.mxu1 %vm3966_vm5, %v12806_v61 }
 0x46e   : > { %v5539_v54 = vpop.f32.mrb[65].mxu0 }
 0x46f   : > { %v9455_v49 = vpop.f32.mrb[64].mxu1 }
 0x470   : > { %v6593_v51 = vmul.f32 %v9455_v49, %v13960_v14  ;;  %v4751_v44 = vpop.f32.mrb[65].mxu1  ;;  %9781 = vmatmul.mubr.msk.f32.gmra.mrb[106].mxu1 %vm3966_vm5, %v12812_v59  ;;  %v13970_v14 = vld [vmem:[#allocation23_spill] sm:$0xff] }
 0x471   : > { %v6592_v42 = vmul.f32 %v4751_v44, %v13961_v6  ;;  %v9614_v35 = vpop.f32.mrb[66].mxu0  ;;  %9783 = vmatprep.mubr.msk.f32.mxu1 %vm3966_vm5, %v12818_v3  ;;  %v13971_v6 = vld [vmem:[#allocation24_spill] sm:$0xff] }
 0x472   : > { %v13027_v36 = vadd.f32 %v9611_v13, %v6593_v51  ;;  %v5549_v22 = vpop.f32.mrb[67].mxu0 }
 0x473   : > { %v13029_v27 = vadd.f32 %v6592_v42, %v5539_v54  ;;  %v9458_v25 = vpop.f32.mrb[66].mxu1 }
 0x474   : > { %v6595_v8 = vmul.f32 %v9458_v25, %v13962_v62  ;;  %v4761_v61 = vpop.f32.mrb[67].mxu1  ;;  %9784 = vmatmul.mubr.msk.f32.gmra.mrb[108].mxu1 %vm3966_vm5, %v12824_v23  ;;  %v13972_v62 = vld [vmem:[#allocation27_spill] sm:$0xff] }
 0x475   : > { %v6594_v59 = vmul.f32 %v4761_v61, %v13963_v30  ;;  %v9617_v32 = vpop.f32.mrb[68].mxu0  ;;  %9786 = vmatprep.mubr.msk.f32.mxu1 %vm3966_vm5, %v12830_v63  ;;  %v13973_v30 = vld [vmem:[#allocation28_spill] sm:$0xff] }
 0x476   : > { %v13037_v2 = vadd.f32 %v9614_v35, %v6595_v8  ;;  %v5559_v3 = vpop.f32.mrb[69].mxu0 }
 0x477   : > { %v13039_v37 = vadd.f32 %v6594_v59, %v5549_v22  ;;  %v9461_v53 = vpop.f32.mrb[68].mxu1 }
 0x478   : > { %v6597_v45 = vmul.f32 %v9461_v53, %v13964_v46  ;;  %v4771_v19 = vpop.f32.mrb[69].mxu1  ;;  %9787 = vmatmul.mubr.msk.f32.gmra.mrb[110].mxu1 %vm3966_vm5, %v12836_v48  ;;  %v13974_v46 = vld [vmem:[#allocation31_spill] sm:$0xff] }
 0x479   : > { %v6596_v23 = vmul.f32 %v4771_v19, %v13965_v40  ;;  %v9620_v4 = vpop.f32.mrb[70].mxu0  ;;  %9789 = vmatprep.mubr.msk.f32.mxu1 %vm3966_vm5, %v12842_v7  ;;  %v13975_v40 = vld [vmem:[#allocation32_spill] sm:$0xff] }
 0x47a   : > { %v13047_v10 = vadd.f32 %v9617_v32, %v6597_v45  ;;  %v5569_v63 = vpop.f32.mrb[71].mxu0 }
 0x47b   : > { %v13049_v12 = vadd.f32 %v6596_v23, %v5559_v3  ;;  %v9464_v47 = vpop.f32.mrb[70].mxu1 }
 0x47c   : > { %v6599_v39 = vmul.f32 %v9464_v47, %v13966_v34  ;;  %v4781_v55 = vpop.f32.mrb[71].mxu1  ;;  %9790 = vmatmul.mubr.msk.f32.gmra.mrb[112].mxu1 %vm3966_vm5, %v12848_v41  ;;  %v4044_v47 = vld [vmem:[#allocation2 + $0x130] sm:$0xff] }
 0x47d   : > { %v6598_v48 = vmul.f32 %v4781_v55, %v13967_v29  ;;  %v9623_v33 = vpop.f32.mrb[72].mxu0  ;;  %9792 = vmatprep.mubr.msk.f32.mxu1 %vm3966_vm5, %v12854_v56  ;;  %v13976_v55 = vld [vmem:[#allocation35_spill] sm:$0xff] }
 0x47e   : > { %v13057_v18 = vadd.f32 %v9620_v4, %v6599_v39  ;;  %v5579_v7 = vpop.f32.mrb[73].mxu0 }
 0x47f   : > { %v13059_v5 = vadd.f32 %v6598_v48, %v5569_v63  ;;  %v9467_v1 = vpop.f32.mrb[72].mxu1 }
 0x480   : > { %v6601_v50 = vmul.f32 %v9467_v1, %v13968_v38  ;;  %v4791_v24 = vpop.f32.mrb[73].mxu1  ;;  %9793 = vmatmul.mubr.msk.f32.gmra.mrb[114].mxu1 %vm3966_vm5, %v12860_v43 }
 0x481   : > { %v6600_v41 = vmul.f32 %v4791_v24, %v13969_v52  ;;  %v9626_v20 = vpop.f32.mrb[74].mxu0  ;;  %9795 = vmatprep.mubr.msk.f32.mxu1 %vm3966_vm5, %v12866_v58  ;;  %v13978_v52 = vld [vmem:[#allocation39_spill] sm:$0xff] }
 0x482   : > { %v13067_v13 = vadd.f32 %v9623_v33, %v6601_v50  ;;  %v5589_v56 = vpop.f32.mrb[75].mxu0 }
 0x483   : > { %v13069_v54 = vadd.f32 %v6600_v41, %v5579_v7  ;;  %v9470_v49 = vpop.f32.mrb[74].mxu1 }
 0x484   : > { %v6603_v51 = vmul.f32 %v9470_v49, %v13970_v14  ;;  %v4801_v44 = vpop.f32.mrb[75].mxu1  ;;  %9796 = vmatmul.mubr.msk.f32.gmra.mrb[116].mxu1 %vm3966_vm5, %v12872_v9 }
 0x485   : > { %v6602_v43 = vmul.f32 %v4801_v44, %v13971_v6  ;;  %v9629_v42 = vpop.f32.mrb[76].mxu0  ;;  %9798 = vmatprep.mubr.msk.f32.mxu1 %vm3966_vm5, %v12878_v17  ;;  %v13980_v44 = vld [vmem:[#allocation43_spill] sm:$0xff] }
 0x486   : > { %v13077_v35 = vadd.f32 %v9626_v20, %v6603_v51  ;;  %v5599_v58 = vpop.f32.mrb[77].mxu0  ;;  %v13979_v20 = vld [vmem:[#allocation40_spill] sm:$0xff] }
 0x487   : > { %v13079_v22 = vadd.f32 %v6602_v43, %v5589_v56  ;;  %v9473_v25 = vpop.f32.mrb[76].mxu1 }
 0x488   : > { %v6605_v8 = vmul.f32 %v9473_v25, %v13972_v62  ;;  %v4811_v61 = vpop.f32.mrb[77].mxu1  ;;  %9799 = vmatmul.mubr.msk.f32.gmra.mrb[118].mxu1 %vm3966_vm5, %v12884_v11 }
 0x489   : > { %v6604_v9 = vmul.f32 %v4811_v61, %v13973_v30  ;;  %v9632_v59 = vpop.f32.mrb[78].mxu0  ;;  %9801 = vmatprep.mubr.msk.f32.mxu1 %vm3966_vm5, %v12890_v31  ;;  %v6327_v31 = vrot.slane %v12694_v28, 1  ;;  %v6329_v28 = vrot.slane %v4044_v47, 1  ;;  %v13982_v30 = vld [vmem:[#allocation47_spill] sm:$0xff]  ;;  %v13985_v47 = vld [vmem:[#allocation52_spill] sm:$0xff] }
 0x48a   : > { %v13087_v32 = vadd.f32 %v9629_v42, %v6605_v8  ;;  %v5609_v17 = vpop.f32.mrb[79].mxu0  ;;  %v13981_v42 = vld [vmem:[#allocation44_spill] sm:$0xff] }
 0x48b   : > { %v13089_v3 = vadd.f32 %v6604_v9, %v5599_v58  ;;  %v9476_v53 = vpop.f32.mrb[78].mxu1  ;;  %v6328_v38 = vsel %vm2220_vm3, %v5799_v0, %v6327_v31  ;;  %v6330_v49 = vsel %vm2220_vm3, %v6327_v31, %v6329_v28 }
 0x48c   : > { %v6607_v45 = vmul.f32 %v9476_v53, %v13974_v46  ;;  %v4821_v19 = vpop.f32.mrb[79].mxu1  ;;  %9802 = vmatmul.mubr.msk.f32.gmra.mrb[120].mxu1 %vm3966_vm5, %v12897_v57  ;;  %v13977_v57 = vld [vmem:[#allocation36_spill] sm:$0xff] }
 0x48d   : > { %v6606_v11 = vmul.f32 %v4821_v19, %v13975_v40  ;;  %v9635_v23 = vpop.f32.mrb[80].mxu0  ;;  %9804 = vmatprep.mubr.msk.f32.mxu1 %vm3966_vm5, %v12903_v16 }
 0x48e   : > { %v13098_v4 = vadd.f32 %v9632_v59, %v6607_v45  ;;  %v5619_v63 = vpop.f32.mrb[81].mxu0 }
 0x48f   : > { %v13100_v34 = vadd.f32 %v6606_v11, %v5609_v17  ;;  %v9479_v39 = vpop.f32.mrb[80].mxu1  ;;  %v13983_v17 = vld [vmem:[#allocation48_spill] sm:$0xff] }
 0x490   : > { %v6609_v29 = vmul.f32 %v9479_v39, %v13976_v55  ;;  %v4831_v48 = vpop.f32.mrb[81].mxu1  ;;  %9805 = vmatmul.mubr.msk.f32.gmra.mrb[122].mxu1 %vm3966_vm5, %v12910_v15 }
 0x491   : > { %v6608_v33 = vmul.f32 %v4831_v48, %v13977_v57  ;;  %v9638_v7 = vpop.f32.mrb[82].mxu0  ;;  %9807 = vmatprep.mubr.msk.f32.mxu1 %vm3966_vm5, %v12915_v21 }
 0x492   : > { %v13108_v16 = vadd.f32 %v9635_v23, %v6609_v29  ;;  %v5629_v1 = vpop.f32.mrb[83].mxu0  ;;  %v13984_v23 = vld [vmem:[#allocation51_spill] sm:$0xff] }
 0x493   : > { %v13113_v50 = vadd.f32 %v6608_v33, %v5619_v63  ;;  %v9482_v24 = vpop.f32.mrb[82].mxu1 }
 0x494   : > { %v6611_v41 = vmul.f32 %v9482_v24, %v13978_v52  ;;  %v4841_v15 = vpop.f32.mrb[83].mxu1  ;;  %9808 = vmatmul.mubr.msk.f32.gmra.mrb[124].mxu1 %vm3966_vm5, %v12923_v26 }
 0x495   : > { %v6610_v56 = vmul.f32 %v4841_v15, %v13979_v20  ;;  %v9641_v21 = vpop.f32.mrb[84].mxu0  ;;  %9810 = vmatprep.mubr.msk.f32.mxu1 %vm3966_vm5, %v6328_v38  ;;  %v13987_v38 = vld [vmem:[#allocation56_spill] sm:$0xff] }
 0x496   : > { %v13121_v14 = vadd.f32 %v9638_v7, %v6611_v41  ;;  %v5639_v60 = vpop.f32.mrb[85].mxu0  ;;  %v13986_v7 = vld [vmem:[#allocation55_spill] sm:$0xff] }
 0x497   : > { %v13123_v0 = vadd.f32 %v6610_v56, %v5629_v1  ;;  %v9485_v51 = vpop.f32.mrb[84].mxu1 }
 0x498   : > { %v6613_v6 = vmul.f32 %v9485_v51, %v13980_v44  ;;  %v4851_v43 = vpop.f32.mrb[85].mxu1  ;;  %9811 = vmatmul.mubr.msk.f32.gmra.mrb[126].mxu1 %vm3966_vm5, %v6330_v49  ;;  %v13989_v51 = vld [vmem:[#allocation60_spill] sm:$0xff] }
 0x499   : > { %v6612_v26 = vmul.f32 %v4851_v43, %v13981_v42  ;;  %v9644_v58 = vpop.f32.mrb[86].mxu0 }
 0x49a   : > { %v13128_v25 = vadd.f32 %v9641_v21, %v6613_v6  ;;  %v5649_v62 = vpop.f32.mrb[87].mxu0  ;;  %v13988_v21 = vld [vmem:[#allocation59_spill] sm:$0xff] }
 0x49b   : > { %v13130_v8 = vadd.f32 %v6612_v26, %v5639_v60  ;;  %v9488_v61 = vpop.f32.mrb[86].mxu1 }
 0x49c   : > { %v6615_v9 = vmul.f32 %v9488_v61, %v13982_v30  ;;  %v4861_v59 = vpop.f32.mrb[87].mxu1 }
 0x49d   : > { %v6614_v53 = vmul.f32 %v4861_v59, %v13983_v17  ;;  %v9647_v46 = vpop.f32.mrb[88].mxu0 }
 0x49e   : > { %v13134_v45 = vadd.f32 %v9644_v58, %v6615_v9  ;;  %v5659_v19 = vpop.f32.mrb[89].mxu0  ;;  %v13991_v9 = vld [vmem:[#allocation64_spill] sm:$0xff] }
 0x49f   : > { %v13136_v40 = vadd.f32 %v6614_v53, %v5649_v62  ;;  %v9491_v11 = vpop.f32.mrb[88].mxu1  ;;  %v13990_v62 = vld [vmem:[#allocation63_spill] sm:$0xff] }
 0x4a0   : > { %v6617_v31 = vmul.f32 %v9491_v11, %v13984_v23  ;;  %v4871_v63 = vpop.f32.mrb[89].mxu1 }
 0x4a1   : > { %v6616_v39 = vmul.f32 %v4871_v63, %v13985_v47  ;;  %v9650_v55 = vpop.f32.mrb[90].mxu0  ;;  %v13993_v63 = vld [vmem:[#allocation7_spill] sm:$0xff] }
 0x4a2   : > { %v13140_v29 = vadd.f32 %v9647_v46, %v6617_v31  ;;  %v5669_v48 = vpop.f32.mrb[91].mxu0  ;;  %v13166_v31 = vld [vmem:[%s13694_s8] ss:$0 sm:$0xff] }
 0x4a3   : > { %v13142_v57 = vadd.f32 %v6616_v39, %v5659_v19  ;;  %v9494_v33 = vpop.f32.mrb[90].mxu1  ;;  %v13992_v19 = vld [vmem:[#allocation6_spill] sm:$0xff] }
 0x4a4   : > { %v6619_v28 = vmul.f32 %v9494_v33, %v13986_v7  ;;  %v4881_v1 = vpop.f32.mrb[91].mxu1  ;;  %v13994_v7 = vld [vmem:[#allocation9_spill] sm:$0xff] }
 0x4a5   : > { %v6618_v24 = vmul.f32 %v4881_v1, %v13987_v38  ;;  %v9653_v52 = vpop.f32.mrb[92].mxu0 }
 0x4a6   : > { %v13146_v41 = vadd.f32 %v9650_v55, %v6619_v28  ;;  %v5679_v15 = vpop.f32.mrb[93].mxu0 }
 0x4a7   : > { %v13148_v20 = vadd.f32 %v6618_v24, %v5669_v48  ;;  %v9497_v56 = vpop.f32.mrb[92].mxu1  ;;  %v13995_v24 = vld [vmem:[#allocation14_spill] sm:$0xff] }
 0x4a8   : > { %v6621_v49 = vmul.f32 %v9497_v56, %v13988_v21  ;;  %v4891_v60 = vpop.f32.mrb[93].mxu1 }
 0x4a9   : > { %v6620_v44 = vmul.f32 %v4891_v60, %v13989_v51  ;;  %v9656_v6 = vpop.f32.mrb[94].mxu0 }
 0x4aa   : > { %v13152_v43 = vadd.f32 %v9653_v52, %v6621_v49  ;;  %v5689_v42 = vpop.f32.mrb[95].mxu0 }
 0x4ab   : > { %v13154_v26 = vadd.f32 %v6620_v44, %v5679_v15  ;;  %v9500_v58 = vpop.f32.mrb[94].mxu1 }
 0x4ac   : > { %v6623_v61 = vmul.f32 %v9500_v58, %v13990_v62  ;;  %v4901_v30 = vpop.f32.mrb[95].mxu1 }
 0x4ad   : > { %v6622_v59 = vmul.f32 %v4901_v30, %v13991_v9 }
 0x4ae   : > { %v13158_v17 = vadd.f32 %v9656_v6, %v6623_v61 }
 0x4af   : > { %v13160_v53 = vadd.f32 %v6622_v59, %v5689_v42  ;;  %v13997_v42 = vld [vmem:[#allocation16_spill] sm:$0xff]  ;;  %v13998_v59 = vld [vmem:[#allocation18_spill] sm:$0xff] }
 0x52f   : > { %v9767_v46 = vpop.f32.mrb[96].mxu1 }
 0x530   : > { %v6657_v11 = vmul.f32 %v9767_v46, %v13992_v19  ;;  %v6401_v23 = vpop.f32.mrb[97].mxu1 }
 0x531   : > { %v6656_v47 = vmul.f32 %v6401_v23, %v13993_v63  ;;  %v13999_v23 = vld [vmem:[#allocation17_spill] sm:$0xff] }
 0x532   : > { %v6689_v39 = vadd.f32 %v6657_v11, %v13027_v36 }
 0x533   : > { %v6688_v55 = vadd.f32 %v6656_v47, %v13029_v27  ;;  %v9770_v48 = vpop.f32.mrb[98].mxu1  ;;  %v13996_v27 = vld [vmem:[#allocation13_spill] sm:$0xff] }
 0x534   : > { %v6728_v33 = vadd.f32 %v13166_v31, %v6689_v39  ;;  %v6659_v28 = vmul.f32 %v9770_v48, %v13994_v7  ;;  %v6411_v1 = vpop.f32.mrb[99].mxu1 }
 0x535   : > { %v6727_v38 = vadd.f32 %v13166_v31, %v6688_v55  ;;  %v6658_v52 = vmul.f32 %v6411_v1, %v13995_v24 }
 0x536   : > { %v6691_v15 = vadd.f32 %v6659_v28, %v13037_v2  ;;  %v6760_v60 = vmax.f32 %v6728_v33, 0.0  ;;  %v14000_v33 = vld [vmem:[#allocation21_spill] sm:$0xff] }
 0x537   : > { %v6759_v56 = vmax.f32 %v6727_v38, 0.0  ;;  %v6690_v21 = vadd.f32 %v6658_v52, %v13039_v37  ;;  %v9773_v49 = vpop.f32.mrb[100].mxu1  ;;  %v14001_v38 = vld [vmem:[#allocation22_spill] sm:$0xff] }
 0x538   : > { %v6730_v36 = vadd.f32 %v13166_v31, %v6691_v15  ;;  %v6661_v51 = vmul.f32 %v9773_v49, %v13996_v27  ;;  %v6421_v44 = vpop.f32.mrb[101].mxu1  ;;  %v14002_v49 = vld [vmem:[#allocation25_spill] sm:$0xff] }
 0x539   : > { %v6729_v6 = vadd.f32 %v13166_v31, %v6690_v21  ;;  %v6660_v58 = vmul.f32 %v6421_v44, %v13997_v42  ;;  %9817 = vmatprep.mubr.msk.f32.mxu0 %vm3966_vm5, %v6759_v56 }
 0x53a   : > { %v6693_v62 = vadd.f32 %v6661_v51, %v13047_v10  ;;  %9818 = vmatmul.mubr.msk.f32.vlgmr.msra.gmra.mrb[96].mxu0 %vm3966_vm5, %v6760_v60  ;;  %v6762_v30 = vmax.f32 %v6730_v36, 0.0  ;;  %v14003_v51 = vld [vmem:[#allocation26_spill] sm:$0xff] }
 0x53b   : > { %v6761_v2 = vmax.f32 %v6729_v6, 0.0  ;;  %v6692_v37 = vadd.f32 %v6660_v58, %v13049_v12  ;;  %v9776_v61 = vpop.f32.mrb[102].mxu1 }
 0x53c   : > { %v6732_v9 = vadd.f32 %v13166_v31, %v6693_v62  ;;  %v6663_v46 = vmul.f32 %v9776_v61, %v13998_v59  ;;  %v6431_v19 = vpop.f32.mrb[103].mxu1 }
 0x53d   : > { %v6731_v11 = vadd.f32 %v13166_v31, %v6692_v37  ;;  %v6662_v63 = vmul.f32 %v6431_v19, %v13999_v23  ;;  %9820 = vmatprep.mubr.msk.f32.mxu0 %vm3966_vm5, %v6761_v2  ;;  %v14004_v2 = vld [vmem:[#allocation29_spill] sm:$0xff] }
 0x53e   : > { %v6695_v10 = vadd.f32 %v6663_v46, %v13057_v18  ;;  %9821 = vmatmul.mubr.msk.f32.gmra.mrb[98].mxu0 %vm3966_vm5, %v6762_v30  ;;  %v6764_v55 = vmax.f32 %v6732_v9, 0.0  ;;  %v14005_v9 = vld [vmem:[#allocation30_spill] sm:$0xff] }
 0x53f   : > { %v6763_v47 = vmax.f32 %v6731_v11, 0.0  ;;  %v6694_v12 = vadd.f32 %v6662_v63, %v13059_v5  ;;  %v9779_v39 = vpop.f32.mrb[104].mxu1  ;;  %v14006_v63 = vld [vmem:[#allocation33_spill] sm:$0xff] }
 0x540   : > { %v6734_v48 = vadd.f32 %v13166_v31, %v6695_v10  ;;  %v6665_v7 = vmul.f32 %v9779_v39, %v14000_v33  ;;  %v6441_v28 = vpop.f32.mrb[105].mxu1  ;;  %v14007_v39 = vld [vmem:[#allocation34_spill] sm:$0xff] }
 0x541   : > { %v6733_v1 = vadd.f32 %v13166_v31, %v6694_v12  ;;  %v6664_v24 = vmul.f32 %v6441_v28, %v14001_v38  ;;  %9823 = vmatprep.mubr.msk.f32.mxu0 %vm3966_vm5, %v6763_v47 }
 0x542   : > { %v6697_v18 = vadd.f32 %v6665_v7, %v13067_v13  ;;  %9824 = vmatmul.mubr.msk.f32.gmra.mrb[100].mxu0 %vm3966_vm5, %v6764_v55  ;;  %v6766_v56 = vmax.f32 %v6734_v48, 0.0 }
 0x543   : > { %v6765_v52 = vmax.f32 %v6733_v1, 0.0  ;;  %v6696_v5 = vadd.f32 %v6664_v24, %v13069_v54  ;;  %v9782_v15 = vpop.f32.mrb[106].mxu1  ;;  %v14008_v1 = vld [vmem:[#allocation37_spill] sm:$0xff] }
 0x544   : > { %v6736_v21 = vadd.f32 %v13166_v31, %v6697_v18  ;;  %v6667_v60 = vmul.f32 %v9782_v15, %v14002_v49  ;;  %v6451_v36 = vpop.f32.mrb[107].mxu1 }
 0x545   : > { %v6735_v27 = vadd.f32 %v13166_v31, %v6696_v5  ;;  %v6666_v44 = vmul.f32 %v6451_v36, %v14003_v51  ;;  %9826 = vmatprep.mubr.msk.f32.mxu0 %vm3966_vm5, %v6765_v52  ;;  %v14009_v52 = vld [vmem:[#allocation38_spill] sm:$0xff] }
 0x546   : > { %v6699_v13 = vadd.f32 %v6667_v60, %v13077_v35  ;;  %9827 = vmatmul.mubr.msk.f32.gmra.mrb[102].mxu0 %vm3966_vm5, %v6766_v56  ;;  %v6768_v58 = vmax.f32 %v6736_v21, 0.0  ;;  %v14010_v60 = vld [vmem:[#allocation41_spill] sm:$0xff] }
 0x547   : > { %v6767_v6 = vmax.f32 %v6735_v27, 0.0  ;;  %v6698_v54 = vadd.f32 %v6666_v44, %v13079_v22  ;;  %v9785_v42 = vpop.f32.mrb[108].mxu1  ;;  %v14011_v44 = vld [vmem:[#allocation42_spill] sm:$0xff] }
 0x548   : > { %v6738_v62 = vadd.f32 %v13166_v31, %v6699_v13  ;;  %v6669_v37 = vmul.f32 %v9785_v42, %v14004_v2  ;;  %v6461_v61 = vpop.f32.mrb[109].mxu1 }
 0x549   : > { %v6737_v30 = vadd.f32 %v13166_v31, %v6698_v54  ;;  %v6668_v59 = vmul.f32 %v6461_v61, %v14005_v9  ;;  %9829 = vmatprep.mubr.msk.f32.mxu0 %vm3966_vm5, %v6767_v6 }
 0x54a   : > { %v6701_v35 = vadd.f32 %v6669_v37, %v13087_v32  ;;  %9830 = vmatmul.mubr.msk.f32.gmra.mrb[104].mxu0 %vm3966_vm5, %v6768_v58  ;;  %v6770_v11 = vmax.f32 %v6738_v62, 0.0  ;;  %v14012_v62 = vld [vmem:[#allocation45_spill] sm:$0xff] }
 0x54b   : > { %v6769_v46 = vmax.f32 %v6737_v30, 0.0  ;;  %v6700_v22 = vadd.f32 %v6668_v59, %v13089_v3  ;;  %v9788_v19 = vpop.f32.mrb[110].mxu1  ;;  %v14013_v30 = vld [vmem:[#allocation46_spill] sm:$0xff] }
 0x54c   : > { %v6740_v23 = vadd.f32 %v13166_v31, %v6701_v35  ;;  %v6671_v10 = vmul.f32 %v9788_v19, %v14006_v63  ;;  %v6471_v47 = vpop.f32.mrb[111].mxu1  ;;  %v14014_v19 = vld [vmem:[#allocation49_spill] sm:$0xff] }
 0x54d   : > { %v6739_v12 = vadd.f32 %v13166_v31, %v6700_v22  ;;  %v6670_v55 = vmul.f32 %v6471_v47, %v14007_v39  ;;  %9832 = vmatprep.mubr.msk.f32.mxu0 %vm3966_vm5, %v6769_v46 }
 0x54e   : > { %v6703_v32 = vadd.f32 %v6671_v10, %v13098_v4  ;;  %9833 = vmatmul.mubr.msk.f32.gmra.mrb[106].mxu0 %vm3966_vm5, %v6770_v11  ;;  %v6772_v7 = vmax.f32 %v6740_v23, 0.0  ;;  %v14015_v10 = vld [vmem:[#allocation50_spill] sm:$0xff] }
 0x54f   : > { %v6771_v48 = vmax.f32 %v6739_v12, 0.0  ;;  %v6702_v3 = vadd.f32 %v6670_v55, %v13100_v34  ;;  %v9791_v33 = vpop.f32.mrb[112].mxu1 }
 0x550   : > { %v6742_v28 = vadd.f32 %v13166_v31, %v6703_v32  ;;  %v6673_v38 = vmul.f32 %v9791_v33, %v14008_v1  ;;  %v6481_v24 = vpop.f32.mrb[113].mxu1 }
 0x551   : > { %v6741_v18 = vadd.f32 %v13166_v31, %v6702_v3  ;;  %v6672_v5 = vmul.f32 %v6481_v24, %v14009_v52  ;;  %9835 = vmatprep.mubr.msk.f32.mxu0 %vm3966_vm5, %v6771_v48  ;;  %v14016_v48 = vld [vmem:[#allocation53_spill] sm:$0xff] }
 0x552   : > { %v6705_v4 = vadd.f32 %v6673_v38, %v13108_v16  ;;  %9836 = vmatmul.mubr.msk.f32.gmra.mrb[108].mxu0 %vm3966_vm5, %v6772_v7  ;;  %v6774_v21 = vmax.f32 %v6742_v28, 0.0  ;;  %v14017_v28 = vld [vmem:[#allocation54_spill] sm:$0xff] }
 0x553   : > { %v6773_v15 = vmax.f32 %v6741_v18, 0.0  ;;  %v6704_v34 = vadd.f32 %v6672_v5, %v13113_v50  ;;  %v9794_v56 = vpop.f32.mrb[114].mxu1  ;;  %v14018_v5 = vld [vmem:[#allocation57_spill] sm:$0xff] }
 0x554   : > { %v6744_v49 = vadd.f32 %v13166_v31, %v6705_v4  ;;  %v6675_v36 = vmul.f32 %v9794_v56, %v14010_v60  ;;  %v6491_v27 = vpop.f32.mrb[115].mxu1  ;;  %v14019_v56 = vld [vmem:[#allocation58_spill] sm:$0xff] }
 0x555   : > { %v6743_v51 = vadd.f32 %v13166_v31, %v6704_v34  ;;  %v6674_v13 = vmul.f32 %v6491_v27, %v14011_v44  ;;  %9838 = vmatprep.mubr.msk.f32.mxu0 %vm3966_vm5, %v6773_v15 }
 0x556   : > { %v6707_v16 = vadd.f32 %v6675_v36, %v13121_v14  ;;  %9839 = vmatmul.mubr.msk.f32.gmra.mrb[110].mxu0 %vm3966_vm5, %v6774_v21  ;;  %v6776_v42 = vmax.f32 %v6744_v49, 0.0 }
 0x557   : > { %v6775_v6 = vmax.f32 %v6743_v51, 0.0  ;;  %v6706_v50 = vadd.f32 %v6674_v13, %v13123_v0  ;;  %v9797_v54 = vpop.f32.mrb[116].mxu1  ;;  %v14020_v51 = vld [vmem:[#allocation61_spill] sm:$0xff] }
 0x558   : > { %v6746_v58 = vadd.f32 %v13166_v31, %v6707_v16  ;;  %v6677_v2 = vmul.f32 %v9797_v54, %v14012_v62  ;;  %v6501_v37 = vpop.f32.mrb[117].mxu1 }
 0x559   : > { %v6745_v61 = vadd.f32 %v13166_v31, %v6706_v50  ;;  %v6676_v9 = vmul.f32 %v6501_v37, %v14013_v30  ;;  %9841 = vmatprep.mubr.msk.f32.mxu0 %vm3966_vm5, %v6775_v6  ;;  %v14021_v6 = vld [vmem:[#allocation62_spill] sm:$0xff] }
 0x55a   : > { %v6709_v14 = vadd.f32 %v6677_v2, %v13128_v25  ;;  %9842 = vmatmul.mubr.msk.f32.gmra.mrb[112].mxu0 %vm3966_vm5, %v6776_v42  ;;  %v6778_v46 = vmax.f32 %v6746_v58, 0.0  ;;  %v14022_v2 = vld [vmem:[#allocation65_spill] sm:$0xff] }
 0x55b   : > { %v6777_v59 = vmax.f32 %v6745_v61, 0.0  ;;  %v6708_v0 = vadd.f32 %v6676_v9, %v13130_v8  ;;  %v9800_v35 = vpop.f32.mrb[118].mxu1  ;;  %v14023_v9 = vld [vmem:[#allocation66_spill] sm:$0xff] }
 0x55c   : > { %v6748_v22 = vadd.f32 %v13166_v31, %v6709_v14  ;;  %v6679_v11 = vmul.f32 %v9800_v35, %v14014_v19  ;;  %v6511_v23 = vpop.f32.mrb[119].mxu1 }
 0x55d   : > { %v6747_v63 = vadd.f32 %v13166_v31, %v6708_v0  ;;  %v6678_v47 = vmul.f32 %v6511_v23, %v14015_v10  ;;  %9844 = vmatprep.mubr.msk.f32.mxu0 %vm3966_vm5, %v6777_v59 }
 0x55e   : > { %v6711_v25 = vadd.f32 %v6679_v11, %v13134_v45  ;;  %9845 = vmatmul.mubr.msk.f32.gmra.mrb[114].mxu0 %vm3966_vm5, %v6778_v46  ;;  %v6780_v55 = vmax.f32 %v6748_v22, 0.0 }
 0x55f   : > { %v6779_v12 = vmax.f32 %v6747_v63, 0.0  ;;  %v6710_v8 = vadd.f32 %v6678_v47, %v13136_v40  ;;  %v9803_v39 = vpop.f32.mrb[120].mxu1 }
 0x560   : > { %v6750_v32 = vadd.f32 %v13166_v31, %v6711_v25  ;;  %v6681_v3 = vmul.f32 %v9803_v39, %v14016_v48  ;;  %v6521_v33 = vpop.f32.mrb[121].mxu1 }
 0x561   : > { %v6749_v7 = vadd.f32 %v13166_v31, %v6710_v8  ;;  %v6680_v1 = vmul.f32 %v6521_v33, %v14017_v28  ;;  %9847 = vmatprep.mubr.msk.f32.mxu0 %vm3966_vm5, %v6779_v12 }
 0x562   : > { %v6713_v45 = vadd.f32 %v6681_v3, %v13140_v29  ;;  %9848 = vmatmul.mubr.msk.f32.gmra.mrb[116].mxu0 %vm3966_vm5, %v6780_v55  ;;  %v6782_v18 = vmax.f32 %v6750_v32, 0.0 }
 0x563   : > { %v6781_v38 = vmax.f32 %v6749_v7, 0.0  ;;  %v6712_v40 = vadd.f32 %v6680_v1, %v13142_v57  ;;  %v9806_v24 = vpop.f32.mrb[122].mxu1 }
 0x564   : > { %v6752_v52 = vadd.f32 %v13166_v31, %v6713_v45  ;;  %v6683_v4 = vmul.f32 %v9806_v24, %v14018_v5  ;;  %v6531_v15 = vpop.f32.mrb[123].mxu1 }
 0x565   : > { %v6751_v34 = vadd.f32 %v13166_v31, %v6712_v40  ;;  %v6682_v21 = vmul.f32 %v6531_v15, %v14019_v56  ;;  %9850 = vmatprep.mubr.msk.f32.mxu0 %vm3966_vm5, %v6781_v38 }
 0x566   : > { %v6715_v29 = vadd.f32 %v6683_v4, %v13146_v41  ;;  %9851 = vmatmul.mubr.msk.f32.gmra.mrb[118].mxu0 %vm3966_vm5, %v6782_v18  ;;  %v6784_v36 = vmax.f32 %v6752_v52, 0.0 }
 0x567   : > { %v6783_v49 = vmax.f32 %v6751_v34, 0.0  ;;  %v6714_v57 = vadd.f32 %v6682_v21, %v13148_v20  ;;  %v9809_v60 = vpop.f32.mrb[124].mxu1 }
 0x568   : > { %v6754_v27 = vadd.f32 %v13166_v31, %v6715_v29  ;;  %v6685_v44 = vmul.f32 %v9809_v60, %v14020_v51  ;;  %v6541_v13 = vpop.f32.mrb[125].mxu1 }
 0x569   : > { %v6753_v16 = vadd.f32 %v13166_v31, %v6714_v57  ;;  %v6684_v50 = vmul.f32 %v6541_v13, %v14021_v6  ;;  %9853 = vmatprep.mubr.msk.f32.mxu0 %vm3966_vm5, %v6783_v49 }
 0x56a   : > { %v6717_v41 = vadd.f32 %v6685_v44, %v13152_v43  ;;  %9854 = vmatmul.mubr.msk.f32.gmra.mrb[120].mxu0 %vm3966_vm5, %v6784_v36  ;;  %v6786_v58 = vmax.f32 %v6754_v27, 0.0 }
 0x56b   : > { %v6785_v54 = vmax.f32 %v6753_v16, 0.0  ;;  %v6716_v20 = vadd.f32 %v6684_v50, %v13154_v26  ;;  %v9812_v42 = vpop.f32.mrb[126].mxu1 }
 0x56c   : > { %v6756_v62 = vadd.f32 %v13166_v31, %v6717_v41  ;;  %v6687_v37 = vmul.f32 %v9812_v42, %v14022_v2  ;;  %v6551_v61 = vpop.f32.mrb[127].mxu1 }
 0x56d   : > { %v6755_v30 = vadd.f32 %v13166_v31, %v6716_v20  ;;  %v6686_v14 = vmul.f32 %v6551_v61, %v14023_v9  ;;  %9856 = vmatprep.mubr.msk.f32.mxu0 %vm3966_vm5, %v6785_v54 }
 0x56e   : > { %v6719_v43 = vadd.f32 %v6687_v37, %v13158_v17  ;;  %9857 = vmatmul.mubr.msk.f32.gmra.mrb[122].mxu0 %vm3966_vm5, %v6786_v58  ;;  %v6788_v0 = vmax.f32 %v6756_v62, 0.0 }
 0x56f   : > { %v6787_v59 = vmax.f32 %v6755_v30, 0.0  ;;  %v6718_v26 = vadd.f32 %v6686_v14, %v13160_v53 }
 0x570   : > { %v6758_v35 = vadd.f32 %v13166_v31, %v6719_v43 }
 0x571   : > { %v6757_v46 = vadd.f32 %v13166_v31, %v6718_v26  ;;  %9859 = vmatprep.mubr.msk.f32.mxu0 %vm3966_vm5, %v6787_v59 }
 0x572   : > { %9860 = vmatmul.mubr.msk.f32.gmra.mrb[124].mxu0 %vm3966_vm5, %v6788_v0  ;;  %v6790_v19 = vmax.f32 %v6758_v35, 0.0 }
 0x573   : > { %v6789_v22 = vmax.f32 %v6757_v46, 0.0 }
 0x575   : > { %9862 = vmatprep.mubr.msk.f32.mxu0 %vm3966_vm5, %v6789_v22 }
 0x576   : > { %9863 = vmatmul.mubr.msk.f32.gmra.mrb[126].mxu0 %vm3966_vm5, %v6790_v19 }
 0x60d   : > { %v13295_v17 = vpop.f32.mrb[96].mxu0 }
 0x60e   : > { %v7116_v53 = vsel %vm7114_vm6, %v13295_v17, 0.0  ;;  %v13299_v11 = vpop.f32.mrb[97].mxu0 }
 0x60f   : > { %v7115_v31 = vsel %vm7114_vm6, %v13299_v11, 0.0 }
 0x610   : > { %v7117_v23 = vadd.f32 %v7116_v53, %v7115_v31 }
 0x611   : > { %v13303_v63 = vpop.f32.mrb[98].mxu0 }
 0x612   : > { %v13305_v10 = vpop.f32.mrb[99].mxu0  ;;  %v7120_v12 = vsel %vm7114_vm6, %v13303_v63, 0.0 }
 0x613   : > { %v7118_v47 = vsel %vm7114_vm6, %v13305_v10, 0.0 }
 0x614   : > { %v7119_v25 = vadd.f32 %v7118_v47, %v7117_v23 }
 0x615   : > { %v13311_v8 = vpop.f32.mrb[100].mxu0 }
 0x616   : > { %v13313_v39 = vpop.f32.mrb[101].mxu0  ;;  %v7121_v55 = vadd.f32 %v7120_v12, %v7119_v25  ;;  %v7124_v3 = vsel %vm7114_vm6, %v13311_v8, 0.0 }
 0x617   : > { %v7122_v32 = vsel %vm7114_vm6, %v13313_v39, 0.0 }
 0x618   : > { %v7123_v48 = vadd.f32 %v7122_v32, %v7121_v55 }
 0x619   : > { %v13319_v33 = vpop.f32.mrb[102].mxu0 }
 0x61a   : > { %v13321_v7 = vpop.f32.mrb[103].mxu0  ;;  %v7125_v28 = vadd.f32 %v7124_v3, %v7123_v48  ;;  %v7128_v38 = vsel %vm7114_vm6, %v13319_v33, 0.0 }
 0x61b   : > { %v7126_v1 = vsel %vm7114_vm6, %v13321_v7, 0.0 }
 0x61c   : > { %v7127_v45 = vadd.f32 %v7126_v1, %v7125_v28 }
 0x61d   : > { %v13327_v40 = vpop.f32.mrb[104].mxu0 }
 0x61e   : > { %v13329_v24 = vpop.f32.mrb[105].mxu0  ;;  %v7129_v18 = vadd.f32 %v7128_v38, %v7127_v45  ;;  %v7132_v4 = vsel %vm7114_vm6, %v13327_v40, 0.0 }
 0x61f   : > { %v7130_v52 = vsel %vm7114_vm6, %v13329_v24, 0.0 }
 0x620   : > { %v7131_v5 = vadd.f32 %v7130_v52, %v7129_v18 }
 0x621   : > { %v13335_v15 = vpop.f32.mrb[106].mxu0 }
 0x622   : > { %v13337_v34 = vpop.f32.mrb[107].mxu0  ;;  %v7133_v56 = vadd.f32 %v7132_v4, %v7131_v5  ;;  %v7136_v49 = vsel %vm7114_vm6, %v13335_v15, 0.0 }
 0x623   : > { %v7134_v21 = vsel %vm7114_vm6, %v13337_v34, 0.0 }
 0x624   : > { %v7135_v29 = vadd.f32 %v7134_v21, %v7133_v56 }
 0x625   : > { %v13343_v57 = vpop.f32.mrb[108].mxu0 }
 0x626   : > { %v13345_v60 = vpop.f32.mrb[109].mxu0  ;;  %v7137_v36 = vadd.f32 %v7136_v49, %v7135_v29  ;;  %v7140_v44 = vsel %vm7114_vm6, %v13343_v57, 0.0 }
 0x627   : > { %v7138_v27 = vsel %vm7114_vm6, %v13345_v60, 0.0 }
 0x628   : > { %v7139_v51 = vadd.f32 %v7138_v27, %v7137_v36 }
 0x629   : > { %v13351_v13 = vpop.f32.mrb[110].mxu0 }
 0x62a   : > { %v13353_v16 = vpop.f32.mrb[111].mxu0  ;;  %v7141_v6 = vadd.f32 %v7140_v44, %v7139_v51  ;;  %v7144_v54 = vsel %vm7114_vm6, %v13351_v13, 0.0 }
 0x62b   : > { %v7142_v50 = vsel %vm7114_vm6, %v13353_v16, 0.0 }
 0x62c   : > { %v7143_v41 = vadd.f32 %v7142_v50, %v7141_v6 }
 0x62d   : > { %v13359_v20 = vpop.f32.mrb[112].mxu0 }
 0x62e   : > { %v13361_v42 = vpop.f32.mrb[113].mxu0  ;;  %v7145_v58 = vadd.f32 %v7144_v54, %v7143_v41  ;;  %v7148_v37 = vsel %vm7114_vm6, %v13359_v20, 0.0 }
 0x62f   : > { %v7146_v62 = vsel %vm7114_vm6, %v13361_v42, 0.0 }
 0x630   : > { %v7147_v2 = vadd.f32 %v7146_v62, %v7145_v58 }
 0x631   : > { %v13367_v61 = vpop.f32.mrb[114].mxu0 }
 0x632   : > { %v13369_v30 = vpop.f32.mrb[115].mxu0  ;;  %v7149_v9 = vadd.f32 %v7148_v37, %v7147_v2  ;;  %v7152_v59 = vsel %vm7114_vm6, %v13367_v61, 0.0 }
 0x633   : > { %v7150_v14 = vsel %vm7114_vm6, %v13369_v30, 0.0 }
 0x634   : > { %v7151_v43 = vadd.f32 %v7150_v14, %v7149_v9 }
 0x635   : > { %v13375_v26 = vpop.f32.mrb[116].mxu0 }
 0x636   : > { %v13377_v0 = vpop.f32.mrb[117].mxu0  ;;  %v7153_v35 = vadd.f32 %v7152_v59, %v7151_v43  ;;  %v7156_v19 = vsel %vm7114_vm6, %v13375_v26, 0.0 }
 0x637   : > { %v7154_v46 = vsel %vm7114_vm6, %v13377_v0, 0.0 }
 0x638   : > { %v7155_v22 = vadd.f32 %v7154_v46, %v7153_v35 }
 0x639   : > { %v9852_v53 = vpop.f32.mrb[118].mxu0 }
 0x63a   : > { %v7065_v31 = vpop.f32.mrb[119].mxu0  ;;  %v7157_v23 = vadd.f32 %v7156_v19, %v7155_v22  ;;  %v7160_v12 = vsel %vm7114_vm6, %v9852_v53, 0.0 }
 0x63b   : > { %v7158_v47 = vsel %vm7114_vm6, %v7065_v31, 0.0 }
 0x63c   : > { %v7159_v25 = vadd.f32 %v7158_v47, %v7157_v23 }
 0x63d   : > { %v9855_v55 = vpop.f32.mrb[120].mxu0 }
 0x63e   : > { %v7075_v32 = vpop.f32.mrb[121].mxu0  ;;  %v7161_v48 = vadd.f32 %v7160_v12, %v7159_v25  ;;  %v7164_v1 = vsel %vm7114_vm6, %v9855_v55, 0.0 }
 0x63f   : > { %v7162_v3 = vsel %vm7114_vm6, %v7075_v32, 0.0 }
 0x640   : > { %v7163_v28 = vadd.f32 %v7162_v3, %v7161_v48 }
 0x641   : > { %v9858_v45 = vpop.f32.mrb[122].mxu0 }
 0x642   : > { %v7085_v38 = vpop.f32.mrb[123].mxu0  ;;  %v7165_v18 = vadd.f32 %v7164_v1, %v7163_v28  ;;  %v7168_v4 = vsel %vm7114_vm6, %v9858_v45, 0.0 }
 0x643   : > { %v7166_v52 = vsel %vm7114_vm6, %v7085_v38, 0.0 }
 0x644   : > { %v7167_v5 = vadd.f32 %v7166_v52, %v7165_v18 }
 0x645   : > { %v9861_v56 = vpop.f32.mrb[124].mxu0 }
 0x646   : > { %v7095_v21 = vpop.f32.mrb[125].mxu0  ;;  %v7169_v29 = vadd.f32 %v7168_v4, %v7167_v5  ;;  %v7172_v27 = vsel %vm7114_vm6, %v9861_v56, 0.0 }
 0x647   : > { %v7170_v49 = vsel %vm7114_vm6, %v7095_v21, 0.0 }
 0x648   : > { %v7171_v36 = vadd.f32 %v7170_v49, %v7169_v29 }
 0x649   : > { %v9864_v51 = vpop.f32.mrb[126].mxu0 }
 0x64a   : > { %v7105_v44 = vpop.f32.mrb[127].mxu0  ;;  %v7173_v6 = vadd.f32 %v7172_v27, %v7171_v36  ;;  %v7176_v54 = vsel %vm7114_vm6, %v9864_v51, 0.0 }
 0x64b   : > { %v7174_v50 = vsel %vm7114_vm6, %v7105_v44, 0.0 }
 0x64c   : > { %v7175_v41 = vadd.f32 %v7174_v50, %v7173_v6 }
 0x64e   : > { %v7177_v58 = vadd.f32 %v7176_v54, %v7175_v41 }
 0x650   : > { %v7178_v62 = vrot.slane %v7177_v58, 4 }
 0x652   : > { %v7179_v2 = vadd.f32 %v7178_v62, %v7177_v58 }
 0x654   : > { %v7180_v37 = vrot.slane %v7179_v2, 2 }
 0x656   : > { %v7181_v9 = vadd.f32 %v7180_v37, %v7179_v2 }
 0x658   : > { %v7182_v14 = vrot.slane %v7181_v9, 1 }
 0x65a   : > { %v7183_v43 = vadd.f32 %v7182_v14, %v7181_v9 }
 0x65c   : > { %v7184_v59 = vmul.f32 0.00390625, %v7183_v43 }
 0x65e   : > { %v13394_v35 = vsub.f32 %v13299_v11, %v7184_v59  ;;  %v13397_v46 = vsub.f32 %v13295_v17, %v7184_v59  ;;  %v13400_v22 = vsub.f32 %v13305_v10, %v7184_v59  ;;  %v13403_v19 = vsub.f32 %v13303_v63, %v7184_v59 }
 0x65f   : > { %v13406_v23 = vsub.f32 %v13313_v39, %v7184_v59  ;;  %v13409_v47 = vsub.f32 %v13311_v8, %v7184_v59  ;;  %v13412_v25 = vsub.f32 %v13321_v7, %v7184_v59  ;;  %v13415_v11 = vsub.f32 %v13319_v33, %v7184_v59 }
 0x660   : > { %v13418_v17 = vsub.f32 %v13329_v24, %v7184_v59  ;;  %v13421_v10 = vsub.f32 %v13327_v40, %v7184_v59  ;;  %v13424_v63 = vsub.f32 %v13337_v34, %v7184_v59  ;;  %v13427_v39 = vsub.f32 %v13335_v15, %v7184_v59 }
 0x661   : > { %v13430_v8 = vsub.f32 %v13345_v60, %v7184_v59  ;;  %v13433_v7 = vsub.f32 %v13343_v57, %v7184_v59  ;;  %v13436_v33 = vsub.f32 %v13353_v16, %v7184_v59  ;;  %v13439_v24 = vsub.f32 %v13351_v13, %v7184_v59 }
 0x662   : > { %v13442_v40 = vsub.f32 %v13361_v42, %v7184_v59  ;;  %v13445_v34 = vsub.f32 %v13359_v20, %v7184_v59  ;;  %v13448_v15 = vsub.f32 %v13369_v30, %v7184_v59  ;;  %v13451_v60 = vsub.f32 %v13367_v61, %v7184_v59 }
 0x663   : > { %v13454_v57 = vsub.f32 %v13377_v0, %v7184_v59  ;;  %v13457_v16 = vsub.f32 %v13375_v26, %v7184_v59  ;;  %v13459_v13 = vsub.f32 %v7065_v31, %v7184_v59  ;;  %v13461_v12 = vsub.f32 %v9852_v53, %v7184_v59 }
 0x664   : > { %v13463_v42 = vsub.f32 %v7075_v32, %v7184_v59  ;;  %v13465_v20 = vsub.f32 %v9855_v55, %v7184_v59  ;;  %v13467_v48 = vsub.f32 %v7085_v38, %v7184_v59  ;;  %v13469_v30 = vsub.f32 %v9858_v45, %v7184_v59 }
 0x665   : > { %v13471_v61 = vsub.f32 %v7095_v21, %v7184_v59  ;;  %v13473_v3 = vsub.f32 %v9861_v56, %v7184_v59  ;;  %v13475_v0 = vsub.f32 %v7105_v44, %v7184_v59  ;;  %v13477_v26 = vsub.f32 %v9864_v51, %v7184_v59 }
 0x666   : > { %v7217_v53 = vmul.f32 %v13394_v35, %v13394_v35  ;;  %v7218_v31 = vmul.f32 %v13397_v46, %v13397_v46  ;;  %v7219_v55 = vmul.f32 %v13400_v22, %v13400_v22  ;;  %v7220_v32 = vmul.f32 %v13403_v19, %v13403_v19 }
 0x667   : > { %v7221_v38 = vmul.f32 %v13406_v23, %v13406_v23  ;;  %v7222_v5 = vmul.f32 %v13409_v47, %v13409_v47  ;;  %v7223_v21 = vmul.f32 %v13412_v25, %v13412_v25  ;;  %v7224_v36 = vmul.f32 %v13415_v11, %v13415_v11 }
 0x668   : > { %v7249_v28 = vsel %vm7114_vm6, %v7217_v53, 0.0  ;;  %v7250_v1 = vsel %vm7114_vm6, %v7218_v31, 0.0  ;;  %v7252_v18 = vsel %vm7114_vm6, %v7219_v55, 0.0  ;;  %v7254_v4 = vsel %vm7114_vm6, %v7220_v32, 0.0 }
 0x669   : > { %v7251_v45 = vadd.f32 %v7250_v1, %v7249_v28  ;;  %v7256_v29 = vsel %vm7114_vm6, %v7221_v38, 0.0  ;;  %v7258_v27 = vsel %vm7114_vm6, %v7222_v5, 0.0  ;;  %v7225_v44 = vmul.f32 %v13418_v17, %v13418_v17 }
 0x66a   : > { %v7260_v6 = vsel %vm7114_vm6, %v7223_v21, 0.0  ;;  %v7226_v41 = vmul.f32 %v13421_v10, %v13421_v10  ;;  %v7262_v54 = vsel %vm7114_vm6, %v7224_v36, 0.0  ;;  %v7227_v62 = vmul.f32 %v13424_v63, %v13424_v63 }
 0x66b   : > { %v7253_v52 = vadd.f32 %v7252_v18, %v7251_v45  ;;  %v7264_v2 = vsel %vm7114_vm6, %v7225_v44, 0.0  ;;  %v7228_v9 = vmul.f32 %v13427_v39, %v13427_v39  ;;  %v7229_v59 = vmul.f32 %v13430_v8, %v13430_v8 }
 0x66c   : > { %v7266_v14 = vsel %vm7114_vm6, %v7226_v41, 0.0  ;;  %v7268_v53 = vsel %vm7114_vm6, %v7227_v62, 0.0  ;;  %v7230_v55 = vmul.f32 %v13433_v7, %v13433_v7  ;;  %v7231_v1 = vmul.f32 %v13436_v33, %v13436_v33 }
 0x66d   : > { %v7255_v56 = vadd.f32 %v7254_v4, %v7253_v52  ;;  %v7270_v32 = vsel %vm7114_vm6, %v7228_v9, 0.0  ;;  %v7272_v45 = vsel %vm7114_vm6, %v7229_v59, 0.0  ;;  %v7232_v18 = vmul.f32 %v13439_v24, %v13439_v24 }
 0x66e   : > { %v7274_v52 = vsel %vm7114_vm6, %v7230_v55, 0.0  ;;  %v7233_v4 = vmul.f32 %v13442_v40, %v13442_v40 }
 0x66f   : > { %v7257_v49 = vadd.f32 %v7256_v29, %v7255_v56  ;;  %v7276_v56 = vsel %vm7114_vm6, %v7231_v1, 0.0  ;;  %v7234_v29 = vmul.f32 %v13445_v34, %v13445_v34 }
 0x671   : > { %v7259_v51 = vadd.f32 %v7258_v27, %v7257_v49  ;;  %v7278_v49 = vsel %vm7114_vm6, %v7232_v18, 0.0  ;;  %v7235_v27 = vmul.f32 %v13448_v15, %v13448_v15 }
 0x673   : > { %v7261_v50 = vadd.f32 %v7260_v6, %v7259_v51  ;;  %v7280_v51 = vsel %vm7114_vm6, %v7233_v4, 0.0  ;;  %v7236_v6 = vmul.f32 %v13451_v60, %v13451_v60 }
 0x675   : > { %v7263_v58 = vadd.f32 %v7262_v54, %v7261_v50  ;;  %v7282_v50 = vsel %vm7114_vm6, %v7234_v29, 0.0  ;;  %v7237_v54 = vmul.f32 %v13454_v57, %v13454_v57 }
 0x677   : > { %v7265_v37 = vadd.f32 %v7264_v2, %v7263_v58  ;;  %v7284_v58 = vsel %vm7114_vm6, %v7235_v27, 0.0  ;;  %v7238_v2 = vmul.f32 %v13457_v16, %v13457_v16 }
 0x679   : > { %v7267_v43 = vadd.f32 %v7266_v14, %v7265_v37  ;;  %v7286_v37 = vsel %vm7114_vm6, %v7236_v6, 0.0  ;;  %v7239_v14 = vmul.f32 %v13459_v13, %v13459_v13 }
 0x67b   : > { %v7269_v31 = vadd.f32 %v7268_v53, %v7267_v43  ;;  %v7288_v43 = vsel %vm7114_vm6, %v7237_v54, 0.0  ;;  %v7240_v53 = vmul.f32 %v13461_v12, %v13461_v12 }
 0x67d   : > { %v7271_v28 = vadd.f32 %v7270_v32, %v7269_v31  ;;  %v7290_v31 = vsel %vm7114_vm6, %v7238_v2, 0.0  ;;  %v7241_v32 = vmul.f32 %v13463_v42, %v13463_v42 }
 0x67f   : > { %v7273_v38 = vadd.f32 %v7272_v45, %v7271_v28  ;;  %v7292_v28 = vsel %vm7114_vm6, %v7239_v14, 0.0  ;;  %v7242_v45 = vmul.f32 %v13465_v20, %v13465_v20 }
 0x681   : > { %v7275_v5 = vadd.f32 %v7274_v52, %v7273_v38  ;;  %v7294_v38 = vsel %vm7114_vm6, %v7240_v53, 0.0  ;;  %v7243_v52 = vmul.f32 %v13467_v48, %v13467_v48 }
 0x683   : > { %v7277_v21 = vadd.f32 %v7276_v56, %v7275_v5  ;;  %v7296_v5 = vsel %vm7114_vm6, %v7241_v32, 0.0  ;;  %v7244_v56 = vmul.f32 %v13469_v30, %v13469_v30 }
 0x685   : > { %v7279_v36 = vadd.f32 %v7278_v49, %v7277_v21  ;;  %v7298_v21 = vsel %vm7114_vm6, %v7242_v45, 0.0  ;;  %v7245_v49 = vmul.f32 %v13471_v61, %v13471_v61 }
 0x687   : > { %v7281_v44 = vadd.f32 %v7280_v51, %v7279_v36  ;;  %v7300_v36 = vsel %vm7114_vm6, %v7243_v52, 0.0  ;;  %v7246_v51 = vmul.f32 %v13473_v3, %v13473_v3  ;;  %v7319_v52 = vld [vmem:[%s13696_s10] sm:$0x1] }
 0x689   : > { %v7283_v41 = vadd.f32 %v7282_v50, %v7281_v44  ;;  %v7302_v44 = vsel %vm7114_vm6, %v7244_v56, 0.0  ;;  %v7247_v50 = vmul.f32 %v13475_v0, %v13475_v0 }
 0x68b   : > { %v7285_v62 = vadd.f32 %v7284_v58, %v7283_v41  ;;  %v7304_v41 = vsel %vm7114_vm6, %v7245_v49, 0.0  ;;  %v7248_v58 = vmul.f32 %v13477_v26, %v13477_v26 }
 0x68d   : > { %v7287_v9 = vadd.f32 %v7286_v37, %v7285_v62  ;;  %v7306_v62 = vsel %vm7114_vm6, %v7246_v51, 0.0  ;;  %v7308_v37 = vsel %vm7114_vm6, %v7247_v50, 0.0  ;;  %v7310_v14 = vsel %vm7114_vm6, %v7248_v58, 0.0 }
 0x68f   : > { %v7289_v59 = vadd.f32 %v7288_v43, %v7287_v9 }
 0x691   : > { %v7291_v55 = vadd.f32 %v7290_v31, %v7289_v59 }
 0x693   : > { %v7293_v1 = vadd.f32 %v7292_v28, %v7291_v55 }
 0x695   : > { %v7295_v18 = vadd.f32 %v7294_v38, %v7293_v1  ;;  %v7324_v38 = vlaneseq }
 0x697   : > { %v7297_v4 = vadd.f32 %v7296_v5, %v7295_v18  ;;  %v7325_v18 = vshrl.u32 %v7324_v38, 7 }
 0x699   : > { %v7299_v29 = vadd.f32 %v7298_v21, %v7297_v4  ;;  %v7326_v5 = vsub.s32 0, %v7325_v18 }
 0x69b   : > { %v7301_v27 = vadd.f32 %v7300_v36, %v7299_v29 }
 0x69d   : > { %v7303_v6 = vadd.f32 %v7302_v44, %v7301_v27 }
 0x69f   : > { %v7305_v54 = vadd.f32 %v7304_v41, %v7303_v6 }
 0x6a1   : > { %v7307_v2 = vadd.f32 %v7306_v62, %v7305_v54 }
 0x6a3   : > { %v7309_v9 = vadd.f32 %v7308_v37, %v7307_v2 }
 0x6a5   : > { %v7311_v43 = vadd.f32 %v7310_v14, %v7309_v9 }
 0x6a7   : > { %v7312_v59 = vrot.slane %v7311_v43, 4 }
 0x6a9   : > { %v7313_v53 = vadd.f32 %v7312_v59, %v7311_v43 }
 0x6ab   : > { %v7314_v31 = vrot.slane %v7313_v53, 2 }
 0x6ad   : > { %v7315_v55 = vadd.f32 %v7314_v31, %v7313_v53 }
 0x6af   : > { %v7316_v32 = vrot.slane %v7315_v55, 1 }
 0x6b1   : > { %v7317_v28 = vadd.f32 %v7316_v32, %v7315_v55 }
 0x6b3   : > { %v7318_v1 = vmul.f32 0.00390625, %v7317_v28 }
 0x6b5   : > { %v7320_v45 = vadd.f32 1e-05, %v7318_v1 }
 0x6b7   : > { %10302 = vrsqrt.f32 %v7320_v45 }
 0x6c1   : > { %v10303_v4 = vpop.eup %10302 }
 0x6c2   : > { %v7322_v56 = vmul.f32 %v10303_v4, %v7319_v52 }
 0x6c4   : > { %v7327_v21 = vrot.slane %v7322_v56, %v7326_v5 }
 0x6c6   : > { %v7329_v29 = vmul.f32 %v7327_v21, %v13394_v35  ;;  %v7330_v49 = vmul.f32 %v7327_v21, %v13397_v46  ;;  %v7331_v36 = vmul.f32 %v7327_v21, %v13400_v22  ;;  %v7332_v27 = vmul.f32 %v7327_v21, %v13403_v19 }
 0x6c7   : > { %v7333_v51 = vmul.f32 %v7327_v21, %v13406_v23  ;;  %v7334_v44 = vmul.f32 %v7327_v21, %v13409_v47  ;;  %v7335_v6 = vmul.f32 %v7327_v21, %v13412_v25  ;;  %v7336_v50 = vmul.f32 %v7327_v21, %v13415_v11 }
 0x6c8   : > { %v7337_v41 = vmul.f32 %v7327_v21, %v13418_v17  ;;  %v7338_v54 = vmul.f32 %v7327_v21, %v13421_v10  ;;  %v7339_v35 = vmul.f32 %v7327_v21, %v13424_v63  ;;  %v7340_v46 = vmul.f32 %v7327_v21, %v13427_v39 }
 0x6c9   : > { %v7341_v22 = vmul.f32 %v7327_v21, %v13430_v8  ;;  %v7342_v19 = vmul.f32 %v7327_v21, %v13433_v7  ;;  %v7343_v23 = vmul.f32 %v7327_v21, %v13436_v33  ;;  %v7344_v47 = vmul.f32 %v7327_v21, %v13439_v24  ;;  %v8171_v33 = vld [vmem:[%s13697_s11] ss:$0 sm:$0xff] }
 0x6ca   : > { %v7345_v25 = vmul.f32 %v7327_v21, %v13442_v40  ;;  %v7346_v11 = vmul.f32 %v7327_v21, %v13445_v34  ;;  %v7347_v17 = vmul.f32 %v7327_v21, %v13448_v15  ;;  %v7348_v10 = vmul.f32 %v7327_v21, %v13451_v60 }
 0x6cb   : > { %v7349_v63 = vmul.f32 %v7327_v21, %v13454_v57  ;;  %v7350_v39 = vmul.f32 %v7327_v21, %v13457_v16  ;;  %v7351_v8 = vmul.f32 %v7327_v21, %v13459_v13  ;;  %v7352_v7 = vmul.f32 %v7327_v21, %v13461_v12 }
 0x6cc   : > { %v7353_v24 = vmul.f32 %v7327_v21, %v13463_v42  ;;  %v7354_v40 = vmul.f32 %v7327_v21, %v13465_v20  ;;  %v7355_v34 = vmul.f32 %v7327_v21, %v13467_v48  ;;  %v7356_v15 = vmul.f32 %v7327_v21, %v13469_v30 }
 0x6cd   : > { %v7357_v60 = vmul.f32 %v7327_v21, %v13471_v61  ;;  %v7358_v57 = vmul.f32 %v7327_v21, %v13473_v3  ;;  %v7359_v16 = vmul.f32 %v7327_v21, %v13475_v0  ;;  %v7360_v13 = vmul.f32 %v7327_v21, %v13477_v26 }
 0x6ce   : > { %v7368_v12 = vadd.f32 %v8171_v33, %v7329_v29  ;;  %v7369_v42 = vadd.f32 %v8171_v33, %v7330_v49  ;;  %v7370_v20 = vadd.f32 %v8171_v33, %v7331_v36  ;;  %v7371_v48 = vadd.f32 %v8171_v33, %v7332_v27 }
 0x6cf   : > { %v7372_v30 = vadd.f32 %v8171_v33, %v7333_v51  ;;  %v7373_v58 = vadd.f32 %v8171_v33, %v7334_v44  ;;  %v7374_v62 = vadd.f32 %v8171_v33, %v7335_v6  ;;  %v7375_v61 = vadd.f32 %v8171_v33, %v7336_v50 }
 0x6d0   : > { %v7376_v3 = vadd.f32 %v8171_v33, %v7337_v41  ;;  %v7377_v2 = vadd.f32 %v8171_v33, %v7338_v54  ;;  %v7378_v37 = vadd.f32 %v8171_v33, %v7339_v35  ;;  %v7379_v0 = vadd.f32 %v8171_v33, %v7340_v46  ;;  %7400 = vst.msk [vmem:[%s13613_s27] sm:$0xff] %vm7114_vm6, %v7368_v12 }
 0x6d1   : > { %7401 = vst.msk [vmem:[%s13613_s27 + $0x8] sm:$0xff] %vm7114_vm6, %v7369_v42  ;;  %7402 = vst.msk [vmem:[%s13613_s27 + $0x10] sm:$0xff] %vm7114_vm6, %v7370_v20  ;;  %v7380_v26 = vadd.f32 %v8171_v33, %v7341_v22  ;;  %v7381_v9 = vadd.f32 %v8171_v33, %v7342_v19  ;;  %v7382_v14 = vadd.f32 %v8171_v33, %v7343_v23 }
 0x6d2   : > { %7403 = vst.msk [vmem:[%s13613_s27 + $0x18] sm:$0xff] %vm7114_vm6, %v7371_v48  ;;  %v7383_v43 = vadd.f32 %v8171_v33, %v7344_v47  ;;  %7404 = vst.msk [vmem:[%s13613_s27 + $0x20] sm:$0xff] %vm7114_vm6, %v7372_v30  ;;  %v7384_v59 = vadd.f32 %v8171_v33, %v7345_v25  ;;  %v7385_v53 = vadd.f32 %v8171_v33, %v7346_v11 }
 0x6d3   : > { %7405 = vst.msk [vmem:[%s13613_s27 + $0x28] sm:$0xff] %vm7114_vm6, %v7373_v58  ;;  %7406 = vst.msk [vmem:[%s13613_s27 + $0x30] sm:$0xff] %vm7114_vm6, %v7374_v62  ;;  %v7386_v31 = vadd.f32 %v8171_v33, %v7347_v17  ;;  %v7387_v55 = vadd.f32 %v8171_v33, %v7348_v10  ;;  %v7388_v32 = vadd.f32 %v8171_v33, %v7349_v63 }
 0x6d4   : > { %7407 = vst.msk [vmem:[%s13613_s27 + $0x38] sm:$0xff] %vm7114_vm6, %v7375_v61  ;;  %7408 = vst.msk [vmem:[%s13613_s27 + $0x40] sm:$0xff] %vm7114_vm6, %v7376_v3  ;;  %v7389_v28 = vadd.f32 %v8171_v33, %v7350_v39  ;;  %v7390_v1 = vadd.f32 %v8171_v33, %v7351_v8  ;;  %v7391_v45 = vadd.f32 %v8171_v33, %v7352_v7 }
 0x6d5   : > { %7409 = vst.msk [vmem:[%s13613_s27 + $0x48] sm:$0xff] %vm7114_vm6, %v7377_v2  ;;  %7410 = vst.msk [vmem:[%s13613_s27 + $0x50] sm:$0xff] %vm7114_vm6, %v7378_v37  ;;  %v7392_v38 = vadd.f32 %v8171_v33, %v7353_v24  ;;  %v7393_v18 = vadd.f32 %v8171_v33, %v7354_v40  ;;  %v7394_v52 = vadd.f32 %v8171_v33, %v7355_v34 }
 0x6d6   : > { %7411 = vst.msk [vmem:[%s13613_s27 + $0x58] sm:$0xff] %vm7114_vm6, %v7379_v0  ;;  %7412 = vst.msk [vmem:[%s13613_s27 + $0x60] sm:$0xff] %vm7114_vm6, %v7380_v26  ;;  %v7395_v5 = vadd.f32 %v8171_v33, %v7356_v15  ;;  %v7396_v4 = vadd.f32 %v8171_v33, %v7357_v60  ;;  %v7397_v56 = vadd.f32 %v8171_v33, %v7358_v57 }
 0x6d7   : > { %7413 = vst.msk [vmem:[%s13613_s27 + $0x68] sm:$0xff] %vm7114_vm6, %v7381_v9  ;;  %7414 = vst.msk [vmem:[%s13613_s27 + $0x70] sm:$0xff] %vm7114_vm6, %v7382_v14  ;;  %v7398_v21 = vadd.f32 %v8171_v33, %v7359_v16  ;;  %v7399_v29 = vadd.f32 %v8171_v33, %v7360_v13 }
 0x6d8   : > { %7415 = vst.msk [vmem:[%s13613_s27 + $0x78] sm:$0xff] %vm7114_vm6, %v7383_v43  ;;  %7416 = vst.msk [vmem:[%s13613_s27 + $0x80] sm:$0xff] %vm7114_vm6, %v7384_v59 }
 0x6d9   : > { %7417 = vst.msk [vmem:[%s13613_s27 + $0x88] sm:$0xff] %vm7114_vm6, %v7385_v53  ;;  %7418 = vst.msk [vmem:[%s13613_s27 + $0x90] sm:$0xff] %vm7114_vm6, %v7386_v31 }
 0x6da   : > { %7419 = vst.msk [vmem:[%s13613_s27 + $0x98] sm:$0xff] %vm7114_vm6, %v7387_v55  ;;  %7420 = vst.msk [vmem:[%s13613_s27 + $0xa0] sm:$0xff] %vm7114_vm6, %v7388_v32 }
 0x6db   : > { %7421 = vst.msk [vmem:[%s13613_s27 + $0xa8] sm:$0xff] %vm7114_vm6, %v7389_v28  ;;  %7422 = vst.msk [vmem:[%s13613_s27 + $0xb0] sm:$0xff] %vm7114_vm6, %v7390_v1 }
 0x6dc   : > { %7423 = vst.msk [vmem:[%s13613_s27 + $0xb8] sm:$0xff] %vm7114_vm6, %v7391_v45  ;;  %7424 = vst.msk [vmem:[%s13613_s27 + $0xc0] sm:$0xff] %vm7114_vm6, %v7392_v38 }
 0x6dd   : > { %7425 = vst.msk [vmem:[%s13613_s27 + $0xc8] sm:$0xff] %vm7114_vm6, %v7393_v18  ;;  %7426 = vst.msk [vmem:[%s13613_s27 + $0xd0] sm:$0xff] %vm7114_vm6, %v7394_v52 }
 0x6de   : > { %7427 = vst.msk [vmem:[%s13613_s27 + $0xd8] sm:$0xff] %vm7114_vm6, %v7395_v5  ;;  %7428 = vst.msk [vmem:[%s13613_s27 + $0xe0] sm:$0xff] %vm7114_vm6, %v7396_v4 }
 0x6df   : > { %7429 = vst.msk [vmem:[%s13613_s27 + $0xe8] sm:$0xff] %vm7114_vm6, %v7397_v56  ;;  %7430 = vst.msk [vmem:[%s13613_s27 + $0xf0] sm:$0xff] %vm7114_vm6, %v7398_v21 }
 0x6e0   : > { %7431 = vst.msk [vmem:[%s13613_s27 + $0xf8] sm:$0xff] %vm7114_vm6, %v7399_v29 }
 0x6e1 PF: > { %s22_s21 = sadd.s32 1, %s10312_s21  }
 0x6e2   : > { %p19_p4 = scmp.ge.s32.totalorder %s22_s21, 4  }
 0x6e4   :  { %21 = sbr.rel (!%p19_p4) target bundleno = 1 (0x1), region = 114 }

</bundles_post_ra>
